<compile_context>
chip_gen: v5e
topology: v5e:2x2
jax: 0.10.0
libtpu: 0.0.40
codegen_flags: <defaults>
</compile_context>

<pallas_src>
import functools

import jax
import jax.numpy as jnp
from jax.experimental import pallas as pl
from jax.experimental.pallas import tpu as pltpu

Z_RATIO = 0.8
LN_EPS = 1e-5
LANE = 128


# ----------------------------- fused Pallas kernel -----------------------------

def _pglass_fused_kernel(x0_ref, wmix_ref, adjk_ref, w_ref, sp_ref, q_ref,
                         head_ref, out_ref, *, num_layers, hidden):
    """Whole PGLASS forward (post-embedding) in one invocation.

    Activations are node-major (NT, C): row n*Tp + b is node n in copy b.
    w_ref  : (L, 3, C, 2C) bf16  -> [w0|w1], [cw0a|cw1a], [cw0b|cw1b]
    sp_ref : (L, 3, 2C)    f32   -> [b0|b1], [gamma|beta], [cb0|cb1]
    """
    C = hidden
    x = x0_ref[...]                        # (NT, C)  f32 running activation
    wmix = wmix_ref[...]                   # (NT, C)  f32 per-row mixing coeff
    inv_wmix = 1.0 - wmix
    adjk = adjk_ref[...]                   # (NT, NT) bf16 kron(A_norm, I_Tp)

    for l in range(num_layers):            # L tiny & static -> unrolled
        spl = sp_ref[l]                    # (3, 2C) f32
        xb = x.astype(jnp.bfloat16)

        # fused label-pair trans Linear + ReLU: one (NT,C)@(C,2C) bf16 dot
        h01 = jnp.dot(xb, w_ref[l, 0], preferred_element_type=jnp.float32) + spl[0:1, :]
        h01 = jnp.maximum(h01, 0.0)
        # z_ratio mixing; labelled (target) rows get the swapped mix
        h = inv_wmix * h01[:, :C] + wmix * h01[:, C:]

        # mean neighbour aggregation for all copies at once (block-diagonal kron)
        agg = jnp.dot(adjk, h.astype(jnp.bfloat16), preferred_element_type=jnp.float32)

        # LayerNorm over channels (dropout = identity in eval mode); variance via
        # E[x^2]-E[x]^2 keeps the two cross-lane reductions independent
        mu = jnp.mean(agg, axis=-1, keepdims=True)
        msq = jnp.mean(agg * agg, axis=-1, keepdims=True)
        ln = (agg - mu) * jax.lax.rsqrt(msq - mu * mu + LN_EPS)
        ln = ln * spl[1:2, :C] + spl[1:2, C:]

        # fused label-pair comb Linears on cat([ln, x]) == ln-dot + x-dot, width 2C
        c01 = (jnp.dot(ln.astype(jnp.bfloat16), w_ref[l, 1], preferred_element_type=jnp.float32)
               + jnp.dot(xb, w_ref[l, 2], preferred_element_type=jnp.float32)
               + spl[2:3, :])
        y = inv_wmix * c01[:, :C] + wmix * c01[:, C:]

        x = y + x                          # EmbZGConv residual add

    # tail: target-column gather + double mean pooling folded into Q, then the
    # lane-padded prediction head (weight rows 0..C-1, bias row C).
    pooled = jnp.dot(q_ref[...], x, preferred_element_type=jnp.float32)   # (Sp, C)
    head = head_ref[...]
    out_ref[...] = (jnp.dot(pooled, head[:C, :], preferred_element_type=jnp.float32)
                    + head[C:C + 1, :]).astype(out_ref.dtype)


def _pglass_pallas(x0, wmix, adjk, W, SP, Q, HEAD, num_layers):
    NT, C = x0.shape
    Sp = Q.shape[0]
    KP = HEAD.shape[1]
    L = W.shape[0]

    def full(shape):
        return pl.BlockSpec(shape, lambda i, _n=len(shape): (0,) * _n)

    kernel = functools.partial(_pglass_fused_kernel, num_layers=num_layers, hidden=C)
    return pl.pallas_call(
        kernel,
        out_shape=jax.ShapeDtypeStruct((Sp, KP), jnp.float32),
        grid=(1,),
        in_specs=[full((NT, C)),            # x0   (f32)
                  full((NT, C)),            # wmix (f32)
                  full((NT, NT)),           # kron adjacency (bf16)
                  full((L, 3, C, 2 * C)),   # packed weights (bf16)
                  full((L, 3, 2 * C)),      # packed biases + LN params (f32)
                  full((Sp, NT)),           # fused select+pool matrix Q (f32)
                  full((C + 1, KP))],       # pred weight+bias, lane-padded (f32)
        out_specs=full((Sp, KP)),
        # TODO(synk): with a batch of independent graphs, add a leading
        # "parallel" grid axis over graphs so the v7x megacore shards work.
        compiler_params=pltpu.CompilerParams(dimension_semantics=("arbitrary",)),
    )(x0, wmix, adjk, W, SP, Q, HEAD)


# ----------------------------- model glue -----------------------------

def init_params(key, hidden, num_layers, max_deg, num_classes):
    ks = list(jax.random.split(key, 4 + 8 * num_layers))
    nxt = iter(ks).__next__
    nrm = lambda k, shape, fan: (jax.random.normal(k, shape, jnp.float32) / jnp.sqrt(fan))
    params = {
        "emb": nrm(nxt(), (max_deg + 1, hidden), 1.0),
        "pe_gamma": jnp.ones((1, hidden), jnp.float32),
        "pe_beta": jnp.zeros((1, hidden), jnp.float32),
        "convs": [],
        "wp": nrm(nxt(), (hidden, num_classes), hidden),
        "bp": jnp.zeros((1, num_classes), jnp.float32),
    }
    for _ in range(num_layers):
        p = {
            "w0": nrm(nxt(), (hidden, hidden), hidden),
            "b0": 0.01 * jnp.ones((1, hidden), jnp.float32),
            "w1": nrm(nxt(), (hidden, hidden), hidden),
            "b1": -0.01 * jnp.ones((1, hidden), jnp.float32),
            "gamma": jnp.ones((1, hidden), jnp.float32),
            "beta": jnp.zeros((1, hidden), jnp.float32),
            "cw0a": nrm(nxt(), (hidden, hidden), 2 * hidden),
            "cw0b": nrm(nxt(), (hidden, hidden), 2 * hidden),
            "cb0": jnp.zeros((1, hidden), jnp.float32),
            "cw1a": nrm(nxt(), (hidden, hidden), 2 * hidden),
            "cw1b": nrm(nxt(), (hidden, hidden), 2 * hidden),
            "cb1": jnp.zeros((1, hidden), jnp.float32),
        }
        params["convs"].append(p)
    return params


def _layernorm(h, gamma, beta):
    mu = h.mean(-1, keepdims=True)
    var = jnp.mean(jnp.square(h - mu), -1, keepdims=True)
    return (h - mu) * jax.lax.rsqrt(var + LN_EPS) * gamma + beta


def _ref_conv(x, mask, A_norm, p):
    """Pure-JAX (f32) reference for one GLASSConv layer + residual."""
    z = Z_RATIO
    h0 = jax.nn.relu(x @ p["w0"] + p["b0"])
    h1 = jax.nn.relu(x @ p["w1"] + p["b1"])
    h = jnp.where(mask > 0.5, z * h1 + (1 - z) * h0, z * h0 + (1 - z) * h1)
    agg = jnp.einsum("ij,bjc->bic", A_norm, h)
    ln = _layernorm(agg, p["gamma"], p["beta"])
    c0 = ln @ p["cw0a"] + x @ p["cw0b"] + p["cb0"]
    c1 = ln @ p["cw1a"] + x @ p["cw1b"] + p["cb1"]
    y = jnp.where(mask > 0.5, z * c1 + (1 - z) * c0, z * c0 + (1 - z) * c1)
    return y + x


def pglass_forward(params, x_deg, A_dense, batch, subgnode_ids, use_pallas=True):
    N = x_deg.shape[0]
    hidden = params["emb"].shape[1]
    num_layers = len(params["convs"])

    # forward(): unique target nodes + remapped subgraph membership (host-side,
    # data-dependent shapes -> stays outside the kernel)
    tar_nodes, subg_remap = jnp.unique(subgnode_ids, return_inverse=True)
    T = int(tar_nodes.shape[0])
    S = int(jnp.max(batch)) + 1

    # spmm_mean's implicit normalization: divide each row by its nnz count
    rowcount = jnp.sum((A_dense != 0).astype(jnp.float32), axis=1, keepdims=True)
    A_norm = A_dense / jnp.maximum(rowcount, 1.0)

    # EmbZGConv: embedding lookup + post_emb LayerNorm (dropout = identity, eval)
    h = params["emb"][x_deg]                         # (N, hidden)
    h = _layernorm(h, params["pe_gamma"], params["pe_beta"])

    # subgraph membership + row-normalized pooling matrix
    M = jnp.zeros((S, T), jnp.float32).at[batch, subg_remap].set(1.0)
    M_hat = M / jnp.maximum(M.sum(1, keepdims=True), 1.0)

    if not use_pallas:
        xrep = jnp.tile(h[None], (T, 1, 1))          # (T, N, hidden)
        mask = (jnp.arange(N)[None, :] == tar_nodes[:, None]).astype(jnp.float32)[:, :, None]
        for p in params["convs"]:
            xrep = _ref_conv(xrep, mask, A_norm, p)
        emb_sel = xrep[:, tar_nodes]                 # (T, T, hidden)
        pooled = jnp.einsum("sb,st,btc->sc", M_hat, M_hat, emb_sel)
        return pooled @ params["wp"] + params["bp"]

    # ---------- fused-kernel operand packing (tiny, host-side) ----------
    # Pad the copy count so NT = N*Tp is sublane/lane dense (16*8 = 128 here).
    Tp = ((T + 7) // 8) * 8
    NT = N * Tp

    # node-major replication: row n*Tp + b holds node n's features in copy b
    x0 = jnp.repeat(h, Tp, axis=0)                                       # (NT, C)

    # per-row mixing coefficient (z on a copy's target node, 1-z elsewhere);
    # padded copies get a -1 sentinel target, i.e. no labelled node.
    tar_pad = jnp.concatenate(
        [tar_nodes, -jnp.ones((Tp - T,), tar_nodes.dtype)])
    mask = (jnp.arange(N)[:, None] == tar_pad[None, :]).astype(jnp.float32).reshape(NT, 1)
    wmix = jnp.broadcast_to((1.0 - Z_RATIO) + mask * (2.0 * Z_RATIO - 1.0),
                            (NT, hidden))

    # shared adjacency for all copies as one bf16 matmul: kron(A_norm, I_Tp)
    adjk = jnp.kron(A_norm, jnp.eye(Tp, dtype=jnp.float32)).astype(jnp.bfloat16)
    # TODO(synk): for large N, drop the kron and aggregate A_norm @ x viewed as
    # (N, Tp*C) over a tiled grid K-axis with a VMEM accumulator (avoids the
    # O((NT)^2) operand, which matters on v7x's 64 MiB VMEM).

    convs = params["convs"]
    # packed weights: [w0|w1], [cw0a|cw1a], [cw0b|cw1b]  -> (L, 3, C, 2C) bf16
    W = jnp.stack([jnp.stack([
            jnp.concatenate([p["w0"], p["w1"]], axis=1),
            jnp.concatenate([p["cw0a"], p["cw1a"]], axis=1),
            jnp.concatenate([p["cw0b"], p["cw1b"]], axis=1)])
        for p in convs]).astype(jnp.bfloat16)
    # packed small params: [b0|b1], [gamma|beta], [cb0|cb1] -> (L, 3, 2C) f32
    SP = jnp.stack([jnp.stack([
            jnp.concatenate([p["b0"], p["b1"]], axis=1)[0],
            jnp.concatenate([p["gamma"], p["beta"]], axis=1)[0],
            jnp.concatenate([p["cb0"], p["cb1"]], axis=1)[0]])
        for p in convs])

    # target-column gather + double mean pooling folded into Q:
    #   pooled[s] = sum_{n,b} Mhat_node[s,n] * M_hat[s,b] * x_final[n*Tp+b]
    Sp = ((S + 7) // 8) * 8
    Mhat_node = jnp.zeros((Sp, N), jnp.float32).at[:S].set(
        jnp.zeros((S, N), jnp.float32).at[:, tar_nodes].set(M_hat))
    Mhat_copy = jnp.zeros((Sp, Tp), jnp.float32).at[:S, :T].set(M_hat)
    Q = (Mhat_node[:, :, None] * Mhat_copy[:, None, :]).reshape(Sp, NT)   # (Sp, NT)

    # lane-dense prediction head: weight + bias stacked, classes padded to 128
    K = params["wp"].shape[1]
    KP = max(LANE, ((K + LANE - 1) // LANE) * LANE)
    HEAD = jnp.zeros((hidden + 1, KP), jnp.float32)
    HEAD = HEAD.at[:hidden, :K].set(params["wp"]).at[hidden, :K].set(params["bp"][0])

    logits_pad = _pglass_pallas(x0, wmix, adjk, W, SP, Q, HEAD, num_layers)
    return logits_pad[:S, :K]


# ----------------------------- main -----------------------------

if __name__ == "__main__":
    key = jax.random.PRNGKey(0)
    k_param, k_deg, k_adj, k_w = jax.random.split(key, 4)

    N, HIDDEN, NUM_LAYERS, MAX_DEG, NUM_CLASSES = 16, 32, 2, 8, 2

    params = init_params(k_param, HIDDEN, NUM_LAYERS, MAX_DEG, NUM_CLASSES)

    # node integer features (degrees) and a random weighted dense adjacency
    x_deg = jax.random.randint(k_deg, (N,), 0, MAX_DEG + 1)
    adj_mask = (jax.random.uniform(k_adj, (N, N)) < 0.3).astype(jnp.float32)
    adj_mask = adj_mask * (1.0 - jnp.eye(N, dtype=jnp.float32))
    edge_w = jax.random.uniform(k_w, (N, N), minval=0.5, maxval=1.5)
    A_dense = adj_mask * edge_w

    # node2subg COO: 3 subgraphs over nodes {0..6}
    batch = jnp.array([0, 0, 0, 1, 1, 1, 1, 2, 2], dtype=jnp.int32)
    subgnode_ids = jnp.array([0, 1, 2, 2, 3, 4, 5, 5, 6], dtype=jnp.int32)

    out = pglass_forward(params, x_deg, A_dense, batch, subgnode_ids, use_pallas=True)
    out = jax.block_until_ready(out)

    ref = pglass_forward(params, x_deg, A_dense, batch, subgnode_ids, use_pallas=False)
    assert out.shape == ref.shape == (3, NUM_CLASSES)
    # tolerance accounts for bf16 MXU operands in the fused kernel (f32 reference)
    assert jnp.allclose(out, ref, atol=5e-2, rtol=5e-2), (out, ref)

    print("KERNEL_OK")
</pallas_src>

<mosaic_0001>
module attributes {stable_mosaic.version = 11 : i64} {
  func.func @_pglass_fused_kernel(%arg0: i32, %arg1: memref<128x32xf32, #tpu.memory_space<vmem>>, %arg2: memref<128x32xf32, #tpu.memory_space<vmem>>, %arg3: memref<128x128xbf16, #tpu.memory_space<vmem>>, %arg4: memref<2x3x32x64xbf16, #tpu.memory_space<vmem>>, %arg5: memref<2x3x64xf32, #tpu.memory_space<vmem>>, %arg6: memref<8x128xf32, #tpu.memory_space<vmem>>, %arg7: memref<33x128xf32, #tpu.memory_space<vmem>>, %arg8: memref<8x128xf32, #tpu.memory_space<vmem>>) attributes {dimension_semantics = [#tpu.dimension_semantics<arbitrary>], iteration_bounds = array<i64: 1>, scalar_prefetch = 0 : i64, scratch_operands = 0 : i64, tpu.core_type = #tpu.core_type<tc>, window_params = [{pipeline_mode = #tpu.pipeline_mode<synchronous>, transform_indices = @transform_0, window_bounds = array<i64: 128, 32>}, {pipeline_mode = #tpu.pipeline_mode<synchronous>, transform_indices = @transform_1, window_bounds = array<i64: 128, 32>}, {pipeline_mode = #tpu.pipeline_mode<synchronous>, transform_indices = @transform_2, window_bounds = array<i64: 128, 128>}, {pipeline_mode = #tpu.pipeline_mode<synchronous>, transform_indices = @transform_3, window_bounds = array<i64: 2, 3, 32, 64>}, {pipeline_mode = #tpu.pipeline_mode<synchronous>, transform_indices = @transform_4, window_bounds = array<i64: 2, 3, 64>}, {pipeline_mode = #tpu.pipeline_mode<synchronous>, transform_indices = @transform_5, window_bounds = array<i64: 8, 128>}, {pipeline_mode = #tpu.pipeline_mode<synchronous>, transform_indices = @transform_6, window_bounds = array<i64: 33, 128>}, {pipeline_mode = #tpu.pipeline_mode<synchronous>, transform_indices = @transform_7, window_bounds = array<i64: 8, 128>}]} {
    %c0 = arith.constant 0 : index
    %c0_0 = arith.constant 0 : index
    %0 = vector.load %arg1[%c0, %c0_0] : memref<128x32xf32, #tpu.memory_space<vmem>>, vector<128x32xf32>
    %c0_1 = arith.constant 0 : index
    %c0_2 = arith.constant 0 : index
    %1 = vector.load %arg2[%c0_1, %c0_2] : memref<128x32xf32, #tpu.memory_space<vmem>>, vector<128x32xf32>
    %cst = arith.constant 1.000000e+00 : f32
    %2 = vector.broadcast %cst : f32 to vector<128x32xf32>
    %3 = arith.subf %2, %1 : vector<128x32xf32>
    %c0_3 = arith.constant 0 : index
    %c0_4 = arith.constant 0 : index
    %4 = vector.load %arg3[%c0_3, %c0_4] : memref<128x128xbf16, #tpu.memory_space<vmem>>, vector<128x128xbf16>
    %c0_5 = arith.constant 0 : index
    %c0_6 = arith.constant 0 : index
    %c0_7 = arith.constant 0 : index
    %5 = vector.load %arg5[%c0_5, %c0_6, %c0_7] : memref<2x3x64xf32, #tpu.memory_space<vmem>>, vector<1x3x64xf32>
    %6 = vector.shape_cast %5 : vector<1x3x64xf32> to vector<3x64xf32>
    %7 = arith.truncf %0 : vector<128x32xf32> to vector<128x32xbf16>
    %c0_8 = arith.constant 0 : index
    %c0_9 = arith.constant 0 : index
    %c0_10 = arith.constant 0 : index
    %c0_11 = arith.constant 0 : index
    %8 = vector.load %arg4[%c0_8, %c0_9, %c0_10, %c0_11] : memref<2x3x32x64xbf16, #tpu.memory_space<vmem>>, vector<1x1x32x64xbf16>
    %9 = vector.shape_cast %8 : vector<1x1x32x64xbf16> to vector<32x64xbf16>
    %cst_12 = arith.constant dense<0.000000e+00> : vector<128x64xf32>
    %10 = tpu.matmul %7, %9, %cst_12 {dimension_numbers = #tpu.dot_dimension_numbers<[1], [0], [0], [1], [0, 0, 1, 1], [], []>} : vector<128x32xbf16>, vector<32x64xbf16>, vector<128x64xf32> -> vector<128x64xf32>
    %11 = vector.extract_strided_slice %6 {offsets = [0, 0], sizes = [1, 64], strides = [1, 1]} : vector<3x64xf32> to vector<1x64xf32>
    %12 = vector.broadcast %11 : vector<1x64xf32> to vector<128x64xf32>
    %13 = arith.addf %10, %12 : vector<128x64xf32>
    %cst_13 = arith.constant 0.000000e+00 : f32
    %14 = vector.broadcast %cst_13 : f32 to vector<128x64xf32>
    %15 = arith.maximumf %13, %14 : vector<128x64xf32>
    %16 = vector.extract_strided_slice %15 {offsets = [0, 0], sizes = [128, 32], strides = [1, 1]} : vector<128x64xf32> to vector<128x32xf32>
    %17 = arith.mulf %3, %16 : vector<128x32xf32>
    %18 = vector.extract_strided_slice %15 {offsets = [0, 32], sizes = [128, 32], strides = [1, 1]} : vector<128x64xf32> to vector<128x32xf32>
    %19 = arith.mulf %1, %18 : vector<128x32xf32>
    %20 = arith.addf %17, %19 : vector<128x32xf32>
    %21 = arith.truncf %20 : vector<128x32xf32> to vector<128x32xbf16>
    %cst_14 = arith.constant dense<0.000000e+00> : vector<128x32xf32>
    %22 = tpu.matmul %4, %21, %cst_14 {dimension_numbers = #tpu.dot_dimension_numbers<[1], [0], [0], [1], [0, 0, 1, 1], [], []>} : vector<128x128xbf16>, vector<128x32xbf16>, vector<128x32xf32> -> vector<128x32xf32>
    %cst_15 = arith.constant dense<0.000000e+00> : vector<128xf32>
    %23 = vector.multi_reduction <add>, %22, %cst_15 [1] : vector<128x32xf32> to vector<128xf32>
    %24 = vector.shape_cast %23 : vector<128xf32> to vector<128x1xf32>
    %cst_16 = arith.constant 3.200000e+01 : f32
    %25 = vector.broadcast %cst_16 : f32 to vector<128x1xf32>
    %26 = arith.divf %24, %25 : vector<128x1xf32>
    %27 = arith.mulf %22, %22 : vector<128x32xf32>
    %cst_17 = arith.constant dense<0.000000e+00> : vector<128xf32>
    %28 = vector.multi_reduction <add>, %27, %cst_17 [1] : vector<128x32xf32> to vector<128xf32>
    %29 = vector.shape_cast %28 : vector<128xf32> to vector<128x1xf32>
    %cst_18 = arith.constant 3.200000e+01 : f32
    %30 = vector.broadcast %cst_18 : f32 to vector<128x1xf32>
    %31 = arith.divf %29, %30 : vector<128x1xf32>
    %32 = vector.broadcast %26 : vector<128x1xf32> to vector<128x32xf32>
    %33 = arith.subf %22, %32 : vector<128x32xf32>
    %34 = arith.mulf %26, %26 : vector<128x1xf32>
    %35 = arith.subf %31, %34 : vector<128x1xf32>
    %cst_19 = arith.constant 9.99999974E-6 : f32
    %36 = vector.broadcast %cst_19 : f32 to vector<128x1xf32>
    %37 = arith.addf %35, %36 : vector<128x1xf32>
    %38 = math.rsqrt %37 : vector<128x1xf32>
    %39 = vector.broadcast %38 : vector<128x1xf32> to vector<128x32xf32>
    %40 = arith.mulf %33, %39 : vector<128x32xf32>
    %41 = vector.extract_strided_slice %6 {offsets = [1, 0], sizes = [1, 32], strides = [1, 1]} : vector<3x64xf32> to vector<1x32xf32>
    %42 = vector.broadcast %41 : vector<1x32xf32> to vector<128x32xf32>
    %43 = arith.mulf %40, %42 : vector<128x32xf32>
    %44 = vector.extract_strided_slice %6 {offsets = [1, 32], sizes = [1, 32], strides = [1, 1]} : vector<3x64xf32> to vector<1x32xf32>
    %45 = vector.broadcast %44 : vector<1x32xf32> to vector<128x32xf32>
    %46 = arith.addf %43, %45 : vector<128x32xf32>
    %47 = arith.truncf %46 : vector<128x32xf32> to vector<128x32xbf16>
    %c0_20 = arith.constant 0 : index
    %c1 = arith.constant 1 : index
    %c0_21 = arith.constant 0 : index
    %c0_22 = arith.constant 0 : index
    %48 = vector.load %arg4[%c0_20, %c1, %c0_21, %c0_22] : memref<2x3x32x64xbf16, #tpu.memory_space<vmem>>, vector<1x1x32x64xbf16>
    %49 = vector.shape_cast %48 : vector<1x1x32x64xbf16> to vector<32x64xbf16>
    %cst_23 = arith.constant dense<0.000000e+00> : vector<128x64xf32>
    %50 = tpu.matmul %47, %49, %cst_23 {dimension_numbers = #tpu.dot_dimension_numbers<[1], [0], [0], [1], [0, 0, 1, 1], [], []>} : vector<128x32xbf16>, vector<32x64xbf16>, vector<128x64xf32> -> vector<128x64xf32>
    %c0_24 = arith.constant 0 : index
    %c2 = arith.constant 2 : index
    %c0_25 = arith.constant 0 : index
    %c0_26 = arith.constant 0 : index
    %51 = vector.load %arg4[%c0_24, %c2, %c0_25, %c0_26] : memref<2x3x32x64xbf16, #tpu.memory_space<vmem>>, vector<1x1x32x64xbf16>
    %52 = vector.shape_cast %51 : vector<1x1x32x64xbf16> to vector<32x64xbf16>
    %cst_27 = arith.constant dense<0.000000e+00> : vector<128x64xf32>
    %53 = tpu.matmul %7, %52, %cst_27 {dimension_numbers = #tpu.dot_dimension_numbers<[1], [0], [0], [1], [0, 0, 1, 1], [], []>} : vector<128x32xbf16>, vector<32x64xbf16>, vector<128x64xf32> -> vector<128x64xf32>
    %54 = arith.addf %50, %53 : vector<128x64xf32>
    %55 = vector.extract_strided_slice %6 {offsets = [2, 0], sizes = [1, 64], strides = [1, 1]} : vector<3x64xf32> to vector<1x64xf32>
    %56 = vector.broadcast %55 : vector<1x64xf32> to vector<128x64xf32>
    %57 = arith.addf %54, %56 : vector<128x64xf32>
    %58 = vector.extract_strided_slice %57 {offsets = [0, 0], sizes = [128, 32], strides = [1, 1]} : vector<128x64xf32> to vector<128x32xf32>
    %59 = arith.mulf %3, %58 : vector<128x32xf32>
    %60 = vector.extract_strided_slice %57 {offsets = [0, 32], sizes = [128, 32], strides = [1, 1]} : vector<128x64xf32> to vector<128x32xf32>
    %61 = arith.mulf %1, %60 : vector<128x32xf32>
    %62 = arith.addf %59, %61 : vector<128x32xf32>
    %63 = arith.addf %62, %0 : vector<128x32xf32>
    %c1_28 = arith.constant 1 : index
    %c0_29 = arith.constant 0 : index
    %c0_30 = arith.constant 0 : index
    %64 = vector.load %arg5[%c1_28, %c0_29, %c0_30] : memref<2x3x64xf32, #tpu.memory_space<vmem>>, vector<1x3x64xf32>
    %65 = vector.shape_cast %64 : vector<1x3x64xf32> to vector<3x64xf32>
    %66 = arith.truncf %63 : vector<128x32xf32> to vector<128x32xbf16>
    %c1_31 = arith.constant 1 : index
    %c0_32 = arith.constant 0 : index
    %c0_33 = arith.constant 0 : index
    %c0_34 = arith.constant 0 : index
    %67 = vector.load %arg4[%c1_31, %c0_32, %c0_33, %c0_34] : memref<2x3x32x64xbf16, #tpu.memory_space<vmem>>, vector<1x1x32x64xbf16>
    %68 = vector.shape_cast %67 : vector<1x1x32x64xbf16> to vector<32x64xbf16>
    %cst_35 = arith.constant dense<0.000000e+00> : vector<128x64xf32>
    %69 = tpu.matmul %66, %68, %cst_35 {dimension_numbers = #tpu.dot_dimension_numbers<[1], [0], [0], [1], [0, 0, 1, 1], [], []>} : vector<128x32xbf16>, vector<32x64xbf16>, vector<128x64xf32> -> vector<128x64xf32>
    %70 = vector.extract_strided_slice %65 {offsets = [0, 0], sizes = [1, 64], strides = [1, 1]} : vector<3x64xf32> to vector<1x64xf32>
    %71 = vector.broadcast %70 : vector<1x64xf32> to vector<128x64xf32>
    %72 = arith.addf %69, %71 : vector<128x64xf32>
    %cst_36 = arith.constant 0.000000e+00 : f32
    %73 = vector.broadcast %cst_36 : f32 to vector<128x64xf32>
    %74 = arith.maximumf %72, %73 : vector<128x64xf32>
    %75 = vector.extract_strided_slice %74 {offsets = [0, 0], sizes = [128, 32], strides = [1, 1]} : vector<128x64xf32> to vector<128x32xf32>
    %76 = arith.mulf %3, %75 : vector<128x32xf32>
    %77 = vector.extract_strided_slice %74 {offsets = [0, 32], sizes = [128, 32], strides = [1, 1]} : vector<128x64xf32> to vector<128x32xf32>
    %78 = arith.mulf %1, %77 : vector<128x32xf32>
    %79 = arith.addf %76, %78 : vector<128x32xf32>
    %80 = arith.truncf %79 : vector<128x32xf32> to vector<128x32xbf16>
    %cst_37 = arith.constant dense<0.000000e+00> : vector<128x32xf32>
    %81 = tpu.matmul %4, %80, %cst_37 {dimension_numbers = #tpu.dot_dimension_numbers<[1], [0], [0], [1], [0, 0, 1, 1], [], []>} : vector<128x128xbf16>, vector<128x32xbf16>, vector<128x32xf32> -> vector<128x32xf32>
    %cst_38 = arith.constant dense<0.000000e+00> : vector<128xf32>
    %82 = vector.multi_reduction <add>, %81, %cst_38 [1] : vector<128x32xf32> to vector<128xf32>
    %83 = vector.shape_cast %82 : vector<128xf32> to vector<128x1xf32>
    %cst_39 = arith.constant 3.200000e+01 : f32
    %84 = vector.broadcast %cst_39 : f32 to vector<128x1xf32>
    %85 = arith.divf %83, %84 : vector<128x1xf32>
    %86 = arith.mulf %81, %81 : vector<128x32xf32>
    %cst_40 = arith.constant dense<0.000000e+00> : vector<128xf32>
    %87 = vector.multi_reduction <add>, %86, %cst_40 [1] : vector<128x32xf32> to vector<128xf32>
    %88 = vector.shape_cast %87 : vector<128xf32> to vector<128x1xf32>
    %cst_41 = arith.constant 3.200000e+01 : f32
    %89 = vector.broadcast %cst_41 : f32 to vector<128x1xf32>
    %90 = arith.divf %88, %89 : vector<128x1xf32>
    %91 = vector.broadcast %85 : vector<128x1xf32> to vector<128x32xf32>
    %92 = arith.subf %81, %91 : vector<128x32xf32>
    %93 = arith.mulf %85, %85 : vector<128x1xf32>
    %94 = arith.subf %90, %93 : vector<128x1xf32>
    %cst_42 = arith.constant 9.99999974E-6 : f32
    %95 = vector.broadcast %cst_42 : f32 to vector<128x1xf32>
    %96 = arith.addf %94, %95 : vector<128x1xf32>
    %97 = math.rsqrt %96 : vector<128x1xf32>
    %98 = vector.broadcast %97 : vector<128x1xf32> to vector<128x32xf32>
    %99 = arith.mulf %92, %98 : vector<128x32xf32>
    %100 = vector.extract_strided_slice %65 {offsets = [1, 0], sizes = [1, 32], strides = [1, 1]} : vector<3x64xf32> to vector<1x32xf32>
    %101 = vector.broadcast %100 : vector<1x32xf32> to vector<128x32xf32>
    %102 = arith.mulf %99, %101 : vector<128x32xf32>
    %103 = vector.extract_strided_slice %65 {offsets = [1, 32], sizes = [1, 32], strides = [1, 1]} : vector<3x64xf32> to vector<1x32xf32>
    %104 = vector.broadcast %103 : vector<1x32xf32> to vector<128x32xf32>
    %105 = arith.addf %102, %104 : vector<128x32xf32>
    %106 = arith.truncf %105 : vector<128x32xf32> to vector<128x32xbf16>
    %c1_43 = arith.constant 1 : index
    %c1_44 = arith.constant 1 : index
    %c0_45 = arith.constant 0 : index
    %c0_46 = arith.constant 0 : index
    %107 = vector.load %arg4[%c1_43, %c1_44, %c0_45, %c0_46] : memref<2x3x32x64xbf16, #tpu.memory_space<vmem>>, vector<1x1x32x64xbf16>
    %108 = vector.shape_cast %107 : vector<1x1x32x64xbf16> to vector<32x64xbf16>
    %cst_47 = arith.constant dense<0.000000e+00> : vector<128x64xf32>
    %109 = tpu.matmul %106, %108, %cst_47 {dimension_numbers = #tpu.dot_dimension_numbers<[1], [0], [0], [1], [0, 0, 1, 1], [], []>} : vector<128x32xbf16>, vector<32x64xbf16>, vector<128x64xf32> -> vector<128x64xf32>
    %c1_48 = arith.constant 1 : index
    %c2_49 = arith.constant 2 : index
    %c0_50 = arith.constant 0 : index
    %c0_51 = arith.constant 0 : index
    %110 = vector.load %arg4[%c1_48, %c2_49, %c0_50, %c0_51] : memref<2x3x32x64xbf16, #tpu.memory_space<vmem>>, vector<1x1x32x64xbf16>
    %111 = vector.shape_cast %110 : vector<1x1x32x64xbf16> to vector<32x64xbf16>
    %cst_52 = arith.constant dense<0.000000e+00> : vector<128x64xf32>
    %112 = tpu.matmul %66, %111, %cst_52 {dimension_numbers = #tpu.dot_dimension_numbers<[1], [0], [0], [1], [0, 0, 1, 1], [], []>} : vector<128x32xbf16>, vector<32x64xbf16>, vector<128x64xf32> -> vector<128x64xf32>
    %113 = arith.addf %109, %112 : vector<128x64xf32>
    %114 = vector.extract_strided_slice %65 {offsets = [2, 0], sizes = [1, 64], strides = [1, 1]} : vector<3x64xf32> to vector<1x64xf32>
    %115 = vector.broadcast %114 : vector<1x64xf32> to vector<128x64xf32>
    %116 = arith.addf %113, %115 : vector<128x64xf32>
    %117 = vector.extract_strided_slice %116 {offsets = [0, 0], sizes = [128, 32], strides = [1, 1]} : vector<128x64xf32> to vector<128x32xf32>
    %118 = arith.mulf %3, %117 : vector<128x32xf32>
    %119 = vector.extract_strided_slice %116 {offsets = [0, 32], sizes = [128, 32], strides = [1, 1]} : vector<128x64xf32> to vector<128x32xf32>
    %120 = arith.mulf %1, %119 : vector<128x32xf32>
    %121 = arith.addf %118, %120 : vector<128x32xf32>
    %122 = arith.addf %121, %63 : vector<128x32xf32>
    %c0_53 = arith.constant 0 : index
    %c0_54 = arith.constant 0 : index
    %123 = vector.load %arg6[%c0_53, %c0_54] : memref<8x128xf32, #tpu.memory_space<vmem>>, vector<8x128xf32>
    %cst_55 = arith.constant dense<0.000000e+00> : vector<8x32xf32>
    %124 = tpu.matmul %123, %122, %cst_55 {dimension_numbers = #tpu.dot_dimension_numbers<[1], [0], [0], [1], [0, 0, 1, 1], [], []>} : vector<8x128xf32>, vector<128x32xf32>, vector<8x32xf32> -> vector<8x32xf32>
    %c0_56 = arith.constant 0 : index
    %c0_57 = arith.constant 0 : index
    %125 = vector.load %arg7[%c0_56, %c0_57] : memref<33x128xf32, #tpu.memory_space<vmem>>, vector<33x128xf32>
    %126 = vector.extract_strided_slice %125 {offsets = [0, 0], sizes = [32, 128], strides = [1, 1]} : vector<33x128xf32> to vector<32x128xf32>
    %cst_58 = arith.constant dense<0.000000e+00> : vector<8x128xf32>
    %127 = tpu.matmul %124, %126, %cst_58 {dimension_numbers = #tpu.dot_dimension_numbers<[1], [0], [0], [1], [0, 0, 1, 1], [], []>} : vector<8x32xf32>, vector<32x128xf32>, vector<8x128xf32> -> vector<8x128xf32>
    %128 = vector.extract_strided_slice %125 {offsets = [32, 0], sizes = [1, 128], strides = [1, 1]} : vector<33x128xf32> to vector<1x128xf32>
    %129 = vector.broadcast %128 : vector<1x128xf32> to vector<8x128xf32>
    %130 = arith.addf %127, %129 : vector<8x128xf32>
    %c0_59 = arith.constant 0 : index
    %c0_60 = arith.constant 0 : index
    %131 = vector.load %arg8[%c0_59, %c0_60] : memref<8x128xf32, #tpu.memory_space<vmem>>, vector<8x128xf32>
    tpu.vector_store %arg8[%c0_59, %c0_60], %130 {strides = array<i32>} : memref<8x128xf32, #tpu.memory_space<vmem>>, vector<8x128xf32>,
    return
  }
  func.func @transform_0(%arg0: i32) -> (i32, i32) {
    %c0_i32 = arith.constant 0 : i32
    %c0_i32_0 = arith.constant 0 : i32
    %c0_i32_1 = arith.constant 0 : i32
    return %c0_i32, %c0_i32_0 : i32, i32
  }
  func.func @transform_1(%arg0: i32) -> (i32, i32) {
    %c0_i32 = arith.constant 0 : i32
    %c0_i32_0 = arith.constant 0 : i32
    %c0_i32_1 = arith.constant 0 : i32
    return %c0_i32, %c0_i32_0 : i32, i32
  }
  func.func @transform_2(%arg0: i32) -> (i32, i32) {
    %c0_i32 = arith.constant 0 : i32
    %c0_i32_0 = arith.constant 0 : i32
    %c0_i32_1 = arith.constant 0 : i32
    return %c0_i32, %c0_i32_0 : i32, i32
  }
  func.func @transform_3(%arg0: i32) -> (i32, i32, i32, i32) {
    %c0_i32 = arith.constant 0 : i32
    %c0_i32_0 = arith.constant 0 : i32
    %c0_i32_1 = arith.constant 0 : i32
    %c0_i32_2 = arith.constant 0 : i32
    %c0_i32_3 = arith.constant 0 : i32
    return %c0_i32, %c0_i32_0, %c0_i32_1, %c0_i32_2 : i32, i32, i32, i32
  }
  func.func @transform_4(%arg0: i32) -> (i32, i32, i32) {
    %c0_i32 = arith.constant 0 : i32
    %c0_i32_0 = arith.constant 0 : i32
    %c0_i32_1 = arith.constant 0 : i32
    %c0_i32_2 = arith.constant 0 : i32
    return %c0_i32, %c0_i32_0, %c0_i32_1 : i32, i32, i32
  }
  func.func @transform_5(%arg0: i32) -> (i32, i32) {
    %c0_i32 = arith.constant 0 : i32
    %c0_i32_0 = arith.constant 0 : i32
    %c0_i32_1 = arith.constant 0 : i32
    return %c0_i32, %c0_i32_0 : i32, i32
  }
  func.func @transform_6(%arg0: i32) -> (i32, i32) {
    %c0_i32 = arith.constant 0 : i32
    %c0_i32_0 = arith.constant 0 : i32
    %c0_i32_1 = arith.constant 0 : i32
    return %c0_i32, %c0_i32_0 : i32, i32
  }
  func.func @transform_7(%arg0: i32) -> (i32, i32) {
    %c0_i32 = arith.constant 0 : i32
    %c0_i32_0 = arith.constant 0 : i32
    %c0_i32_1 = arith.constant 0 : i32
    return %c0_i32, %c0_i32_0 : i32, i32
  }
}

</mosaic_0001>

<bundles_post_ra>
// kernel: tpu_custom_call.1
= control target key start
LH: loop header
LB: loop body
LE: loop exit
PB: predicated region body
PF: predicated region fallthrough
CT: control target
= control target key end

     0   :  { %s4389_s0 = inlined_call_operand.vmem [shape: f32[128,32], index: 0, kind: input, shape index: {}]   ;;  %s4390_s1 = inlined_call_operand.vmem [shape: f32[128,32], index: 1, kind: input, shape index: {}]   ;;  %s4391_s2 = inlined_call_operand.vmem [shape: bf16[128,128], index: 2, kind: input, shape index: {}]   ;;  %s4392_s3 = inlined_call_operand.vmem [shape: bf16[2,3,32,64], index: 3, kind: input, shape index: {}]   ;;  %s4393_s4 = inlined_call_operand.vmem [shape: f32[2,3,64], index: 4, kind: input, shape index: {}]   ;;  %s4394_s5 = inlined_call_operand.vmem [shape: f32[8,128], index: 5, kind: input, shape index: {}]   ;;  %s4395_s6 = inlined_call_operand.vmem [shape: f32[33,128], index: 6, kind: input, shape index: {}]   ;;  %s4396_s7 = inlined_call_operand.hbm [shape: f32[8,128], index: 7, kind: output, shape index: {}]  }
   0x1   :  { %v2404_v0 = vld [vmem:[%s4392_s3 + $0x8] sm:$0xff]  ;;  %v2403_v1 = vld [vmem:[%s4392_s3] sm:$0xff] }
   0x2   :  { %149 = vmatpush.bf16.msra.mxu0 %v2404_v0  ;;  %v28_v2 = vld [vmem:[%s4389_s0] sm:$0xff]  ;;  %v29_v3 = vld [vmem:[%s4389_s0 + $0x8] sm:$0xff] }
   0x3   :  { %12 = vsyncpa [#allocation3], 0  ;;  %v2624_v4 = vpack.c.bf16 %v29_v3, %v28_v2  ;;  %vm118_vm0 = vcmask 261120   ;;  %v30_v5 = vld [vmem:[%s4389_s0 + $0x10] sm:$0xff]  ;;  %v31_v6 = vld [vmem:[%s4389_s0 + $0x18] sm:$0xff]  ;;  %s2569_s16 = smov 96  }
   0x4   :  { %v2634_v7 = vpack.c.bf16 %v31_v6, %v30_v5  ;;  %v32_v8 = vld [vmem:[%s4389_s0 + $0x20] sm:$0xff]  ;;  %v33_v9 = vld [vmem:[%s4389_s0 + $0x28] sm:$0xff]  ;;  %v34_v11 = vld [vmem:[%s4389_s0 + $0x30] sm:$0xff]  ;;  %s2236_s8 = sshll.u32 %s4396_s7, 4  ;;  %s2237_s8 = int_to_ptr.hbm [resolvable:$true] %s2236_s8 }
   0x5   :  { %v2644_v10 = vpack.c.bf16 %v33_v9, %v32_v8  ;;  %v35_v12 = vld [vmem:[%s4389_s0 + $0x38] sm:$0xff]  ;;  %v36_v14 = vld [vmem:[%s4389_s0 + $0x40] sm:$0xff]  ;;  %v37_v15 = vld [vmem:[%s4389_s0 + $0x48] sm:$0xff] }
   0x6   :  { %150 = vmatpush.bf16.msra.mxu0 %v2403_v1  ;;  %v2654_v13 = vpack.c.bf16 %v35_v12, %v34_v11  ;;  %v2664_v16 = vpack.c.bf16 %v37_v15, %v36_v14  ;;  %v38_v17 = vld [vmem:[%s4389_s0 + $0x50] sm:$0xff]  ;;  %v39_v18 = vld [vmem:[%s4389_s0 + $0x58] sm:$0xff]  ;;  %v40_v20 = vld [vmem:[%s4389_s0 + $0x60] sm:$0xff] }
   0x7   :  { %v2674_v19 = vpack.c.bf16 %v39_v18, %v38_v17  ;;  %v41_v21 = vld [vmem:[%s4389_s0 + $0x68] sm:$0xff]  ;;  %v42_v23 = vld [vmem:[%s4389_s0 + $0x70] sm:$0xff]  ;;  %v43_v24 = vld [vmem:[%s4389_s0 + $0x78] sm:$0xff] }
   0x8   :  { %v2684_v22 = vpack.c.bf16 %v41_v21, %v40_v20  ;;  %v2694_v25 = vpack.c.bf16 %v43_v24, %v42_v23  ;;  %v2703_v36 = vld [vmem:[%s4393_s4] sm:$0x7]  ;;  %v54_v18 = vld [vmem:[%s4390_s1 + $0x50] sm:$0xff]  ;;  %v55_v20 = vld [vmem:[%s4390_s1 + $0x58] sm:$0xff] }
   0x9   :  { %2253 = vmatmul.msk.bf16.vlgmr.msra.gmra.mxu0 %vm118_vm0, %v2624_v4  ;;  %v105_v37 = vperm.slane %v2703_v36, 0  ;;  %v2783_v21 = vsub.f32 1.0, %v54_v18  ;;  %v2785_v23 = vsub.f32 1.0, %v55_v20 }
   0xb   :  { %4426 = vst [vmem:[#allocation5_spill] sm:$0xff] %v2783_v21 }
  0x19   :  { %2254 = vmatmul.msk.bf16.gmra.mxu0 %vm118_vm0, %v2634_v7 }
  0x29   :  { %2255 = vmatmul.msk.bf16.gmra.mxu0 %vm118_vm0, %v2644_v10 }
  0x39   :  { %2256 = vmatmul.msk.bf16.gmra.mxu0 %vm118_vm0, %v2654_v13 }
  0x49   :  { %2257 = vmatmul.msk.bf16.gmra.mxu0 %vm118_vm0, %v2664_v16 }
  0x59   :  { %2258 = vmatmul.msk.bf16.gmra.mxu0 %vm118_vm0, %v2674_v19 }
  0x69   :  { %2259 = vmatmul.msk.bf16.gmra.mxu0 %vm118_vm0, %v2684_v22 }
  0x79   :  { %2260 = vmatmul.msk.bf16.gmra.mxu0 %vm118_vm0, %v2694_v25 }
  0x86   :  { %v152_v26 = vpop.f32.mrf.mxu0 }
  0x87   :  { %v2727_v55 = vadd.f32 %v152_v26, %v105_v37 }
  0x89   :  { %v192_v60 = vmax.f32 %v2727_v55, 0.0  ;;  %v2397_v55 = vld [vmem:[%s4391_s2 + $0x10] sm:$0xff] }
  0x8e   :  { %v2698_v27 = vpop.f32.mrf.mxu0 }
  0x8f   :  { %v2771_v14 = vadd.f32 %v2698_v27, %v105_v37 }
  0x91   :  { %v193_v15 = vmax.f32 %v2771_v14, 0.0  ;;  %v2399_v14 = vld [vmem:[%s4391_s2 + $0x20] sm:$0xff] }
  0x96   :  { %v157_v28 = vpop.f32.mrf.mxu0 }
  0x97   :  { %v2764_v11 = vadd.f32 %v157_v28, %v105_v37 }
  0x99   :  { %v194_v12 = vmax.f32 %v2764_v11, 0.0 }
  0x9e   :  { %v159_v29 = vpop.f32.mrf.mxu0 }
  0x9f   :  { %v2748_v2 = vadd.f32 %v159_v29, %v105_v37 }
  0xa1   :  { %v195_v5 = vmax.f32 %v2748_v2, 0.0 }
  0xa6   :  { %v162_v30 = vpop.f32.mrf.mxu0 }
  0xa7   :  { %v2741_v61 = vadd.f32 %v162_v30, %v105_v37 }
  0xa9   :  { %v196_v0 = vmax.f32 %v2741_v61, 0.0 }
  0xae   :  { %v164_v31 = vpop.f32.mrf.mxu0 }
  0xaf   :  { %v2718_v49 = vadd.f32 %v164_v31, %v105_v37 }
  0xb1   :  { %v197_v52 = vmax.f32 %v2718_v49, 0.0  ;;  %v44_v49 = vld [vmem:[%s4390_s1] sm:$0xff] }
  0xb2   :  { %v2881_v11 = vsub.f32 1.0, %v44_v49 }
  0xb6   :  { %v167_v32 = vpop.f32.mrf.mxu0 }
  0xb7   :  { %v2708_v44 = vadd.f32 %v167_v32, %v105_v37 }
  0xb9   :  { %v198_v47 = vmax.f32 %v2708_v44, 0.0 }
  0xbe   :  { %v169_v33 = vpop.f32.mrf.mxu0 }
  0xbf   :  { %v2758_v8 = vadd.f32 %v169_v33, %v105_v37 }
  0xc1   :  { %v199_v9 = vmax.f32 %v2758_v8, 0.0 }
  0xc6   :  { %v172_v34 = vpop.f32.mrf.mxu0 }
  0xc7   :  { %v2750_v3 = vadd.f32 %v172_v34, %v105_v37  ;;  %v56_v34 = vld [vmem:[%s4390_s1 + $0x60] sm:$0xff] }
  0xc9   :  { %v200_v6 = vmax.f32 %v2750_v3, 0.0 }
  0xce   :  { %v174_v35 = vpop.f32.mrf.mxu0 }
  0xcf   :  { %v2725_v54 = vadd.f32 %v174_v35, %v105_v37  ;;  %v57_v35 = vld [vmem:[%s4390_s1 + $0x68] sm:$0xff] }
  0xd1   :  { %v201_v58 = vmax.f32 %v2725_v54, 0.0  ;;  %v49_v54 = vld [vmem:[%s4390_s1 + $0x28] sm:$0xff] }
  0xd6   :  { %v177_v38 = vpop.f32.mrf.mxu0 }
  0xd7   :  { %v178_v39 = vadd.f32 %v177_v38, %v105_v37  ;;  %v2797_v38 = vsub.f32 1.0, %v57_v35 }
  0xd9   :  { %v202_v40 = vmax.f32 %v178_v39, 0.0 }
  0xdb   :  { %260 = vrot.lane.b32.xlu2 %v202_v40, %s2569_s16  ;;  %v218_v27 = vmul.f32 %v202_v40, %v2783_v21 }
  0xde   :  { %v179_v41 = vpop.f32.mrf.mxu0 }
  0xdf   :  { %v180_v42 = vadd.f32 %v179_v41, %v105_v37 }
  0xe1   :  { %v203_v43 = vmax.f32 %v180_v42, 0.0 }
  0xe3   :  { %262 = vrot.lane.b32.xlu2 %v203_v43, %s2569_s16  ;;  %v219_v28 = vmul.f32 %v203_v43, %v2785_v23 }
  0xe6   :  { %v182_v45 = vpop.f32.mrf.mxu0 }
  0xe7   :  { %v2710_v46 = vadd.f32 %v182_v45, %v105_v37 }
  0xe9   :  { %v204_v48 = vmax.f32 %v2710_v46, 0.0 }
  0xeb   :  { %264 = vrot.lane.b32.xlu1 %v204_v48, %s2569_s16  ;;  %252 = vrot.lane.b32.xlu2 %v198_v47, %s2569_s16 }
  0xee   :  { %v184_v50 = vpop.f32.mrf.mxu0 }
  0xef   :  { %v185_v51 = vadd.f32 %v184_v50, %v105_v37 }
  0xf1   :  { %v205_v53 = vmax.f32 %v185_v51, 0.0 }
  0xf3   :  { %266 = vrot.lane.b32.xlu1 %v205_v53, %s2569_s16  ;;  %250 = vrot.lane.b32.xlu2 %v197_v52, %s2569_s16  ;;  %v221_v42 = vmul.f32 %v205_v53, %v2797_v38 }
  0xf6   :  { %v187_v56 = vpop.f32.mrf.mxu0 }
  0xf7   :  { %v2729_v57 = vadd.f32 %v187_v56, %v105_v37  ;;  %v58_v56 = vld [vmem:[%s4390_s1 + $0x70] sm:$0xff] }
  0xf9   :  { %v206_v59 = vmax.f32 %v2729_v57, 0.0  ;;  %v59_v57 = vld [vmem:[%s4390_s1 + $0x78] sm:$0xff] }
  0xfb   :  { %268 = vrot.lane.b32.xlu0 %v206_v59, %s2569_s16  ;;  %258 = vrot.lane.b32.xlu1 %v201_v58, %s2569_s16 }
  0xfc   :  { %240 = vrot.lane.b32.xlu2 %v192_v60, %s2569_s16 }
  0xfe   :  { %v189_v62 = vpop.f32.mrf.mxu0 }
  0xff   :  { %v190_v63 = vadd.f32 %v189_v62, %v105_v37  ;;  %v2795_v37 = vsub.f32 1.0, %v56_v34  ;;  %v2807_v62 = vsub.f32 1.0, %v58_v56 }
 0x101   :  { %v207_v1 = vmax.f32 %v190_v63, 0.0  ;;  %v220_v41 = vmul.f32 %v204_v48, %v2795_v37  ;;  %4427 = vst [vmem:[#allocation6_spill] sm:$0xff] %v2807_v62  ;;  %v2809_v63 = vsub.f32 1.0, %v59_v57 }
 0x103   :  { %270 = vrot.lane.b32.xlu0 %v207_v1, %s2569_s16  ;;  %248 = vrot.lane.b32.xlu1 %v196_v0, %s2569_s16  ;;  %4428 = vst [vmem:[#allocation7_spill] sm:$0xff] %v2809_v63 }
 0x10b   :  { %256 = vrot.lane.b32.xlu0 %v200_v6, %s2569_s16  ;;  %246 = vrot.lane.b32.xlu1 %v195_v5, %s2569_s16 }
 0x113   :  { %254 = vrot.lane.b32.xlu0 %v199_v9, %s2569_s16 }
 0x11b   :  { %244 = vrot.lane.b32.xlu0 %v194_v12, %s2569_s16 }
 0x123   :  { %242 = vrot.lane.b32.xlu0 %v193_v15, %s2569_s16 }
 0x135   :  { %v261_v17 = vpop.permute.xlu2 %260 }
 0x136   :  { %v298_v24 = vmul.f32 %v261_v17, %v54_v18  ;;  %v222_v17 = vmul.f32 %v206_v59, %v2807_v62  ;;  %v223_v18 = vmul.f32 %v207_v1, %v2809_v63 }
 0x138   :  { %v314_v30 = vadd.f32 %v298_v24, %v218_v27  ;;  %v52_v24 = vld [vmem:[%s4390_s1 + $0x40] sm:$0xff] }
 0x13d   :  { %v263_v26 = vpop.permute.xlu2 %262 }
 0x13e   :  { %v299_v29 = vmul.f32 %v263_v26, %v55_v20  ;;  %v53_v26 = vld [vmem:[%s4390_s1 + $0x48] sm:$0xff] }
 0x140   :  { %v315_v31 = vadd.f32 %v299_v29, %v219_v28  ;;  %v2819_v29 = vsub.f32 1.0, %v52_v24 }
 0x142   :  { %v325_v32 = vpack.c.bf16 %v315_v31, %v314_v30  ;;  %v2821_v30 = vsub.f32 1.0, %v53_v26 }
 0x15d   :  { %v265_v33 = vpop.permute.xlu1 %264 }
 0x15e   :  { %v300_v39 = vmul.f32 %v265_v33, %v56_v34  ;;  %v253_v33 = vpop.permute.xlu2 %252  ;;  %v216_v34 = vmul.f32 %v200_v6, %v2819_v29  ;;  %v48_v6 = vld [vmem:[%s4390_s1 + $0x20] sm:$0xff] }
 0x160   :  { %v316_v45 = vadd.f32 %v300_v39, %v220_v41  ;;  %v51_v41 = vld [vmem:[%s4390_s1 + $0x38] sm:$0xff] }
 0x165   :  { %v267_v40 = vpop.permute.xlu1 %266 }
 0x166   :  { %v301_v43 = vmul.f32 %v267_v40, %v57_v35  ;;  %v217_v35 = vmul.f32 %v201_v58, %v2821_v30  ;;  %v50_v40 = vld [vmem:[%s4390_s1 + $0x30] sm:$0xff] }
 0x167   :  { %v2839_v58 = vsub.f32 1.0, %v50_v40 }
 0x168   :  { %v317_v46 = vadd.f32 %v301_v43, %v221_v42 }
 0x16a   :  { %v326_v50 = vpack.c.bf16 %v317_v46, %v316_v45  ;;  %v2841_v46 = vsub.f32 1.0, %v51_v41 }
 0x16d   :  { %v269_v51 = vpop.permute.xlu0 %268  ;;  %v259_v3 = vpop.permute.xlu1 %258 }
 0x16e   :  { %v302_v48 = vmul.f32 %v269_v51, %v58_v56  ;;  %v297_v59 = vmul.f32 %v259_v3, %v53_v26  ;;  %v2843_v56 = vsub.f32 1.0, %v48_v6 }
 0x170   :  { %v318_v27 = vadd.f32 %v302_v48, %v222_v17  ;;  %v313_v43 = vadd.f32 %v297_v59, %v217_v35  ;;  %v2845_v48 = vsub.f32 1.0, %v49_v54  ;;  %v214_v17 = vmul.f32 %v198_v47, %v2839_v58 }
 0x171   :  { %v212_v26 = vmul.f32 %v196_v0, %v2843_v56 }
 0x172   :  { %v213_v8 = vmul.f32 %v197_v52, %v2845_v48  ;;  %v45_v52 = vld [vmem:[%s4390_s1 + $0x8] sm:$0xff] }
 0x175   :  { %v271_v53 = vpop.permute.xlu0 %270  ;;  %v249_v42 = vpop.permute.xlu1 %248 }
 0x176   :  { %v303_v20 = vmul.f32 %v271_v53, %v59_v57  ;;  %v294_v57 = vmul.f32 %v253_v33, %v50_v40  ;;  %v46_v53 = vld [vmem:[%s4390_s1 + $0x10] sm:$0xff] }
 0x177   :  { %v2862_v44 = vsub.f32 1.0, %v46_v53 }
 0x178   :  { %v319_v28 = vadd.f32 %v303_v20, %v223_v18  ;;  %v215_v18 = vmul.f32 %v199_v9, %v2841_v46  ;;  %v292_v20 = vmul.f32 %v249_v42, %v48_v6  ;;  %v208_v6 = vmul.f32 %v192_v60, %v2881_v11  ;;  %v2398_v60 = vld [vmem:[%s4391_s2 + $0x18] sm:$0xff] }
 0x179   :  { %v210_v0 = vmul.f32 %v194_v12, %v2862_v44  ;;  %v2883_v12 = vsub.f32 1.0, %v45_v52 }
 0x17a   :  { %v327_v31 = vpack.c.bf16 %v319_v28, %v318_v27  ;;  %v310_v27 = vadd.f32 %v294_v57, %v214_v17  ;;  %v308_v9 = vadd.f32 %v292_v20, %v212_v26  ;;  %v2396_v17 = vld [vmem:[%s4391_s2 + $0x8] sm:$0xff]  ;;  %v2402_v20 = vld [vmem:[%s4391_s2 + $0x38] sm:$0xff] }
 0x17c   :  { %376 = vmatpush.bf16.msra.mxu1 %v327_v31 }
 0x17d   :  { %v257_v1 = vpop.permute.xlu0 %256  ;;  %v247_v47 = vpop.permute.xlu1 %246 }
 0x17e   :  { %v296_v39 = vmul.f32 %v257_v1, %v52_v24 }
 0x180   :  { %v312_v45 = vadd.f32 %v296_v39, %v216_v34  ;;  %377 = vmatpush.bf16.msra.mxu1 %v326_v50  ;;  %v251_v50 = vpop.permute.xlu2 %250 }
 0x181   :  { %v293_v28 = vmul.f32 %v251_v50, %v49_v54  ;;  %v209_v54 = vmul.f32 %v193_v15, %v2883_v12  ;;  %v2400_v15 = vld [vmem:[%s4391_s2 + $0x28] sm:$0xff] }
 0x182   :  { %v324_v51 = vpack.c.bf16 %v313_v43, %v312_v45 }
 0x183   :  { %v309_v1 = vadd.f32 %v293_v28, %v213_v8 }
 0x184   :  { %378 = vmatpush.bf16.msra.mxu1 %v325_v32  ;;  %v47_v32 = vld [vmem:[%s4390_s1 + $0x18] sm:$0xff] }
 0x185   :  { %v255_v3 = vpop.permute.xlu0 %254  ;;  %v2864_v33 = vsub.f32 1.0, %v47_v32  ;;  %v291_v34 = vmul.f32 %v247_v47, %v47_v32  ;;  %v322_v40 = vpack.c.bf16 %v309_v1, %v308_v9 }
 0x186   :  { %v295_v24 = vmul.f32 %v255_v3, %v51_v41 }
 0x187   :  { %v211_v35 = vmul.f32 %v195_v5, %v2864_v33 }
 0x188   :  { %v311_v31 = vadd.f32 %v295_v24, %v215_v18  ;;  %379 = vmatpush.bf16.msra.mxu1 %v324_v51  ;;  %v241_v43 = vpop.permute.xlu2 %240  ;;  %v2401_v18 = vld [vmem:[%s4391_s2 + $0x30] sm:$0xff] }
 0x189   :  { %v307_v41 = vadd.f32 %v291_v34, %v211_v35  ;;  %v288_v5 = vmul.f32 %v241_v43, %v44_v49 }
 0x18a   :  { %v323_v59 = vpack.c.bf16 %v311_v31, %v310_v27 }
 0x18b   :  { %v304_v57 = vadd.f32 %v288_v5, %v208_v6  ;;  %v2957_v5 = vperm.slane %v2703_v36, 1 }
 0x18c   :  { %380 = vmatpush.bf16.msra.mxu1 %v323_v59 }
 0x18d   :  { %v245_v61 = vpop.permute.xlu0 %244 }
 0x18e   :  { %v290_v39 = vmul.f32 %v245_v61, %v46_v53  ;;  %v2395_v53 = vld [vmem:[%s4391_s2] sm:$0xff] }
 0x190   :  { %v306_v42 = vadd.f32 %v290_v39, %v210_v0  ;;  %381 = vmatpush.bf16.msra.mxu1 %v322_v40 }
 0x192   :  { %v321_v2 = vpack.c.bf16 %v307_v41, %v306_v42 }
 0x194   :  { %382 = vmatpush.bf16.msra.mxu1 %v321_v2 }
 0x195   :  { %v243_v45 = vpop.permute.xlu0 %242 }
 0x196   :  { %v289_v51 = vmul.f32 %v243_v45, %v45_v52 }
 0x198   :  { %v305_v50 = vadd.f32 %v289_v51, %v209_v54 }
 0x19a   :  { %v320_v3 = vpack.c.bf16 %v305_v50, %v304_v57 }
 0x19c   :  { %383 = vmatpush.bf16.msra.mxu1 %v320_v3 }
 0x19f   :  { %384 = vmatmul.bf16.vlgmr.msra.gmra.mxu1 %v2395_v53 }
 0x1af   :  { %389 = vmatmul.bf16.gmra.mxu1 %v2396_v17 }
 0x1bf   :  { %394 = vmatmul.bf16.gmra.mxu1 %v2397_v55 }
 0x1cf   :  { %399 = vmatmul.bf16.gmra.mxu1 %v2398_v60 }
 0x1df   :  { %404 = vmatmul.bf16.gmra.mxu1 %v2399_v14 }
 0x1ef   :  { %409 = vmatmul.bf16.gmra.mxu1 %v2400_v15 }
 0x1ff   :  { %414 = vmatmul.bf16.gmra.mxu1 %v2401_v18 }
 0x20f   :  { %419 = vmatmul.bf16.gmra.mxu1 %v2402_v20 }
 0x21c   :  { %v2915_v24 = vpop.f32.mrf.mxu1 }
 0x21d   :  { %v425_v32 = vsel %vm118_vm0, %v2915_v24, 0.0  ;;  %v496_v26 = vmul.f32 %v2915_v24, %v2915_v24 }
 0x21e   :  { %426 = vadd.xlane.f32.xlu1 %v425_v32 }
 0x21f   :  { %v512_v27 = vsel %vm118_vm0, %v496_v26, 0.0 }
 0x220   :  { %513 = vadd.xlane.f32.xlu0 %v512_v27 }
 0x224   :  { %v2922_v28 = vpop.f32.mrf.mxu1 }
 0x225   :  { %v428_v31 = vsel %vm118_vm0, %v2922_v28, 0.0  ;;  %v497_v47 = vmul.f32 %v2922_v28, %v2922_v28 }
 0x226   :  { %429 = vadd.xlane.f32.xlu2 %v428_v31 }
 0x227   :  { %v515_v9 = vsel %vm118_vm0, %v497_v47, 0.0 }
 0x22c   :  { %v2928_v8 = vpop.f32.mrf.mxu1 }
 0x22d   :  { %v431_v59 = vsel %vm118_vm0, %v2928_v8, 0.0  ;;  %v498_v1 = vmul.f32 %v2928_v8, %v2928_v8 }
 0x22e   :  { %516 = vadd.xlane.f32.xlu2 %v515_v9  ;;  %432 = vadd.xlane.f32.xlu1 %v431_v59 }
 0x22f   :  { %v518_v34 = vsel %vm118_vm0, %v498_v1, 0.0  ;;  %v2570_v1 = vmov 32.0  }
 0x230   :  { %519 = vadd.xlane.f32.xlu0 %v518_v34  ;;  %2419 = vrcp.f32 %v2570_v1 }
 0x234   :  { %v2936_v61 = vpop.f32.mrf.mxu1 }
 0x235   :  { %v434_v0 = vsel %vm118_vm0, %v2936_v61, 0.0  ;;  %v499_v35 = vmul.f32 %v2936_v61, %v2936_v61 }
 0x236   :  { %435 = vadd.xlane.f32.xlu2 %v434_v0 }
 0x237   :  { %v521_v39 = vsel %vm118_vm0, %v499_v35, 0.0  ;;  %v2420_v35 = vpop.eup %2419 }
 0x238   :  { %522 = vadd.xlane.f32.xlu1 %v521_v39  ;;  %vm478_vm1 = vweird.f32 %v2420_v35 }
 0x23c   :  { %v2943_v40 = vpop.f32.mrf.mxu1 }
 0x23d   :  { %v437_v49 = vsel %vm118_vm0, %v2943_v40, 0.0  ;;  %v500_v52 = vmul.f32 %v2943_v40, %v2943_v40 }
 0x23e   :  { %438 = vadd.xlane.f32.xlu0 %v437_v49 }
 0x23f   :  { %v524_v41 = vsel %vm118_vm0, %v500_v52, 0.0 }
 0x244   :  { %v2950_v42 = vpop.f32.mrf.mxu1 }
 0x245   :  { %v440_v43 = vsel %vm118_vm0, %v2950_v42, 0.0  ;;  %v501_v2 = vmul.f32 %v2950_v42, %v2950_v42 }
 0x246   :  { %525 = vadd.xlane.f32.xlu0 %v524_v41  ;;  %441 = vadd.xlane.f32.xlu1 %v440_v43  ;;  %v474_v41 = vmul.f32 32.0, %v2420_v35 }
 0x247   :  { %v527_v45 = vsel %vm118_vm0, %v501_v2, 0.0 }
 0x248   :  { %v475_v2 = vsub.f32 1.0, %v474_v41  ;;  %v2408_v41 = vld [vmem:[%s4392_s3 + $0x28] sm:$0xff] }
 0x249   :  { %889 = vmatpush.bf16.msra.mxu2 %v2408_v41 }
 0x24c   :  { %v2960_v6 = vpop.f32.mrf.mxu1 }
 0x24d   :  { %v443_v54 = vsel %vm118_vm0, %v2960_v6, 0.0  ;;  %v502_v27 = vmul.f32 %v2960_v6, %v2960_v6 }
 0x24e   :  { %834 = vrot.lane.b32.xlu2 %v2957_v5, %s2569_s16  ;;  %528 = vadd.xlane.f32.xlu1 %v527_v45 }
 0x24f   :  { %444 = vadd.xlane.f32.xlu0 %v443_v54  ;;  %v530_v59 = vsel %vm118_vm0, %v502_v27, 0.0 }
 0x254   :  { %v2966_v51 = vpop.f32.mrf.mxu1 }
 0x255   :  { %v446_v57 = vsel %vm118_vm0, %v2966_v51, 0.0  ;;  %v503_v36 = vmul.f32 %v2966_v51, %v2966_v51 }
 0x256   :  { %447 = vadd.xlane.f32.xlu1 %v446_v57 }
 0x257   :  { %v533_v50 = vsel %vm118_vm0, %v503_v36, 0.0 }
 0x258   :  { %534 = vadd.xlane.f32.xlu0 %v533_v50  ;;  %v476_v50 = vmul.f32 %v2420_v35, %v475_v2 }
 0x25c   :  { %v2973_v3 = vpop.f32.mrf.mxu1 }
 0x25d   :  { %v449_v53 = vsel %vm118_vm0, %v2973_v3, 0.0  ;;  %v504_v17 = vmul.f32 %v2973_v3, %v2973_v3 }
 0x25e   :  { %450 = vadd.xlane.f32.xlu1 %v449_v53  ;;  %v477_v53 = vadd.f32 %v2420_v35, %v476_v50 }
 0x25f   :  { %v536_v55 = vsel %vm118_vm0, %v504_v17, 0.0 }
 0x264   :  { %v2980_v60 = vpop.f32.mrf.mxu1 }
 0x265   :  { %v452_v14 = vsel %vm118_vm0, %v2980_v60, 0.0  ;;  %v505_v15 = vmul.f32 %v2980_v60, %v2980_v60 }
 0x266   :  { %537 = vadd.xlane.f32.xlu1 %v536_v55  ;;  %453 = vadd.xlane.f32.xlu0 %v452_v14 }
 0x267   :  { %v539_v18 = vsel %vm118_vm0, %v505_v15, 0.0 }
 0x26c   :  { %v2987_v20 = vpop.f32.mrf.mxu1 }
 0x26d   :  { %v455_v32 = vsel %vm118_vm0, %v2987_v20, 0.0  ;;  %v506_v26 = vmul.f32 %v2987_v20, %v2987_v20 }
 0x26e   :  { %540 = vadd.xlane.f32.xlu0 %v539_v18  ;;  %456 = vadd.xlane.f32.xlu1 %v455_v32  ;;  %v3025_v18 = vsel %vm478_vm1, %v2420_v35, %v477_v53 }
 0x26f   :  { %v542_v31 = vsel %vm118_vm0, %v506_v26, 0.0  ;;  %4429 = vst [vmem:[#allocation8_spill] sm:$0xff] %v3025_v18 }
 0x274   :  { %v2996_v47 = vpop.f32.mrf.mxu1 }
 0x275   :  { %v458_v9 = vsel %vm118_vm0, %v2996_v47, 0.0  ;;  %v507_v34 = vmul.f32 %v2996_v47, %v2996_v47 }
 0x276   :  { %543 = vadd.xlane.f32.xlu1 %v542_v31  ;;  %459 = vadd.xlane.f32.xlu0 %v458_v9 }
 0x277   :  { %531 = vadd.xlane.f32.xlu2 %v530_v59  ;;  %v545_v0 = vsel %vm118_vm0, %v507_v34, 0.0 }
 0x27c   :  { %v3004_v39 = vpop.f32.mrf.mxu1 }
 0x27d   :  { %v461_v49 = vsel %vm118_vm0, %v3004_v39, 0.0  ;;  %v508_v52 = vmul.f32 %v3004_v39, %v3004_v39 }
 0x27e   :  { %546 = vadd.xlane.f32.xlu0 %v545_v0  ;;  %462 = vadd.xlane.f32.xlu1 %v461_v49 }
 0x27f   :  { %v548_v43 = vsel %vm118_vm0, %v508_v52, 0.0 }
 0x284   :  { %v3011_v45 = vpop.f32.mrf.mxu1 }
 0x285   :  { %v464_v54 = vsel %vm118_vm0, %v3011_v45, 0.0  ;;  %v509_v57 = vmul.f32 %v3011_v45, %v3011_v45 }
 0x286   :  { %549 = vadd.xlane.f32.xlu1 %v548_v43  ;;  %465 = vadd.xlane.f32.xlu0 %v464_v54  ;;  %v2406_v43 = vld [vmem:[%s4392_s3 + $0x18] sm:$0xff]  ;;  %v2407_v54 = vld [vmem:[%s4392_s3 + $0x20] sm:$0xff] }
 0x287   :  { %v551_v36 = vsel %vm118_vm0, %v509_v57, 0.0  ;;  %974 = vmatpush.bf16.msra.mxu3 %v2406_v43  ;;  %v2405_v57 = vld [vmem:[%s4392_s3 + $0x10] sm:$0xff]  ;;  %890 = vmatpush.bf16.msra.mxu2 %v2407_v54 }
 0x288   :  { %552 = vadd.xlane.f32.xlu2 %v551_v36 }
 0x28a   :  { %2309 = vmatmul.msk.bf16.vlgmr.msra.gmra.mxu2 %vm118_vm0, %v2624_v4 }
 0x28b   :  { %975 = vmatpush.bf16.msra.mxu3 %v2405_v57 }
 0x28c   :  { %v3018_v17 = vpop.f32.mrf.mxu1 }
 0x28d   :  { %v467_v55 = vsel %vm118_vm0, %v3018_v17, 0.0  ;;  %v510_v14 = vmul.f32 %v3018_v17, %v3018_v17 }
 0x28e   :  { %468 = vadd.xlane.f32.xlu0 %v467_v55 }
 0x28f   :  { %v554_v15 = vsel %vm118_vm0, %v510_v14, 0.0 }
 0x290   :  { %555 = vadd.xlane.f32.xlu2 %v554_v15 }
 0x291   :  { %v427_v32 = vpop.xlane.xlu1 %426 }
 0x292   :  { %v3028_v26 = vmul.f32 %v3025_v18, %v427_v32 }
 0x293   :  { %v514_v27 = vpop.xlane.xlu0 %513 }
 0x294   :  { %v592_v31 = vmul.f32 %v3028_v26, %v3028_v26  ;;  %v560_v9 = vmul.f32 %v514_v27, %v3025_v18  ;;  %v3033_v59 = vpop.f32.mrf.mxu1 }
 0x295   :  { %v470_v1 = vsel %vm118_vm0, %v3033_v59, 0.0  ;;  %v511_v34 = vmul.f32 %v3033_v59, %v3033_v59 }
 0x296   :  { %v608_v0 = vsub.f32 %v560_v9, %v592_v31  ;;  %471 = vadd.xlane.f32.xlu1 %v470_v1 }
 0x297   :  { %v557_v35 = vsel %vm118_vm0, %v511_v34, 0.0 }
 0x298   :  { %v624_v49 = vadd.f32 1e-05, %v608_v0  ;;  %558 = vadd.xlane.f32.xlu0 %v557_v35 }
 0x299   :  { %v430_v52 = vpop.xlane.xlu2 %429 }
 0x29a   :  { %2421 = vrsqrt.f32 %v624_v49  ;;  %v3047_v2 = vmul.f32 %v3025_v18, %v430_v52  ;;  %vm646_vm3 = vweird.f32 %v624_v49  ;;  %2310 = vmatmul.msk.bf16.gmra.mxu2 %vm118_vm0, %v2634_v7 }
 0x29c   :  { %v593_v14 = vmul.f32 %v3047_v2, %v3047_v2 }
 0x2a0   :  { %v2422_v36 = vpop.eup %2421 }
 0x2a1   :  { %v641_v50 = vmul.f32 %v2422_v36, %v624_v49  ;;  %v517_v53 = vpop.xlane.xlu2 %516  ;;  %v433_v55 = vpop.xlane.xlu1 %432  ;;  %vm647_vm2 = vweird.f32 %v2422_v36 }
 0x2a2   :  { %v561_v15 = vmul.f32 %v517_v53, %v3025_v18  ;;  %v3059_v32 = vmul.f32 %v3025_v18, %v433_v55  ;;  %vm648_vm4 = vmor %vm646_vm3, %vm647_vm2 }
 0x2a3   :  { %v520_v27 = vpop.xlane.xlu0 %519  ;;  %v642_v34 = vmul.f32 %v2422_v36, %v641_v50 }
 0x2a4   :  { %v609_v31 = vsub.f32 %v561_v15, %v593_v14  ;;  %v594_v9 = vmul.f32 %v3059_v32, %v3059_v32  ;;  %v562_v1 = vmul.f32 %v520_v27, %v3025_v18 }
 0x2a5   :  { %v643_v41 = vmul.f32 0.5, %v642_v34 }
 0x2a6   :  { %v625_v0 = vadd.f32 1e-05, %v609_v31  ;;  %v610_v35 = vsub.f32 %v562_v1, %v594_v9 }
 0x2a7   :  { %v644_v55 = vsub.f32 1.5, %v643_v41 }
 0x2a8   :  { %2423 = vrsqrt.f32 %v625_v0  ;;  %v3066_v52 = vadd.f32 1e-05, %v610_v35  ;;  %vm656_vm6 = vweird.f32 %v625_v0 }
 0x2a9   :  { %v436_v43 = vpop.xlane.xlu2 %435  ;;  %v645_v9 = vmul.f32 %v2422_v36, %v644_v55 }
 0x2aa   :  { %2425 = vrsqrt.f32 %v3066_v52  ;;  %v3070_v54 = vmul.f32 %v3025_v18, %v436_v43  ;;  %vm666_vm10 = vweird.f32 %v3066_v52  ;;  %2311 = vmatmul.msk.bf16.gmra.mxu2 %vm118_vm0, %v2644_v10 }
 0x2ab   :  { %v523_v4 = vpop.xlane.xlu1 %522  ;;  %v649_v41 = vsel %vm648_vm4, %v2422_v36, %v645_v9 }
 0x2ac   :  { %v595_v57 = vmul.f32 %v3070_v54, %v3070_v54  ;;  %v563_v53 = vmul.f32 %v523_v4, %v3025_v18 }
 0x2ae   :  { %v2424_v50 = vpop.eup %2423  ;;  %v611_v14 = vsub.f32 %v563_v53, %v595_v57  ;;  %v576_v57 = vsub.f32 %v2915_v24, %v3028_v26 }
 0x2af   :  { %v651_v15 = vmul.f32 %v2424_v50, %v625_v0  ;;  %vm657_vm5 = vweird.f32 %v2424_v50 }
 0x2b0   :  { %v3075_v27 = vpop.eup %2425  ;;  %v627_v31 = vadd.f32 1e-05, %v611_v14  ;;  %vm658_vm7 = vmor %vm656_vm6, %vm657_vm5  ;;  %v800_v36 = vmul.f32 %v649_v41, %v576_v57 }
 0x2b1   :  { %v652_v1 = vmul.f32 %v2424_v50, %v651_v15  ;;  %v661_v34 = vmul.f32 %v3075_v27, %v3066_v52  ;;  %v439_v35 = vpop.xlane.xlu0 %438  ;;  %v577_v15 = vsub.f32 %v2922_v28, %v3047_v2  ;;  %v3092_v0 = vpop.permute.xlu2 %834  ;;  %vm667_vm8 = vweird.f32 %v3075_v27 }
 0x2b2   :  { %2427 = vrsqrt.f32 %v627_v31  ;;  %v3085_v53 = vmul.f32 %v3025_v18, %v439_v35  ;;  %v817_v62 = vmul.f32 %v2957_v5, %v800_v36  ;;  %vm3106_vm11 = vmor %vm666_vm10, %vm667_vm8  ;;  %vm676_vm12 = vweird.f32 %v627_v31 }
 0x2b3   :  { %v653_v43 = vmul.f32 0.5, %v652_v1  ;;  %v662_v63 = vmul.f32 %v3075_v27, %v661_v34 }
 0x2b4   :  { %v596_v7 = vmul.f32 %v3085_v53, %v3085_v53  ;;  %v837_v57 = vadd.f32 %v3092_v0, %v817_v62 }
 0x2b5   :  { %v654_v4 = vsub.f32 1.5, %v653_v43  ;;  %v663_v14 = vmul.f32 0.5, %v662_v63 }
 0x2b7   :  { %v655_v55 = vmul.f32 %v2424_v50, %v654_v4  ;;  %v664_v35 = vsub.f32 1.5, %v663_v14 }
 0x2b8   :  { %v2428_v49 = vpop.eup %2427 }
 0x2b9   :  { %v659_v9 = vsel %vm658_vm7, %v2424_v50, %v655_v55  ;;  %v671_v1 = vmul.f32 %v2428_v49, %v627_v31  ;;  %v526_v34 = vpop.xlane.xlu0 %525  ;;  %v442_v43 = vpop.xlane.xlu1 %441  ;;  %v665_v14 = vmul.f32 %v3075_v27, %v664_v35  ;;  %vm677_vm9 = vweird.f32 %v2428_v49 }
 0x2ba   :  { %v564_v24 = vmul.f32 %v526_v34, %v3025_v18  ;;  %v801_v26 = vmul.f32 %v659_v9, %v577_v15  ;;  %v3098_v50 = vmul.f32 %v3025_v18, %v442_v43  ;;  %v579_v34 = vsub.f32 %v2936_v61, %v3070_v54  ;;  %vm678_vm13 = vmor %vm676_vm12, %vm677_vm9  ;;  %2312 = vmatmul.msk.bf16.gmra.mxu2 %vm118_vm0, %v2654_v13 }
 0x2bb   :  { %v672_v4 = vmul.f32 %v2428_v49, %v671_v1  ;;  %v669_v52 = vsel %vm3106_vm11, %v3075_v27, %v665_v14  ;;  %v578_v31 = vsub.f32 %v2928_v8, %v3059_v32 }
 0x2bc   :  { %v612_v63 = vsub.f32 %v564_v24, %v596_v7  ;;  %v818_v28 = vmul.f32 %v2957_v5, %v801_v26  ;;  %v597_v7 = vmul.f32 %v3098_v50, %v3098_v50 }
 0x2bd   :  { %v673_v2 = vmul.f32 0.5, %v672_v4  ;;  %v802_v54 = vmul.f32 %v669_v52, %v578_v31  ;;  %v580_v31 = vsub.f32 %v2943_v40, %v3085_v53 }
 0x2be   :  { %v628_v41 = vadd.f32 1e-05, %v612_v63  ;;  %v838_v55 = vadd.f32 %v3092_v0, %v818_v28 }
 0x2bf   :  { %v674_v15 = vsub.f32 1.5, %v673_v2  ;;  %v819_v27 = vmul.f32 %v2957_v5, %v802_v54 }
 0x2c0   :  { %2429 = vrsqrt.f32 %v628_v41  ;;  %v853_v36 = vpack.c.bf16 %v838_v55, %v837_v57  ;;  %vm686_vm14 = vweird.f32 %v628_v41 }
 0x2c1   :  { %v675_v1 = vmul.f32 %v2428_v49, %v674_v15  ;;  %v529_v62 = vpop.xlane.xlu1 %528  ;;  %v839_v32 = vadd.f32 %v3092_v0, %v819_v27 }
 0x2c2   :  { %v565_v43 = vmul.f32 %v529_v62, %v3025_v18  ;;  %2325 = vmatmul.msk.bf16.vlgmr.msra.gmra.mxu3 %vm118_vm0, %v853_v36  ;;  %v445_v28 = vpop.xlane.xlu0 %444 }
 0x2c3   :  { %v679_v24 = vsel %vm678_vm13, %v2428_v49, %v675_v1 }
 0x2c4   :  { %v613_v26 = vsub.f32 %v565_v43, %v597_v7  ;;  %v803_v35 = vmul.f32 %v679_v24, %v579_v34 }
 0x2c6   :  { %v2430_v4 = vpop.eup %2429  ;;  %v629_v61 = vadd.f32 1e-05, %v613_v26  ;;  %v820_v2 = vmul.f32 %v2957_v5, %v803_v35 }
 0x2c7   :  { %v681_v63 = vmul.f32 %v2430_v4, %v628_v41  ;;  %vm687_vm15 = vweird.f32 %v2430_v4 }
 0x2c8   :  { %2431 = vrsqrt.f32 %v629_v61  ;;  %v840_v10 = vadd.f32 %v3092_v0, %v820_v2  ;;  %vm688_vm1 = vmor %vm686_vm14, %vm687_vm15  ;;  %vm696_vm2 = vweird.f32 %v629_v61 }
 0x2c9   :  { %v682_v57 = vmul.f32 %v2430_v4, %v681_v63  ;;  %v448_v55 = vpop.xlane.xlu1 %447 }
 0x2ca   :  { %v3126_v36 = vmul.f32 %v3025_v18, %v448_v55  ;;  %v854_v1 = vpack.c.bf16 %v840_v10, %v839_v32  ;;  %2313 = vmatmul.msk.bf16.gmra.mxu2 %vm118_vm0, %v2664_v16 }
 0x2cb   :  { %v683_v49 = vmul.f32 0.5, %v682_v57  ;;  %v535_v9 = vpop.xlane.xlu0 %534 }
 0x2cc   :  { %v599_v41 = vmul.f32 %v3126_v36, %v3126_v36  ;;  %v567_v24 = vmul.f32 %v535_v9, %v3025_v18 }
 0x2cd   :  { %v684_v14 = vsub.f32 1.5, %v683_v49 }
 0x2ce   :  { %v2432_v8 = vpop.eup %2431  ;;  %v615_v63 = vsub.f32 %v567_v24, %v599_v41 }
 0x2cf   :  { %v685_v15 = vmul.f32 %v2430_v4, %v684_v14  ;;  %v691_v7 = vmul.f32 %v2432_v8, %v629_v61  ;;  %vm697_vm3 = vweird.f32 %v2432_v8 }
 0x2d0   :  { %vm698_vm4 = vmor %vm696_vm2, %vm697_vm3  ;;  %v631_v13 = vadd.f32 1e-05, %v615_v63 }
 0x2d1   :  { %v692_v62 = vmul.f32 %v2432_v8, %v691_v7  ;;  %v451_v34 = vpop.xlane.xlu1 %450  ;;  %v689_v43 = vsel %vm688_vm1, %v2430_v4, %v685_v15  ;;  %v581_v4 = vsub.f32 %v2950_v42, %v3098_v50 }
 0x2d2   :  { %2326 = vmatmul.msk.bf16.gmra.mxu3 %vm118_vm0, %v854_v1  ;;  %v804_v35 = vmul.f32 %v689_v43, %v580_v31  ;;  %2433 = vrsqrt.f32 %v631_v13  ;;  %v3146_v42 = vmul.f32 %v3025_v18, %v451_v34  ;;  %vm716_vm5 = vweird.f32 %v631_v13 }
 0x2d3   :  { %v693_v52 = vmul.f32 0.5, %v692_v62 }
 0x2d4   :  { %v821_v49 = vmul.f32 %v2957_v5, %v804_v35  ;;  %v600_v7 = vmul.f32 %v3146_v42, %v3146_v42 }
 0x2d5   :  { %v694_v26 = vsub.f32 1.5, %v693_v52  ;;  %v3158_v52 = vmul.f32 %v3025_v18, %v445_v28 }
 0x2d6   :  { %v841_v40 = vadd.f32 %v3092_v0, %v821_v49 }
 0x2d7   :  { %v695_v54 = vmul.f32 %v2432_v8, %v694_v26  ;;  %v598_v26 = vmul.f32 %v3158_v52, %v3158_v52 }
 0x2d8   :  { %v2434_v1 = vpop.eup %2433 }
 0x2d9   :  { %v699_v2 = vsel %vm698_vm4, %v2432_v8, %v695_v54  ;;  %v538_v57 = vpop.xlane.xlu1 %537  ;;  %v454_v55 = vpop.xlane.xlu0 %453  ;;  %v711_v43 = vmul.f32 %v2434_v1, %v631_v13  ;;  %vm717_vm6 = vweird.f32 %v2434_v1 }
 0x2da   :  { %v805_v27 = vmul.f32 %v699_v2, %v581_v4  ;;  %v3143_v61 = vmul.f32 %v3025_v18, %v454_v55  ;;  %v568_v9 = vmul.f32 %v538_v57, %v3025_v18  ;;  %2314 = vmatmul.msk.bf16.gmra.mxu2 %vm118_vm0, %v2674_v19  ;;  %vm3191_vm7 = vmor %vm716_vm5, %vm717_vm6 }
 0x2db   :  { %v712_v63 = vmul.f32 %v2434_v1, %v711_v43 }
 0x2dc   :  { %v822_v10 = vmul.f32 %v2957_v5, %v805_v27  ;;  %v601_v50 = vmul.f32 %v3143_v61, %v3143_v61  ;;  %v616_v34 = vsub.f32 %v568_v9, %v600_v7 }
 0x2dd   :  { %v713_v57 = vmul.f32 0.5, %v712_v63 }
 0x2de   :  { %v842_v53 = vadd.f32 %v3092_v0, %v822_v10  ;;  %v3164_v35 = vadd.f32 1e-05, %v616_v34 }
 0x2e0   :  { %v855_v14 = vpack.c.bf16 %v842_v53, %v841_v40  ;;  %vm726_vm11 = vweird.f32 %v3164_v35 }
 0x2e1   :  { %v541_v8 = vpop.xlane.xlu0 %540  ;;  %v457_v15 = vpop.xlane.xlu1 %456 }
 0x2e2   :  { %v569_v32 = vmul.f32 %v541_v8, %v3025_v18  ;;  %2327 = vmatmul.msk.bf16.gmra.mxu3 %vm118_vm0, %v855_v14  ;;  %v3173_v55 = vmul.f32 %v3025_v18, %v457_v15 }
 0x2e4   :  { %v617_v62 = vsub.f32 %v569_v32, %v601_v50  ;;  %v602_v53 = vmul.f32 %v3173_v55, %v3173_v55  ;;  %v714_v50 = vsub.f32 1.5, %v713_v57 }
 0x2e6   :  { %v3160_v41 = vadd.f32 1e-05, %v617_v62  ;;  %v715_v34 = vmul.f32 %v2434_v1, %v714_v50 }
 0x2e8   :  { %2435 = vrsqrt.f32 %v3160_v41  ;;  %vm736_vm13 = vweird.f32 %v3160_v41 }
 0x2e9   :  { %v460_v24 = vpop.xlane.xlu0 %459  ;;  %v544_v16 = vpop.xlane.xlu1 %543  ;;  %2437 = vrsqrt.f32 %v3164_v35 }
 0x2ea   :  { %v532_v31 = vpop.xlane.xlu2 %531  ;;  %v3170_v28 = vmul.f32 %v3025_v18, %v460_v24  ;;  %v570_v14 = vmul.f32 %v544_v16, %v3025_v18  ;;  %v719_v16 = vsel %vm3191_vm7, %v2434_v1, %v715_v34  ;;  %2315 = vmatmul.msk.bf16.gmra.mxu2 %vm118_vm0, %v2684_v22 }
 0x2eb   :  { %v566_v54 = vmul.f32 %v532_v31, %v3025_v18 }
 0x2ec   :  { %v603_v27 = vmul.f32 %v3170_v28, %v3170_v28  ;;  %v618_v62 = vsub.f32 %v570_v14, %v602_v53 }
 0x2ed   :  { %v614_v4 = vsub.f32 %v566_v54, %v598_v26 }
 0x2ee   :  { %v3178_v40 = vpop.eup %2435  ;;  %v3198_v63 = vadd.f32 1e-05, %v618_v62  ;;  %v582_v62 = vsub.f32 %v2960_v6, %v3158_v52 }
 0x2ef   :  { %v630_v2 = vadd.f32 1e-05, %v614_v4  ;;  %v3185_v8 = vpop.eup %2437  ;;  %v731_v15 = vmul.f32 %v3178_v40, %v3160_v41  ;;  %vm737_vm14 = vweird.f32 %v3178_v40 }
 0x2f0   :  { %v721_v43 = vmul.f32 %v3185_v8, %v3164_v35  ;;  %vm727_vm12 = vweird.f32 %v3185_v8  ;;  %vm738_vm1 = vmor %vm736_vm13, %vm737_vm14  ;;  %vm746_vm2 = vweird.f32 %v3198_v63 }
 0x2f1   :  { %2439 = vrsqrt.f32 %v630_v2  ;;  %v547_v49 = vpop.xlane.xlu0 %546  ;;  %v463_v7 = vpop.xlane.xlu1 %462  ;;  %v732_v13 = vmul.f32 %v3178_v40, %v731_v15  ;;  %vm706_vm9 = vweird.f32 %v630_v2  ;;  %vm3239_vm15 = vmor %vm726_vm11, %vm727_vm12 }
 0x2f2   :  { %v571_v10 = vmul.f32 %v547_v49, %v3025_v18  ;;  %v722_v4 = vmul.f32 %v3185_v8, %v721_v43 }
 0x2f4   :  { %v619_v32 = vsub.f32 %v571_v10, %v603_v27  ;;  %v583_v27 = vsub.f32 %v2966_v51, %v3126_v36  ;;  %v733_v10 = vmul.f32 0.5, %v732_v13  ;;  %v3213_v51 = vmul.f32 %v3025_v18, %v463_v7 }
 0x2f6   :  { %v3195_v19 = vadd.f32 1e-05, %v619_v32  ;;  %v807_v50 = vmul.f32 %v719_v16, %v583_v27  ;;  %v723_v32 = vmul.f32 0.5, %v722_v4  ;;  %v734_v43 = vsub.f32 1.5, %v733_v10 }
 0x2f7   :  { %v2440_v9 = vpop.eup %2439 }
 0x2f8   :  { %v701_v24 = vmul.f32 %v2440_v9, %v630_v2  ;;  %2441 = vrsqrt.f32 %v3195_v19  ;;  %vm707_vm8 = vweird.f32 %v2440_v9  ;;  %v604_v2 = vmul.f32 %v3213_v51, %v3213_v51 }
 0x2f9   :  { %v466_v54 = vpop.xlane.xlu0 %465  ;;  %2443 = vrsqrt.f32 %v3198_v63  ;;  %v550_v15 = vpop.xlane.xlu1 %549  ;;  %vm708_vm10 = vmor %vm706_vm9, %vm707_vm8  ;;  %v824_v6 = vmul.f32 %v2957_v5, %v807_v50  ;;  %v724_v52 = vsub.f32 1.5, %v723_v32  ;;  %v735_v16 = vmul.f32 %v3178_v40, %v734_v43 }
 0x2fa   :  { %v702_v26 = vmul.f32 %v2440_v9, %v701_v24  ;;  %v3207_v49 = vmul.f32 %v3025_v18, %v466_v54  ;;  %v572_v13 = vmul.f32 %v550_v15, %v3025_v18  ;;  %2316 = vmatmul.msk.bf16.gmra.mxu2 %vm118_vm0, %v2694_v25  ;;  %vm756_vm4 = vweird.f32 %v3195_v19 }
 0x2fb   :  { %v553_v14 = vpop.xlane.xlu2 %552  ;;  %v844_v35 = vadd.f32 %v3092_v0, %v824_v6  ;;  %v725_v10 = vmul.f32 %v3185_v8, %v724_v52  ;;  %v739_v32 = vsel %vm738_vm1, %v3178_v40, %v735_v16 }
 0x2fc   :  { %v703_v57 = vmul.f32 0.5, %v702_v26  ;;  %v605_v36 = vmul.f32 %v3207_v49, %v3207_v49  ;;  %v573_v34 = vmul.f32 %v553_v14, %v3025_v18 }
 0x2fe   :  { %v704_v53 = vsub.f32 1.5, %v703_v57  ;;  %v3218_v31 = vpop.eup %2441  ;;  %v620_v57 = vsub.f32 %v572_v13, %v604_v2 }
 0x2ff   :  { %v3226_v7 = vpop.eup %2443  ;;  %v751_v4 = vmul.f32 %v3218_v31, %v3195_v19  ;;  %vm757_vm5 = vweird.f32 %v3218_v31 }
 0x300   :  { %v705_v1 = vmul.f32 %v2440_v9, %v704_v53  ;;  %v741_v41 = vmul.f32 %v3226_v7, %v3198_v63  ;;  %vm747_vm3 = vweird.f32 %v3226_v7  ;;  %vm758_vm7 = vmor %vm756_vm4, %vm757_vm5 }
 0x301   :  { %v469_v22 = vpop.xlane.xlu0 %468  ;;  %vm3290_vm6 = vmor %vm746_vm2, %vm747_vm3 }
 0x302   :  { %v709_v24 = vsel %vm708_vm10, %v2440_v9, %v705_v1  ;;  %v621_v9 = vsub.f32 %v573_v34, %v605_v36  ;;  %v752_v1 = vmul.f32 %v3218_v31, %v751_v4  ;;  %v3251_v36 = vadd.f32 1e-05, %v620_v57 }
 0x303   :  { %v806_v26 = vmul.f32 %v709_v24, %v582_v62  ;;  %v585_v62 = vsub.f32 %v2980_v60, %v3143_v61  ;;  %v729_v34 = vsel %vm3239_vm15, %v3185_v8, %v725_v10  ;;  %v742_v43 = vmul.f32 %v3226_v7, %v741_v41  ;;  %v556_v6 = vpop.xlane.xlu2 %555 }
 0x304   :  { %v3245_v14 = vadd.f32 1e-05, %v621_v9  ;;  %v584_v24 = vsub.f32 %v2973_v3, %v3146_v42  ;;  %v753_v60 = vmul.f32 0.5, %v752_v1  ;;  %v3266_v13 = vmul.f32 %v3025_v18, %v469_v22 }
 0x305   :  { %v823_v54 = vmul.f32 %v2957_v5, %v806_v26  ;;  %v809_v2 = vmul.f32 %v739_v32, %v585_v62  ;;  %v743_v8 = vmul.f32 0.5, %v742_v43  ;;  %v574_v4 = vmul.f32 %v556_v6, %v3025_v18 }
 0x306   :  { %2445 = vrsqrt.f32 %v3245_v14  ;;  %v808_v26 = vmul.f32 %v729_v34, %v584_v24  ;;  %v754_v9 = vsub.f32 1.5, %v753_v60  ;;  %v606_v16 = vmul.f32 %v3266_v13, %v3266_v13 }
 0x307   :  { %v843_v27 = vadd.f32 %v3092_v0, %v823_v54  ;;  %2447 = vrsqrt.f32 %v3251_v36  ;;  %v826_v42 = vmul.f32 %v2957_v5, %v809_v2  ;;  %v744_v57 = vsub.f32 1.5, %v743_v8 }
 0x308   :  { %v825_v22 = vmul.f32 %v2957_v5, %v808_v26  ;;  %v755_v53 = vmul.f32 %v3218_v31, %v754_v9  ;;  %v587_v43 = vsub.f32 %v2996_v47, %v3170_v28  ;;  %vm776_vm8 = vweird.f32 %v3245_v14 }
 0x309   :  { %v856_v50 = vpack.c.bf16 %v844_v35, %v843_v27  ;;  %v472_v15 = vpop.xlane.xlu1 %471  ;;  %v846_v10 = vadd.f32 %v3092_v0, %v826_v42  ;;  %v745_v32 = vmul.f32 %v3226_v7, %v744_v57  ;;  %vm766_vm10 = vweird.f32 %v3251_v36 }
 0x30a   :  { %v3262_v40 = vmul.f32 %v3025_v18, %v472_v15  ;;  %v845_v25 = vadd.f32 %v3092_v0, %v825_v22  ;;  %v759_v19 = vsel %vm758_vm7, %v3218_v31, %v755_v53 }
 0x30b   :  { %2328 = vmatmul.msk.bf16.gmra.mxu3 %vm118_vm0, %v856_v50  ;;  %v559_v61 = vpop.xlane.xlu0 %558  ;;  %v622_v50 = vsub.f32 %v574_v4, %v606_v16  ;;  %v749_v2 = vsel %vm3290_vm6, %v3226_v7, %v745_v32  ;;  %v811_v26 = vmul.f32 %v759_v19, %v587_v43 }
 0x30c   :  { %v607_v52 = vmul.f32 %v3262_v40, %v3262_v40  ;;  %v575_v3 = vmul.f32 %v559_v61, %v3025_v18  ;;  %v3272_v54 = vpop.eup %2445  ;;  %v857_v62 = vpack.c.bf16 %v846_v10, %v845_v25  ;;  %v586_v61 = vsub.f32 %v2987_v20, %v3173_v55 }
 0x30d   :  { %v2448_v27 = vpop.eup %2447  ;;  %v771_v41 = vmul.f32 %v3272_v54, %v3245_v14  ;;  %v638_v24 = vadd.f32 1e-05, %v622_v50  ;;  %vm777_vm9 = vweird.f32 %v3272_v54  ;;  %v589_v10 = vsub.f32 %v3011_v45, %v3207_v49 }
 0x30e   :  { %v623_v35 = vsub.f32 %v575_v3, %v607_v52  ;;  %v761_v1 = vmul.f32 %v2448_v27, %v3251_v36  ;;  %v810_v31 = vmul.f32 %v749_v2, %v586_v61  ;;  %v828_v52 = vmul.f32 %v2957_v5, %v811_v26  ;;  %vm778_vm12 = vmor %vm776_vm8, %vm777_vm9 }
 0x30f   :  { %v772_v34 = vmul.f32 %v3272_v54, %v771_v41  ;;  %vm767_vm11 = vweird.f32 %v2448_v27  ;;  %v588_v41 = vsub.f32 %v3004_v39, %v3213_v51  ;;  %vm786_vm1 = vweird.f32 %v638_v24 }
 0x310   :  { %v639_v15 = vadd.f32 1e-05, %v623_v35  ;;  %v762_v60 = vmul.f32 %v2448_v27, %v761_v1  ;;  %v827_v3 = vmul.f32 %v2957_v5, %v810_v31  ;;  %v848_v20 = vadd.f32 %v3092_v0, %v828_v52  ;;  %vm768_vm13 = vmor %vm766_vm10, %vm767_vm11 }
 0x311   :  { %v773_v8 = vmul.f32 0.5, %v772_v34  ;;  %v892_v34 = vpop.f32.mrf.mxu2  ;;  %v591_v2 = vsub.f32 %v3033_v59, %v3262_v40 }
 0x312   :  { %2449 = vrsqrt.f32 %v639_v15  ;;  %v763_v6 = vmul.f32 0.5, %v762_v60  ;;  %v847_v16 = vadd.f32 %v3092_v0, %v827_v3  ;;  %vm796_vm14 = vweird.f32 %v639_v15 }
 0x313   :  { %2451 = vrsqrt.f32 %v638_v24  ;;  %v774_v47 = vsub.f32 1.5, %v773_v8  ;;  %v590_v60 = vsub.f32 %v3018_v17, %v3266_v13 }
 0x314   :  { %v764_v42 = vsub.f32 1.5, %v763_v6  ;;  %v858_v57 = vpack.c.bf16 %v848_v20, %v847_v16  ;;  %v2485_v6 = vld [vmem:[%s4393_s4] sm:$0x7] }
 0x315   :  { %v775_v55 = vmul.f32 %v3272_v54, %v774_v47  ;;  %v3333_v52 = vperm.slane %v2485_v6, 2 }
 0x316   :  { %v765_v4 = vmul.f32 %v2448_v27, %v764_v42 }
 0x317   :  { %v779_v14 = vsel %vm778_vm12, %v3272_v54, %v775_v55 }
 0x318   :  { %v2450_v28 = vpop.eup %2449  ;;  %v769_v36 = vsel %vm768_vm13, %v2448_v27, %v765_v4  ;;  %v813_v50 = vmul.f32 %v779_v14, %v589_v10 }
 0x319   :  { %v2452_v7 = vpop.eup %2451  ;;  %v791_v9 = vmul.f32 %v2450_v28, %v639_v15  ;;  %v812_v32 = vmul.f32 %v769_v36, %v588_v41  ;;  %vm797_vm15 = vweird.f32 %v2450_v28  ;;  %v894_v31 = vpop.f32.mrf.mxu2 }
 0x31a   :  { %v781_v22 = vmul.f32 %v2452_v7, %v638_v24  ;;  %v830_v1 = vmul.f32 %v2957_v5, %v813_v50  ;;  %vm787_vm2 = vweird.f32 %v2452_v7  ;;  %vm798_vm3 = vmor %vm796_vm14, %vm797_vm15 }
 0x31b   :  { %2329 = vmatmul.msk.bf16.gmra.mxu3 %vm118_vm0, %v857_v62  ;;  %v792_v35 = vmul.f32 %v2450_v28, %v791_v9  ;;  %v829_v54 = vmul.f32 %v2957_v5, %v812_v32  ;;  %vm788_vm4 = vmor %vm786_vm1, %vm787_vm2 }
 0x31c   :  { %v782_v53 = vmul.f32 %v2452_v7, %v781_v22  ;;  %v850_v45 = vadd.f32 %v3092_v0, %v830_v1 }
 0x31d   :  { %v793_v25 = vmul.f32 0.5, %v792_v35  ;;  %v849_v39 = vadd.f32 %v3092_v0, %v829_v54 }
 0x31e   :  { %v783_v63 = vmul.f32 0.5, %v782_v53 }
 0x31f   :  { %v794_v62 = vsub.f32 1.5, %v793_v25  ;;  %v859_v27 = vpack.c.bf16 %v850_v45, %v849_v39 }
 0x320   :  { %v784_v19 = vsub.f32 1.5, %v783_v63 }
 0x321   :  { %v795_v49 = vmul.f32 %v2450_v28, %v794_v62  ;;  %v897_v3 = vpop.f32.mrf.mxu2 }
 0x322   :  { %v785_v51 = vmul.f32 %v2452_v7, %v784_v19 }
 0x323   :  { %v799_v43 = vsel %vm798_vm3, %v2450_v28, %v795_v49 }
 0x324   :  { %v789_v15 = vsel %vm788_vm4, %v2452_v7, %v785_v51  ;;  %v815_v24 = vmul.f32 %v799_v43, %v591_v2 }
 0x325   :  { %v814_v61 = vmul.f32 %v789_v15, %v590_v60  ;;  %v2409_v15 = vld [vmem:[%s4392_s3 + $0x30] sm:$0xff] }
 0x326   :  { %v832_v26 = vmul.f32 %v2957_v5, %v815_v24  ;;  %v2413_v60 = vld [vmem:[%s4392_s3 + $0x50] sm:$0xff] }
 0x327   :  { %v831_v8 = vmul.f32 %v2957_v5, %v814_v61 }
 0x328   :  { %v852_v40 = vadd.f32 %v3092_v0, %v832_v26 }
 0x329   :  { %v851_v28 = vadd.f32 %v3092_v0, %v831_v8  ;;  %v899_v9 = vpop.f32.mrf.mxu2 }
 0x32b   :  { %2330 = vmatmul.msk.bf16.gmra.mxu3 %vm118_vm0, %v858_v57  ;;  %v860_v13 = vpack.c.bf16 %v852_v40, %v851_v28 }
 0x331   :  { %v902_v57 = vpop.f32.mrf.mxu2 }
 0x339   :  { %v904_v36 = vpop.f32.mrf.mxu2 }
 0x33b   :  { %2331 = vmatmul.msk.bf16.gmra.mxu3 %vm118_vm0, %v859_v27  ;;  %v2410_v27 = vld [vmem:[%s4392_s3 + $0x38] sm:$0xff] }
 0x33c   :  { %1220 = vmatpush.bf16.msrb.mxu0 %v2410_v27 }
 0x340   :  { %1221 = vmatpush.bf16.msrb.mxu0 %v2409_v15 }
 0x341   :  { %v907_v25 = vpop.f32.mrf.mxu2 }
 0x345   :  { %v977_v59 = vpop.f32.mrf.mxu3 }
 0x346   :  { %v978_v47 = vadd.f32 %v977_v59, %v892_v34  ;;  %v2414_v34 = vld [vmem:[%s4392_s3 + $0x58] sm:$0xff] }
 0x347   :  { %1905 = vmatpush.bf16.msrb.mxu3 %v2414_v34 }
 0x348   :  { %v3338_v17 = vadd.f32 %v3333_v52, %v978_v47 }
 0x349   :  { %v909_v32 = vpop.f32.mrf.mxu2 }
 0x34a   :  { %1066 = vrot.lane.b32.xlu1 %v3338_v17, %s2569_s16 }
 0x34b   :  { %2332 = vmatmul.msk.bf16.gmra.mxu3 %vm118_vm0, %v860_v13 }
 0x34c   :  { %1906 = vmatpush.bf16.msrb.mxu3 %v2413_v60 }
 0x34d   :  { %v979_v5 = vpop.f32.mrf.mxu3 }
 0x34e   :  { %v980_v42 = vadd.f32 %v979_v5, %v894_v31 }
 0x350   :  { %v1019_v7 = vadd.f32 %v3333_v52, %v980_v42 }
 0x351   :  { %v912_v62 = vpop.f32.mrf.mxu2 }
 0x352   :  { %1068 = vrot.lane.b32.xlu2 %v1019_v7, %s2569_s16 }
 0x355   :  { %v982_v20 = vpop.f32.mrf.mxu3 }
 0x356   :  { %v983_v55 = vadd.f32 %v982_v20, %v897_v3  ;;  %v3405_v3 = vld [vmem:[%s4390_s1 + $0x8] sm:$0xff] }
 0x358   :  { %v3346_v0 = vadd.f32 %v3333_v52, %v983_v55  ;;  %v1035_v55 = vmul.f32 %v1019_v7, %v2883_v12  ;;  %v2488_v7 = vld [vmem:[%s4389_s0 + $0x8] sm:$0xff] }
 0x359   :  { %v914_v39 = vpop.f32.mrf.mxu2 }
 0x35a   :  { %1070 = vrot.lane.b32.xlu0 %v3346_v0, %s2569_s16 }
 0x35d   :  { %v984_v16 = vpop.f32.mrf.mxu3 }
 0x35e   :  { %v985_v4 = vadd.f32 %v984_v16, %v899_v9 }
 0x360   :  { %v3351_v22 = vadd.f32 %v3333_v52, %v985_v4  ;;  %v1034_v4 = vmul.f32 %v3338_v17, %v2881_v11  ;;  %v2489_v17 = vld [vmem:[%s4389_s0] sm:$0xff] }
 0x361   :  { %v917_v24 = vpop.f32.mrf.mxu2 }
 0x362   :  { %1072 = vrot.lane.b32.xlu2 %v3351_v22, %s2569_s16 }
 0x365   :  { %v987_v14 = vpop.f32.mrf.mxu3 }
 0x366   :  { %v988_v35 = vadd.f32 %v987_v14, %v902_v57  ;;  %v3419_v57 = vld [vmem:[%s4390_s1] sm:$0xff] }
 0x368   :  { %v3356_v10 = vadd.f32 %v3333_v52, %v988_v35 }
 0x369   :  { %v919_v31 = vpop.f32.mrf.mxu2 }
 0x36a   :  { %1074 = vrot.lane.b32.xlu1 %v3356_v10, %s2569_s16 }
 0x36d   :  { %v989_v53 = vpop.f32.mrf.mxu3 }
 0x36e   :  { %v990_v41 = vadd.f32 %v989_v53, %v904_v36 }
 0x370   :  { %v3361_v50 = vadd.f32 %v3333_v52, %v990_v41 }
 0x371   :  { %v922_v5 = vpop.f32.mrf.mxu2 }
 0x372   :  { %1076 = vrot.lane.b32.xlu0 %v3361_v50, %s2569_s16 }
 0x38e   :  { %v992_v63 = vpop.f32.mrf.mxu3 }
 0x38f   :  { %v993_v1 = vadd.f32 %v992_v63, %v907_v25  ;;  %v924_v63 = vpop.f32.mrf.mxu2 }
 0x391   :  { %v3366_v54 = vadd.f32 %v3333_v52, %v993_v1 }
 0x393   :  { %1078 = vrot.lane.b32.xlu2 %v3366_v54, %s2569_s16 }
 0x396   :  { %v994_v19 = vpop.f32.mrf.mxu3 }
 0x397   :  { %v995_v45 = vadd.f32 %v994_v19, %v909_v32  ;;  %v927_v34 = vpop.f32.mrf.mxu2 }
 0x399   :  { %v3371_v49 = vadd.f32 %v3333_v52, %v995_v45 }
 0x39b   :  { %1080 = vrot.lane.b32.xlu1 %v3371_v49, %s2569_s16 }
 0x39e   :  { %v997_v51 = vpop.f32.mrf.mxu3 }
 0x39f   :  { %v998_v43 = vadd.f32 %v997_v51, %v912_v62 }
 0x3a1   :  { %v3382_v2 = vadd.f32 %v3333_v52, %v998_v43  ;;  %v1037_v43 = vmul.f32 %v3351_v22, %v2864_v33  ;;  %v2492_v22 = vld [vmem:[%s4389_s0 + $0x18] sm:$0xff] }
 0x3a3   :  { %1082 = vrot.lane.b32.xlu0 %v3382_v2, %s2569_s16 }
 0x3a6   :  { %v999_v61 = vpop.f32.mrf.mxu3 }
 0x3a7   :  { %v1000_v26 = vadd.f32 %v999_v61, %v914_v39  ;;  %v3444_v39 = vld [vmem:[%s4390_s1 + $0x18] sm:$0xff]  ;;  %v3459_v61 = vld [vmem:[%s4390_s1 + $0x10] sm:$0xff] }
 0x3a9   :  { %v3393_v8 = vadd.f32 %v3333_v52, %v1000_v26 }
 0x3ab   :  { %1084 = vrot.lane.b32.xlu2 %v3393_v8, %s2569_s16 }
 0x3ac   :  { %v1069_v47 = vpop.permute.xlu2 %1068 }
 0x3ad   :  { %v1115_v42 = vmul.f32 %v3405_v3, %v1069_v47 }
 0x3ae   :  { %v1002_v6 = vpop.f32.mrf.mxu3 }
 0x3af   :  { %v1003_v59 = vadd.f32 %v1002_v6, %v917_v24  ;;  %v1131_v16 = vadd.f32 %v1115_v42, %v1035_v55  ;;  %v1036_v24 = vmul.f32 %v3346_v0, %v2862_v44  ;;  %v2493_v0 = vld [vmem:[%s4389_s0 + $0x10] sm:$0xff]  ;;  %v929_v42 = vpop.f32.mrf.mxu2 }
 0x3b1   :  { %v3398_v40 = vadd.f32 %v3333_v52, %v1003_v59  ;;  %v3425_v41 = vadd.f32 %v2488_v7, %v1131_v16 }
 0x3b3   :  { %1086 = vrot.lane.b32.xlu1 %v3398_v40, %s2569_s16  ;;  %4438 = vst [vmem:[#allocation9_spill] sm:$0xff] %v3425_v41 }
 0x3b6   :  { %v1004_v28 = vpop.f32.mrf.mxu3 }
 0x3b7   :  { %v1005_v13 = vadd.f32 %v1004_v28, %v919_v31 }
 0x3b9   :  { %v3409_v20 = vadd.f32 %v3333_v52, %v1005_v13 }
 0x3bb   :  { %1088 = vrot.lane.b32.xlu0 %v3409_v20, %s2569_s16 }
 0x3bc   :  { %v1067_v9 = vpop.permute.xlu1 %1066  ;;  %v1073_v62 = vpop.permute.xlu2 %1072 }
 0x3bd   :  { %v1114_v14 = vmul.f32 %v3419_v57, %v1067_v9  ;;  %v1117_v51 = vmul.f32 %v3444_v39, %v1073_v62  ;;  %v2496_v62 = vld [vmem:[%s4389_s0 + $0x20] sm:$0xff] }
 0x3be   :  { %v1007_v35 = vpop.f32.mrf.mxu3 }
 0x3bf   :  { %v1130_v36 = vadd.f32 %v1114_v14, %v1034_v4  ;;  %v1008_v53 = vadd.f32 %v1007_v35, %v922_v5  ;;  %v1133_v60 = vadd.f32 %v1117_v51, %v1037_v43  ;;  %v3489_v14 = vld [vmem:[%s4390_s1 + $0x20] sm:$0xff] }
 0x3c1   :  { %v3430_v25 = vadd.f32 %v2489_v17, %v1130_v36  ;;  %v3433_v32 = vadd.f32 %v3333_v52, %v1008_v53  ;;  %v3465_v47 = vadd.f32 %v2492_v22, %v1133_v60  ;;  %v1038_v36 = vmul.f32 %v3356_v10, %v2843_v56  ;;  %v3499_v17 = vld [vmem:[%s4390_s1 + $0x28] sm:$0xff]  ;;  %v2500_v22 = vld [vmem:[%s4389_s0 + $0x30] sm:$0xff] }
 0x3c2   :  { %v2497_v10 = vld [vmem:[%s4389_s0 + $0x28] sm:$0xff] }
 0x3c3   :  { %4439 = vst [vmem:[#allocation10_spill] sm:$0xff] %v3430_v25  ;;  %v1164_v1 = vpack.c.bf16 %v3425_v41, %v3430_v25  ;;  %1090 = vrot.lane.b32.xlu2 %v3433_v32, %s2569_s16 }
 0x3c4   :  { %4440 = vst [vmem:[#allocation11_spill] sm:$0xff] %v3465_v47 }
 0x3c5   :  { %2346 = vmatmul.msk.bf16.vlgmr.msrb.gmra.mxu0 %vm118_vm0, %v1164_v1  ;;  %2370 = vmatmul.msk.bf16.vlgmr.msrb.gmra.mxu3 %vm118_vm0, %v1164_v1 }
 0x3c6   :  { %v1009_v19 = vpop.f32.mrf.mxu3 }
 0x3c7   :  { %v1010_v45 = vadd.f32 %v1009_v19, %v924_v63 }
 0x3c9   :  { %v3448_v27 = vadd.f32 %v3333_v52, %v1010_v45 }
 0x3cb   :  { %1092 = vrot.lane.b32.xlu1 %v3448_v27, %s2569_s16 }
 0x3cc   :  { %v1071_v15 = vpop.permute.xlu0 %1070 }
 0x3cd   :  { %v1116_v26 = vmul.f32 %v3459_v61, %v1071_v15  ;;  %v1040_v15 = vmul.f32 %v3366_v54, %v2839_v58  ;;  %v2501_v54 = vld [vmem:[%s4389_s0 + $0x38] sm:$0xff] }
 0x3ce   :  { %v1012_v31 = vpop.f32.mrf.mxu3 }
 0x3cf   :  { %v1132_v6 = vadd.f32 %v1116_v26, %v1036_v24  ;;  %v1013_v59 = vadd.f32 %v1012_v31, %v927_v34  ;;  %v3519_v34 = vld [vmem:[%s4390_s1 + $0x30] sm:$0xff]  ;;  %v1041_v26 = vmul.f32 %v3371_v49, %v2841_v46  ;;  %v3529_v31 = vld [vmem:[%s4390_s1 + $0x38] sm:$0xff] }
 0x3d1   :  { %v3470_v28 = vadd.f32 %v2493_v0, %v1132_v6  ;;  %v3473_v13 = vadd.f32 %v3333_v52, %v1013_v59 }
 0x3d3   :  { %4441 = vst [vmem:[#allocation12_spill] sm:$0xff] %v3470_v28  ;;  %1094 = vrot.lane.b32.xlu0 %v3473_v13, %s2569_s16  ;;  %v1165_v5 = vpack.c.bf16 %v3465_v47, %v3470_v28 }
 0x3d5   :  { %2347 = vmatmul.msk.bf16.gmra.mxu0 %vm118_vm0, %v1165_v5  ;;  %2371 = vmatmul.msk.bf16.gmra.mxu3 %vm118_vm0, %v1165_v5 }
 0x3d6   :  { %v1014_v55 = vpop.f32.mrf.mxu3 }
 0x3d7   :  { %v1015_v9 = vadd.f32 %v1014_v55, %v929_v42 }
 0x3d9   :  { %v3482_v16 = vadd.f32 %v3333_v52, %v1015_v9  ;;  %v1039_v52 = vmul.f32 %v3361_v50, %v2845_v48  ;;  %v3549_v9 = vld [vmem:[%s4390_s1 + $0x40] sm:$0xff] }
 0x3db   :  { %1096 = vrot.lane.b32.xlu2 %v3482_v16, %s2569_s16 }
 0x3dc   :  { %v1075_v4 = vpop.permute.xlu1 %1074 }
 0x3dd   :  { %v1118_v35 = vmul.f32 %v3489_v14, %v1075_v4 }
 0x3df   :  { %v1134_v7 = vadd.f32 %v1118_v35, %v1038_v36  ;;  %v3555_v35 = vld [vmem:[%s4390_s1 + $0x48] sm:$0xff] }
 0x3e1   :  { %v3505_v19 = vadd.f32 %v2496_v62, %v1134_v7  ;;  %v1043_v7 = vmul.f32 %v3393_v8, %v2821_v30 }
 0x3e3   :  { %4442 = vst [vmem:[#allocation13_spill] sm:$0xff] %v3505_v19 }
 0x3e4   :  { %v1077_v53 = vpop.permute.xlu0 %1076 }
 0x3e5   :  { %v1119_v63 = vmul.f32 %v3499_v17, %v1077_v53  ;;  %v1042_v53 = vmul.f32 %v3382_v2, %v2819_v29 }
 0x3e7   :  { %v1135_v1 = vadd.f32 %v1119_v63, %v1039_v52 }
 0x3e9   :  { %v3510_v45 = vadd.f32 %v2497_v10, %v1135_v1  ;;  %v2504_v1 = vld [vmem:[%s4389_s0 + $0x40] sm:$0xff]  ;;  %v2505_v10 = vld [vmem:[%s4389_s0 + $0x48] sm:$0xff] }
 0x3eb   :  { %4443 = vst [vmem:[#allocation14_spill] sm:$0xff] %v3510_v45  ;;  %v1166_v50 = vpack.c.bf16 %v3510_v45, %v3505_v19 }
 0x3ed   :  { %2348 = vmatmul.msk.bf16.gmra.mxu0 %vm118_vm0, %v1166_v50  ;;  %2372 = vmatmul.msk.bf16.gmra.mxu3 %vm118_vm0, %v1166_v50  ;;  %v1079_v51 = vpop.permute.xlu2 %1078 }
 0x3ee   :  { %v1120_v43 = vmul.f32 %v3519_v34, %v1079_v51  ;;  %v3579_v51 = vld [vmem:[%s4390_s1 + $0x50] sm:$0xff] }
 0x3f0   :  { %v1136_v24 = vadd.f32 %v1120_v43, %v1040_v15  ;;  %v1044_v15 = vmul.f32 %v3398_v40, %v2783_v21  ;;  %v2509_v40 = vld [vmem:[%s4389_s0 + $0x58] sm:$0xff] }
 0x3f2   :  { %v3535_v0 = vadd.f32 %v2500_v22, %v1136_v24 }
 0x3f4   :  { %4444 = vst [vmem:[#allocation15_spill] sm:$0xff] %v3535_v0 }
 0x405   :  { %v1085_v55 = vpop.permute.xlu2 %1084 }
 0x406   :  { %v1123_v36 = vmul.f32 %v3555_v35, %v1085_v55 }
 0x408   :  { %v1139_v63 = vadd.f32 %v1123_v36, %v1043_v7 }
 0x40a   :  { %v3570_v50 = vadd.f32 %v2505_v10, %v1139_v63  ;;  %v1047_v63 = vmul.f32 %v3448_v27, %v2797_v38 }
 0x40c   :  { %4447 = vst [vmem:[#allocation18_spill] sm:$0xff] %v3570_v50 }
 0x40d   :  { %v1081_v60 = vpop.permute.xlu1 %1080 }
 0x40e   :  { %v1121_v6 = vmul.f32 %v3529_v31, %v1081_v60 }
 0x410   :  { %v1137_v59 = vadd.f32 %v1121_v6, %v1041_v26  ;;  %v1045_v26 = vmul.f32 %v3409_v20, %v2785_v23  ;;  %v3589_v6 = vld [vmem:[%s4390_s1 + $0x58] sm:$0xff] }
 0x412   :  { %v3540_v5 = vadd.f32 %v2501_v54, %v1137_v59  ;;  %v2508_v54 = vld [vmem:[%s4389_s0 + $0x50] sm:$0xff] }
 0x414   :  { %4445 = vst [vmem:[#allocation16_spill] sm:$0xff] %v3540_v5  ;;  %v1167_v49 = vpack.c.bf16 %v3540_v5, %v3535_v0 }
 0x415   :  { %v1083_v42 = vpop.permute.xlu0 %1082 }
 0x416   :  { %2349 = vmatmul.msk.bf16.gmra.mxu0 %vm118_vm0, %v1167_v49  ;;  %2373 = vmatmul.msk.bf16.gmra.mxu3 %vm118_vm0, %v1167_v49  ;;  %v1122_v4 = vmul.f32 %v3549_v9, %v1083_v42 }
 0x418   :  { %v1138_v52 = vadd.f32 %v1122_v4, %v1042_v53  ;;  %v3609_v4 = vld [vmem:[%s4390_s1 + $0x60] sm:$0xff]  ;;  %v1046_v53 = vmul.f32 %v3433_v32, %v2795_v37  ;;  %v2513_v32 = vld [vmem:[%s4389_s0 + $0x68] sm:$0xff] }
 0x41a   :  { %v3565_v62 = vadd.f32 %v2504_v1, %v1138_v52  ;;  %v3619_v1 = vld [vmem:[%s4390_s1 + $0x68] sm:$0xff] }
 0x41c   :  { %4446 = vst [vmem:[#allocation17_spill] sm:$0xff] %v3565_v62  ;;  %v1168_v2 = vpack.c.bf16 %v3570_v50, %v3565_v62 }
 0x41d   :  { %v1091_v55 = vpop.permute.xlu2 %1090 }
 0x41e   :  { %v1126_v36 = vmul.f32 %v3609_v4, %v1091_v55 }
 0x420   :  { %v1142_v52 = vadd.f32 %v1126_v36, %v1046_v53  ;;  %v4452_v36 = vld [vmem:[#allocation6_spill] sm:$0xff] }
 0x421   :  { %v1048_v53 = vmul.f32 %v3473_v13, %v4452_v36 }
 0x425   :  { %v1087_v8 = vpop.permute.xlu1 %1086 }
 0x426   :  { %2350 = vmatmul.msk.bf16.gmra.mxu0 %vm118_vm0, %v1168_v2  ;;  %2374 = vmatmul.msk.bf16.gmra.mxu3 %vm118_vm0, %v1168_v2  ;;  %v1124_v43 = vmul.f32 %v3579_v51, %v1087_v8  ;;  %v2512_v8 = vld [vmem:[%s4389_s0 + $0x60] sm:$0xff] }
 0x428   :  { %v1140_v24 = vadd.f32 %v1124_v43, %v1044_v15  ;;  %v3625_v43 = vadd.f32 %v2512_v8, %v1142_v52 }
 0x42a   :  { %v3595_v49 = vadd.f32 %v2508_v54, %v1140_v24  ;;  %4450 = vst [vmem:[#allocation21_spill] sm:$0xff] %v3625_v43 }
 0x42c   :  { %4448 = vst [vmem:[#allocation19_spill] sm:$0xff] %v3595_v49 }
 0x42d   :  { %v1089_v60 = vpop.permute.xlu0 %1088 }
 0x42e   :  { %v1125_v59 = vmul.f32 %v3589_v6, %v1089_v60 }
 0x430   :  { %v1141_v22 = vadd.f32 %v1125_v59, %v1045_v26  ;;  %v3637_v26 = vld [vmem:[%s4393_s4 + $0x4] sm:$0x7] }
 0x432   :  { %v3600_v42 = vadd.f32 %v2509_v40, %v1141_v22  ;;  %v3644_v22 = vld [vmem:[%s4390_s1 + $0x70] sm:$0xff]  ;;  %v3648_v40 = vperm.slane %v3637_v26, 0 }
 0x434   :  { %4449 = vst [vmem:[#allocation20_spill] sm:$0xff] %v3600_v42  ;;  %v1169_v20 = vpack.c.bf16 %v3600_v42, %v3595_v49 }
 0x435   :  { %v1097_v59 = vpop.permute.xlu2 %1096 }
 0x436   :  { %2351 = vmatmul.msk.bf16.gmra.mxu0 %vm118_vm0, %v1169_v20  ;;  %2375 = vmatmul.msk.bf16.gmra.mxu3 %vm118_vm0, %v1169_v20  ;;  %v3653_v20 = vld [vmem:[%s4390_s1 + $0x78] sm:$0xff] }
 0x437   :  { %v1129_v55 = vmul.f32 %v3653_v20, %v1097_v59 }
 0x43d   :  { %v1093_v7 = vpop.permute.xlu1 %1092 }
 0x43e   :  { %v1127_v10 = vmul.f32 %v3619_v1, %v1093_v7 }
 0x440   :  { %v1143_v2 = vadd.f32 %v1127_v10, %v1047_v63  ;;  %v4453_v63 = vld [vmem:[#allocation7_spill] sm:$0xff] }
 0x441   :  { %v1049_v10 = vmul.f32 %v3482_v16, %v4453_v63 }
 0x442   :  { %v3630_v15 = vadd.f32 %v2513_v32, %v1143_v2  ;;  %v1223_v27 = vpop.f32.mrf.mxu0  ;;  %v2516_v32 = vld [vmem:[%s4389_s0 + $0x70] sm:$0xff] }
 0x443   :  { %v1145_v8 = vadd.f32 %v1129_v55, %v1049_v10 }
 0x444   :  { %4451 = vst [vmem:[#allocation22_spill] sm:$0xff] %v3630_v15  ;;  %v1170_v60 = vpack.c.bf16 %v3630_v15, %v3625_v43 }
 0x445   :  { %v1095_v24 = vpop.permute.xlu0 %1094 }
 0x446   :  { %2352 = vmatmul.msk.bf16.gmra.mxu0 %vm118_vm0, %v1170_v60  ;;  %2376 = vmatmul.msk.bf16.gmra.mxu3 %vm118_vm0, %v1170_v60  ;;  %v1128_v54 = vmul.f32 %v3644_v22, %v1095_v24  ;;  %v2517_v24 = vld [vmem:[%s4389_s0 + $0x78] sm:$0xff] }
 0x447   :  { %v3671_v13 = vadd.f32 %v2517_v24, %v1145_v8 }
 0x448   :  { %v1144_v2 = vadd.f32 %v1128_v54, %v1048_v53 }
 0x449   :  { %4455 = vst [vmem:[#allocation7_spill] sm:$0xff] %v3671_v13 }
 0x44a   :  { %v1225_v7 = vpop.f32.mrf.mxu0  ;;  %v3666_v60 = vadd.f32 %v2516_v32, %v1144_v2 }
 0x44b   :  { %v3659_v52 = vadd.f32 %v1225_v7, %v3648_v40 }
 0x44c   :  { %4454 = vst [vmem:[#allocation6_spill] sm:$0xff] %v3666_v60  ;;  %v1171_v7 = vpack.c.bf16 %v3671_v13, %v3666_v60 }
 0x452   :  { %v1228_v59 = vpop.f32.mrf.mxu0 }
 0x456   :  { %2353 = vmatmul.msk.bf16.gmra.mxu0 %vm118_vm0, %v1171_v7  ;;  %2377 = vmatmul.msk.bf16.gmra.mxu3 %vm118_vm0, %v1171_v7 }
 0x45a   :  { %v1230_v16 = vpop.f32.mrf.mxu0 }
 0x45b   :  { %v3678_v54 = vadd.f32 %v1230_v16, %v3648_v40 }
 0x46a   :  { %v1233_v55 = vpop.f32.mrf.mxu0 }
 0x472   :  { %v1235_v53 = vpop.f32.mrf.mxu0 }
 0x493   :  { %v1238_v10 = vpop.f32.mrf.mxu0 }
 0x494   :  { %v3687_v0 = vadd.f32 %v1238_v10, %v3648_v40 }
 0x49b   :  { %v1240_v2 = vpop.f32.mrf.mxu0 }
 0x4a3   :  { %v1243_v32 = vpop.f32.mrf.mxu0 }
 0x4ab   :  { %v1245_v25 = vpop.f32.mrf.mxu0 }
 0x4b3   :  { %v1248_v8 = vpop.f32.mrf.mxu0 }
 0x4b4   :  { %v1249_v24 = vadd.f32 %v1248_v8, %v3648_v40 }
 0x4b6   :  { %v1273_v41 = vmax.f32 %v1249_v24, 0.0  ;;  %v4410_v24 = vmax.f32 %v3687_v0, 0.0 }
 0x4b8   :  { %1331 = vrot.lane.b32.xlu0 %v1273_v41, %s2569_s16 }
 0x4bb   :  { %v1250_v28 = vpop.f32.mrf.mxu0 }
 0x4bc   :  { %v1251_v47 = vadd.f32 %v1250_v28, %v3648_v40 }
 0x4be   :  { %v1274_v7 = vmax.f32 %v1251_v47, 0.0  ;;  %v3696_v47 = vadd.f32 %v1235_v53, %v3648_v40 }
 0x4c0   :  { %1333 = vrot.lane.b32.xlu2 %v1274_v7, %s2569_s16  ;;  %v4413_v10 = vmax.f32 %v3696_v47, 0.0 }
 0x4c3   :  { %v1253_v16 = vpop.f32.mrf.mxu0 }
 0x4c4   :  { %v1254_v19 = vadd.f32 %v1253_v16, %v3648_v40 }
 0x4c6   :  { %v1275_v45 = vmax.f32 %v1254_v19, 0.0 }
 0x4c8   :  { %1335 = vrot.lane.b32.xlu2 %v1275_v45, %s2569_s16  ;;  %v1291_v13 = vmul.f32 %v1275_v45, %v2795_v37 }
 0x4cb   :  { %v1255_v5 = vpop.f32.mrf.mxu0 }
 0x4cc   :  { %v1256_v8 = vadd.f32 %v1255_v5, %v3648_v40  ;;  %v1244_v5 = vadd.f32 %v1243_v32, %v3648_v40  ;;  %v1241_v32 = vadd.f32 %v1240_v2, %v3648_v40  ;;  %v4419_v2 = vmax.f32 %v3678_v54, 0.0 }
 0x4ce   :  { %v1276_v62 = vmax.f32 %v1256_v8, 0.0  ;;  %v3706_v8 = vadd.f32 %v1223_v27, %v3648_v40  ;;  %v1271_v50 = vmax.f32 %v1244_v5, 0.0  ;;  %v1246_v27 = vadd.f32 %v1245_v25, %v3648_v40 }
 0x4cf   :  { %v1234_v5 = vadd.f32 %v1233_v55, %v3648_v40  ;;  %v4422_v25 = vmax.f32 %v3659_v52, 0.0 }
 0x4d0   :  { %1337 = vrot.lane.b32.xlu1 %v1276_v62, %s2569_s16  ;;  %1323 = vrot.lane.b32.xlu2 %v4410_v24, %s2569_s16 }
 0x4d1   :  { %v1267_v42 = vmax.f32 %v1234_v5, 0.0 }
 0x4d3   :  { %v1258_v28 = vpop.f32.mrf.mxu0 }
 0x4d4   :  { %v1259_v19 = vadd.f32 %v1258_v28, %v3648_v40  ;;  %v4415_v28 = vmax.f32 %v3706_v8, 0.0 }
 0x4d6   :  { %v1277_v16 = vmax.f32 %v1259_v19, 0.0  ;;  %v1270_v19 = vmax.f32 %v1241_v32, 0.0  ;;  %v1289_v32 = vmul.f32 %v1273_v41, %v2783_v21 }
 0x4d8   :  { %1339 = vrot.lane.b32.xlu1 %v1277_v16, %s2569_s16  ;;  %1321 = vrot.lane.b32.xlu2 %v4413_v10, %s2569_s16  ;;  %v1272_v10 = vmax.f32 %v1246_v27, 0.0  ;;  %v1290_v27 = vmul.f32 %v1274_v7, %v2785_v23 }
 0x4db   :  { %v1260_v24 = vpop.f32.mrf.mxu0 }
 0x4dc   :  { %v1261_v53 = vadd.f32 %v1260_v24, %v3648_v40  ;;  %v3720_v24 = vadd.f32 %v1228_v59, %v3648_v40 }
 0x4de   :  { %v1278_v49 = vmax.f32 %v1261_v53, 0.0  ;;  %v4416_v53 = vmax.f32 %v3720_v24, 0.0 }
 0x4e0   :  { %1341 = vrot.lane.b32.xlu0 %v1278_v49, %s2569_s16  ;;  %1327 = vrot.lane.b32.xlu1 %v1271_v50, %s2569_s16 }
 0x4e1   :  { %1311 = vrot.lane.b32.xlu2 %v4415_v28, %s2569_s16 }
 0x4e8   :  { %1329 = vrot.lane.b32.xlu0 %v1272_v10, %s2569_s16  ;;  %1325 = vrot.lane.b32.xlu1 %v1270_v19, %s2569_s16 }
 0x4f0   :  { %1319 = vrot.lane.b32.xlu0 %v1267_v42, %s2569_s16  ;;  %1315 = vrot.lane.b32.xlu1 %v4416_v53, %s2569_s16 }
 0x4f8   :  { %1317 = vrot.lane.b32.xlu0 %v4419_v2, %s2569_s16  ;;  %1313 = vrot.lane.b32.xlu1 %v4422_v25, %s2569_s16  ;;  %v1292_v25 = vmul.f32 %v1276_v62, %v2797_v38 }
 0x51a   :  { %v1334_v40 = vpop.permute.xlu2 %1333 }
 0x51b   :  { %v1370_v59 = vmul.f32 %v3589_v6, %v1334_v40 }
 0x51d   :  { %v1386_v28 = vadd.f32 %v1370_v59, %v1290_v27 }
 0x522   :  { %v1336_v15 = vpop.permute.xlu2 %1335 }
 0x523   :  { %v1371_v2 = vmul.f32 %v3609_v4, %v1336_v15 }
 0x525   :  { %v1387_v40 = vadd.f32 %v1371_v2, %v1291_v13  ;;  %v1287_v13 = vmul.f32 %v1271_v50, %v2819_v29  ;;  %v4456_v50 = vmax.f32 %v3687_v0, 0.0 }
 0x52a   :  { %v1332_v55 = vpop.permute.xlu0 %1331  ;;  %v1324_v15 = vpop.permute.xlu2 %1323 }
 0x52b   :  { %v1369_v5 = vmul.f32 %v3579_v51, %v1332_v55 }
 0x52d   :  { %v1385_v53 = vadd.f32 %v1369_v5, %v1289_v32  ;;  %v1286_v32 = vmul.f32 %v1270_v19, %v2841_v46  ;;  %v4457_v19 = vmax.f32 %v3696_v47, 0.0 }
 0x52f   :  { %v1396_v43 = vpack.c.bf16 %v1386_v28, %v1385_v53  ;;  %v1293_v28 = vmul.f32 %v1277_v16, %v4452_v36  ;;  %v1294_v53 = vmul.f32 %v1278_v49, %v4453_v63 }
 0x532   :  { %v1322_v49 = vpop.permute.xlu2 %1321 }
 0x542   :  { %v1338_v60 = vpop.permute.xlu1 %1337 }
 0x543   :  { %v1372_v6 = vmul.f32 %v3619_v1, %v1338_v60 }
 0x545   :  { %v1388_v18 = vadd.f32 %v1372_v6, %v1292_v25 }
 0x547   :  { %v1397_v41 = vpack.c.bf16 %v1388_v18, %v1387_v40  ;;  %v1283_v40 = vmul.f32 %v1267_v42, %v2843_v56 }
 0x54a   :  { %v1340_v21 = vpop.permute.xlu1 %1339 }
 0x54b   :  { %v1373_v7 = vmul.f32 %v3644_v22, %v1340_v21  ;;  %v1288_v21 = vmul.f32 %v1272_v10, %v2821_v30  ;;  %v1285_v10 = vmul.f32 %v4456_v50, %v2839_v58 }
 0x54d   :  { %v1389_v45 = vadd.f32 %v1373_v7, %v1293_v28 }
 0x552   :  { %v1342_v51 = vpop.permute.xlu0 %1341  ;;  %v1328_v59 = vpop.permute.xlu1 %1327 }
 0x553   :  { %v1374_v4 = vmul.f32 %v3653_v20, %v1342_v51  ;;  %v1367_v1 = vmul.f32 %v3549_v9, %v1328_v59  ;;  %v1365_v9 = vmul.f32 %v3519_v34, %v1324_v15  ;;  %v1284_v34 = vmul.f32 %v4457_v19, %v2845_v48  ;;  %v1312_v59 = vpop.permute.xlu2 %1311 }
 0x555   :  { %v1390_v55 = vadd.f32 %v1374_v4, %v1294_v53  ;;  %v1383_v16 = vadd.f32 %v1367_v1, %v1287_v13 }
 0x557   :  { %v1398_v62 = vpack.c.bf16 %v1390_v55, %v1389_v45  ;;  %v4460_v55 = vmax.f32 %v3659_v52, 0.0  ;;  %v2520_v52 = vld [vmem:[%s4391_s2 + $0x10] sm:$0xff] }
 0x559   :  { %1399 = vmatpush.bf16.msrb.mxu2 %v1398_v62  ;;  %v1359_v62 = vmul.f32 %v3419_v57, %v1312_v59  ;;  %v2519_v57 = vld [vmem:[%s4391_s2 + $0x8] sm:$0xff] }
 0x55a   :  { %v1330_v60 = vpop.permute.xlu0 %1329  ;;  %v1326_v18 = vpop.permute.xlu1 %1325 }
 0x55b   :  { %v1368_v22 = vmul.f32 %v3555_v35, %v1330_v60  ;;  %v1366_v20 = vmul.f32 %v3529_v31, %v1326_v18  ;;  %v1364_v31 = vmul.f32 %v3499_v17, %v1322_v49  ;;  %v4459_v17 = vmax.f32 %v3678_v54, 0.0  ;;  %v2525_v49 = vld [vmem:[%s4391_s2 + $0x38] sm:$0xff] }
 0x55c   :  { %v4461_v60 = vmax.f32 %v3706_v8, 0.0  ;;  %v2521_v8 = vld [vmem:[%s4391_s2 + $0x18] sm:$0xff] }
 0x55d   :  { %v1384_v25 = vadd.f32 %v1368_v22, %v1288_v21  ;;  %1400 = vmatpush.bf16.msrb.mxu2 %v1397_v41  ;;  %v1382_v6 = vadd.f32 %v1366_v20, %v1286_v32  ;;  %v1381_v41 = vadd.f32 %v1365_v9, %v1285_v10  ;;  %v1380_v51 = vadd.f32 %v1364_v31, %v1284_v34  ;;  %v2522_v22 = vld [vmem:[%s4391_s2 + $0x20] sm:$0xff] }
 0x55e   :  { %v1282_v4 = vmul.f32 %v4459_v17, %v2864_v33  ;;  %v1279_v18 = vmul.f32 %v4461_v60, %v2881_v11 }
 0x55f   :  { %v1395_v2 = vpack.c.bf16 %v1384_v25, %v1383_v16  ;;  %v1394_v7 = vpack.c.bf16 %v1382_v6, %v1381_v41  ;;  %v2523_v16 = vld [vmem:[%s4391_s2 + $0x28] sm:$0xff]  ;;  %v2524_v25 = vld [vmem:[%s4391_s2 + $0x30] sm:$0xff] }
 0x560   :  { %v1375_v21 = vadd.f32 %v1359_v62, %v1279_v18 }
 0x561   :  { %1401 = vmatpush.bf16.msrb.mxu2 %v1396_v43 }
 0x562   :  { %v1320_v27 = vpop.permute.xlu0 %1319  ;;  %v1316_v5 = vpop.permute.xlu1 %1315 }
 0x563   :  { %v1363_v35 = vmul.f32 %v3489_v14, %v1320_v27  ;;  %v1361_v0 = vmul.f32 %v3459_v61, %v1316_v5  ;;  %v4458_v14 = vmax.f32 %v3720_v24, 0.0  ;;  %v1280_v61 = vmul.f32 %v4460_v55, %v2883_v12 }
 0x565   :  { %1402 = vmatpush.bf16.msrb.mxu2 %v1395_v2  ;;  %v1379_v43 = vadd.f32 %v1363_v35, %v1283_v40  ;;  %v1281_v28 = vmul.f32 %v4458_v14, %v2862_v44 }
 0x567   :  { %v1393_v45 = vpack.c.bf16 %v1380_v51, %v1379_v43  ;;  %v1377_v1 = vadd.f32 %v1361_v0, %v1281_v28 }
 0x569   :  { %1403 = vmatpush.bf16.msrb.mxu2 %v1394_v7 }
 0x56a   :  { %v1318_v42 = vpop.permute.xlu0 %1317  ;;  %v1314_v53 = vpop.permute.xlu1 %1313 }
 0x56b   :  { %v1362_v47 = vmul.f32 %v3444_v39, %v1318_v42  ;;  %v1360_v15 = vmul.f32 %v3405_v3, %v1314_v53  ;;  %v2518_v3 = vld [vmem:[%s4391_s2] sm:$0xff]  ;;  %v3846_v53 = vperm.slane %v3637_v26, 1 }
 0x56d   :  { %v1378_v24 = vadd.f32 %v1362_v47, %v1282_v4  ;;  %1404 = vmatpush.bf16.msrb.mxu2 %v1393_v45  ;;  %v1376_v54 = vadd.f32 %v1360_v15, %v1280_v61 }
 0x56f   :  { %v1392_v13 = vpack.c.bf16 %v1378_v24, %v1377_v1  ;;  %v1391_v39 = vpack.c.bf16 %v1376_v54, %v1375_v21 }
 0x571   :  { %1405 = vmatpush.bf16.msrb.mxu2 %v1392_v13 }
 0x575   :  { %1406 = vmatpush.bf16.msrb.mxu2 %v1391_v39 }
 0x578   :  { %1407 = vmatmul.bf16.vlgmr.msrb.gmra.mxu2 %v2518_v3 }
 0x588   :  { %1412 = vmatmul.bf16.gmra.mxu2 %v2519_v57 }
 0x598   :  { %1417 = vmatmul.bf16.gmra.mxu2 %v2520_v52 }
 0x5a8   :  { %1422 = vmatmul.bf16.gmra.mxu2 %v2521_v8 }
 0x5b8   :  { %1427 = vmatmul.bf16.gmra.mxu2 %v2522_v22 }
 0x5c8   :  { %1432 = vmatmul.bf16.gmra.mxu2 %v2523_v16 }
 0x5d8   :  { %1437 = vmatmul.bf16.gmra.mxu2 %v2524_v25 }
 0x5e8   :  { %1442 = vmatmul.bf16.gmra.mxu2 %v2525_v49 }
 0x5fb   :  { %v3804_v20 = vpop.f32.mrf.mxu2 }
 0x5fc   :  { %v1448_v2 = vsel %vm118_vm0, %v3804_v20, 0.0  ;;  %v1512_v32 = vmul.f32 %v3804_v20, %v3804_v20 }
 0x5fd   :  { %1449 = vadd.xlane.f32.xlu0 %v1448_v2 }
 0x5fe   :  { %v1528_v9 = vsel %vm118_vm0, %v1512_v32, 0.0 }
 0x5ff   :  { %1529 = vadd.xlane.f32.xlu1 %v1528_v9 }
 0x603   :  { %v3811_v27 = vpop.f32.mrf.mxu2 }
 0x604   :  { %v1451_v5 = vsel %vm118_vm0, %v3811_v27, 0.0  ;;  %v1513_v50 = vmul.f32 %v3811_v27, %v3811_v27 }
 0x605   :  { %1452 = vadd.xlane.f32.xlu2 %v1451_v5 }
 0x606   :  { %v1531_v10 = vsel %vm118_vm0, %v1513_v50, 0.0 }
 0x607   :  { %1532 = vadd.xlane.f32.xlu0 %v1531_v10 }
 0x60b   :  { %v3818_v6 = vpop.f32.mrf.mxu2 }
 0x60c   :  { %v1454_v35 = vsel %vm118_vm0, %v3818_v6, 0.0  ;;  %v1514_v40 = vmul.f32 %v3818_v6, %v3818_v6 }
 0x60d   :  { %1455 = vadd.xlane.f32.xlu2 %v1454_v35 }
 0x60e   :  { %v1534_v41 = vsel %vm118_vm0, %v1514_v40, 0.0 }
 0x60f   :  { %1535 = vadd.xlane.f32.xlu0 %v1534_v41 }
 0x613   :  { %v3825_v31 = vpop.f32.mrf.mxu2 }
 0x614   :  { %v1457_v19 = vsel %vm118_vm0, %v3825_v31, 0.0  ;;  %v1515_v34 = vmul.f32 %v3825_v31, %v3825_v31 }
 0x615   :  { %1458 = vadd.xlane.f32.xlu1 %v1457_v19 }
 0x616   :  { %v1537_v43 = vsel %vm118_vm0, %v1515_v34, 0.0 }
 0x617   :  { %1538 = vadd.xlane.f32.xlu2 %v1537_v43 }
 0x61b   :  { %v3832_v7 = vpop.f32.mrf.mxu2 }
 0x61c   :  { %v1460_v51 = vsel %vm118_vm0, %v3832_v7, 0.0  ;;  %v1516_v59 = vmul.f32 %v3832_v7, %v3832_v7 }
 0x61d   :  { %1461 = vadd.xlane.f32.xlu0 %v1460_v51 }
 0x61e   :  { %v1540_v0 = vsel %vm118_vm0, %v1516_v59, 0.0  ;;  %v4462_v59 = vld [vmem:[#allocation8_spill] sm:$0xff] }
 0x623   :  { %v3839_v14 = vpop.f32.mrf.mxu2 }
 0x624   :  { %v1463_v28 = vsel %vm118_vm0, %v3839_v14, 0.0  ;;  %v1517_v42 = vmul.f32 %v3839_v14, %v3839_v14 }
 0x625   :  { %1541 = vadd.xlane.f32.xlu0 %v1540_v0  ;;  %1464 = vadd.xlane.f32.xlu2 %v1463_v28 }
 0x626   :  { %v1543_v17 = vsel %vm118_vm0, %v1517_v42, 0.0 }
 0x62b   :  { %v3849_v4 = vpop.f32.mrf.mxu2 }
 0x62c   :  { %v1466_v47 = vsel %vm118_vm0, %v3849_v4, 0.0  ;;  %v1518_v8 = vmul.f32 %v3849_v4, %v3849_v4 }
 0x62d   :  { %1544 = vadd.xlane.f32.xlu2 %v1543_v17  ;;  %1467 = vadd.xlane.f32.xlu0 %v1466_v47 }
 0x62e   :  { %1850 = vrot.lane.b32.xlu1 %v3846_v53, %s2569_s16  ;;  %v1546_v25 = vsel %vm118_vm0, %v1518_v8, 0.0 }
 0x633   :  { %v3855_v15 = vpop.f32.mrf.mxu2 }
 0x634   :  { %v1469_v45 = vsel %vm118_vm0, %v3855_v15, 0.0  ;;  %v1519_v26 = vmul.f32 %v3855_v15, %v3855_v15 }
 0x635   :  { %1470 = vadd.xlane.f32.xlu2 %v1469_v45 }
 0x636   :  { %v1549_v55 = vsel %vm118_vm0, %v1519_v26, 0.0 }
 0x637   :  { %1550 = vadd.xlane.f32.xlu0 %v1549_v55 }
 0x63b   :  { %v3862_v61 = vpop.f32.mrf.mxu2 }
 0x63c   :  { %v1472_v62 = vsel %vm118_vm0, %v3862_v61, 0.0  ;;  %v1520_v1 = vmul.f32 %v3862_v61, %v3862_v61 }
 0x63d   :  { %1473 = vadd.xlane.f32.xlu2 %v1472_v62 }
 0x63e   :  { %v1552_v24 = vsel %vm118_vm0, %v1520_v1, 0.0 }
 0x643   :  { %v3869_v60 = vpop.f32.mrf.mxu2 }
 0x644   :  { %v1475_v18 = vsel %vm118_vm0, %v3869_v60, 0.0  ;;  %v1521_v54 = vmul.f32 %v3869_v60, %v3869_v60 }
 0x645   :  { %1553 = vadd.xlane.f32.xlu2 %v1552_v24  ;;  %1476 = vadd.xlane.f32.xlu0 %v1475_v18 }
 0x646   :  { %v1555_v13 = vsel %vm118_vm0, %v1521_v54, 0.0 }
 0x64b   :  { %v3876_v21 = vpop.f32.mrf.mxu2 }
 0x64c   :  { %v1478_v39 = vsel %vm118_vm0, %v3876_v21, 0.0  ;;  %v1522_v3 = vmul.f32 %v3876_v21, %v3876_v21 }
 0x64d   :  { %1556 = vadd.xlane.f32.xlu0 %v1555_v13  ;;  %1479 = vadd.xlane.f32.xlu2 %v1478_v39 }
 0x64e   :  { %v1558_v57 = vsel %vm118_vm0, %v1522_v3, 0.0 }
 0x653   :  { %v3883_v52 = vpop.f32.mrf.mxu2 }
 0x654   :  { %v1481_v22 = vsel %vm118_vm0, %v3883_v52, 0.0  ;;  %v1523_v16 = vmul.f32 %v3883_v52, %v3883_v52 }
 0x655   :  { %1559 = vadd.xlane.f32.xlu2 %v1558_v57  ;;  %1482 = vadd.xlane.f32.xlu0 %v1481_v22  ;;  %v2412_v57 = vld [vmem:[%s4392_s3 + $0x48] sm:$0xff] }
 0x656   :  { %v1561_v49 = vsel %vm118_vm0, %v1523_v16, 0.0  ;;  %1990 = vmatpush.bf16.msrb.mxu1 %v2412_v57 }
 0x658   :  { %1547 = vadd.xlane.f32.xlu1 %v1546_v25 }
 0x65b   :  { %v3893_v2 = vpop.f32.mrf.mxu2 }
 0x65c   :  { %v1484_v32 = vsel %vm118_vm0, %v3893_v2, 0.0  ;;  %v1524_v9 = vmul.f32 %v3893_v2, %v3893_v2 }
 0x65d   :  { %1562 = vadd.xlane.f32.xlu0 %v1561_v49  ;;  %1485 = vadd.xlane.f32.xlu2 %v1484_v32  ;;  %v2411_v32 = vld [vmem:[%s4392_s3 + $0x40] sm:$0xff] }
 0x65e   :  { %v1564_v5 = vsel %vm118_vm0, %v1524_v9, 0.0  ;;  %1991 = vmatpush.bf16.msrb.mxu1 %v2411_v32 }
 0x660   :  { %1565 = vadd.xlane.f32.xlu1 %v1564_v5 }
 0x663   :  { %v3900_v50 = vpop.f32.mrf.mxu2 }
 0x664   :  { %v1487_v10 = vsel %vm118_vm0, %v3900_v50, 0.0  ;;  %v1525_v35 = vmul.f32 %v3900_v50, %v3900_v50 }
 0x665   :  { %1488 = vadd.xlane.f32.xlu0 %v1487_v10 }
 0x666   :  { %v1567_v40 = vsel %vm118_vm0, %v1525_v35, 0.0 }
 0x667   :  { %1568 = vadd.xlane.f32.xlu2 %v1567_v40 }
 0x66b   :  { %v3907_v41 = vpop.f32.mrf.mxu2 }
 0x66c   :  { %v1490_v19 = vsel %vm118_vm0, %v3907_v41, 0.0  ;;  %v1526_v34 = vmul.f32 %v3907_v41, %v3907_v41 }
 0x66d   :  { %1491 = vadd.xlane.f32.xlu0 %v1490_v19 }
 0x66e   :  { %v1570_v43 = vsel %vm118_vm0, %v1526_v34, 0.0 }
 0x66f   :  { %1571 = vadd.xlane.f32.xlu2 %v1570_v43 }
 0x670   :  { %v1450_v51 = vpop.xlane.xlu0 %1449 }
 0x671   :  { %v3915_v0 = vmul.f32 %v1450_v51, %v4462_v59 }
 0x672   :  { %v1530_v28 = vpop.xlane.xlu1 %1529 }
 0x673   :  { %v1608_v42 = vmul.f32 %v3915_v0, %v3915_v0  ;;  %v1576_v17 = vmul.f32 %v1530_v28, %v4462_v59  ;;  %v3920_v47 = vpop.f32.mrf.mxu2 }
 0x674   :  { %v1493_v45 = vsel %vm118_vm0, %v3920_v47, 0.0  ;;  %v1527_v26 = vmul.f32 %v3920_v47, %v3920_v47 }
 0x675   :  { %v1624_v55 = vsub.f32 %v1576_v17, %v1608_v42  ;;  %1494 = vadd.xlane.f32.xlu1 %v1493_v45 }
 0x676   :  { %v1573_v62 = vsel %vm118_vm0, %v1527_v26, 0.0 }
 0x677   :  { %v1640_v1 = vadd.f32 1e-05, %v1624_v55  ;;  %1574 = vadd.xlane.f32.xlu0 %v1573_v62 }
 0x678   :  { %v1453_v24 = vpop.xlane.xlu2 %1452 }
 0x679   :  { %v3928_v18 = vmul.f32 %v1453_v24, %v4462_v59  ;;  %2453 = vrsqrt.f32 %v1640_v1  ;;  %vm1662_vm7 = vweird.f32 %v1640_v1 }
 0x67a   :  { %v1533_v54 = vpop.xlane.xlu0 %1532 }
 0x67b   :  { %v1609_v13 = vmul.f32 %v3928_v18, %v3928_v18  ;;  %v1577_v39 = vmul.f32 %v1533_v54, %v4462_v59 }
 0x67d   :  { %v1625_v3 = vsub.f32 %v1577_v39, %v1609_v13 }
 0x67f   :  { %v1641_v8 = vadd.f32 1e-05, %v1625_v3  ;;  %v2454_v16 = vpop.eup %2453 }
 0x680   :  { %v1456_v22 = vpop.xlane.xlu2 %1455  ;;  %v1657_v10 = vmul.f32 %v2454_v16, %v1640_v1  ;;  %vm1663_vm5 = vweird.f32 %v2454_v16  ;;  %v1592_v1 = vsub.f32 %v3804_v20, %v3915_v0 }
 0x681   :  { %2455 = vrsqrt.f32 %v1641_v8  ;;  %v3937_v25 = vmul.f32 %v1456_v22, %v4462_v59  ;;  %vm1664_vm8 = vmor %vm1662_vm7, %vm1663_vm5  ;;  %vm1672_vm9 = vweird.f32 %v1641_v8 }
 0x682   :  { %v1536_v49 = vpop.xlane.xlu0 %1535  ;;  %v1658_v34 = vmul.f32 %v2454_v16, %v1657_v10 }
 0x683   :  { %v1610_v9 = vmul.f32 %v3937_v25, %v3937_v25  ;;  %v1578_v5 = vmul.f32 %v1536_v49, %v4462_v59 }
 0x684   :  { %v1659_v55 = vmul.f32 0.5, %v1658_v34 }
 0x685   :  { %v1626_v35 = vsub.f32 %v1578_v5, %v1610_v9 }
 0x686   :  { %v1660_v13 = vsub.f32 1.5, %v1659_v55 }
 0x687   :  { %v2456_v40 = vpop.eup %2455  ;;  %v3945_v19 = vadd.f32 1e-05, %v1626_v35 }
 0x688   :  { %v1667_v43 = vmul.f32 %v2456_v40, %v1641_v8  ;;  %v1459_v51 = vpop.xlane.xlu1 %1458  ;;  %v1661_v22 = vmul.f32 %v2454_v16, %v1660_v13  ;;  %vm1673_vm6 = vweird.f32 %v2456_v40 }
 0x689   :  { %v3948_v28 = vmul.f32 %v1459_v51, %v4462_v59  ;;  %2457 = vrsqrt.f32 %v3945_v19  ;;  %vm1674_vm10 = vmor %vm1672_vm9, %vm1673_vm6  ;;  %vm1682_vm15 = vweird.f32 %v3945_v19 }
 0x68a   :  { %v1668_v42 = vmul.f32 %v2456_v40, %v1667_v43  ;;  %v1539_v17 = vpop.xlane.xlu2 %1538  ;;  %v1665_v35 = vsel %vm1664_vm8, %v2454_v16, %v1661_v22 }
 0x68b   :  { %v1611_v45 = vmul.f32 %v3948_v28, %v3948_v28  ;;  %v1579_v26 = vmul.f32 %v1539_v17, %v4462_v59  ;;  %v1816_v55 = vmul.f32 %v1665_v35, %v1592_v1 }
 0x68c   :  { %v1669_v62 = vmul.f32 0.5, %v1668_v42 }
 0x68d   :  { %v1627_v24 = vsub.f32 %v1579_v26, %v1611_v45  ;;  %v1593_v45 = vsub.f32 %v3811_v27, %v3928_v18  ;;  %v1833_v0 = vmul.f32 %v3846_v53, %v1816_v55 }
 0x68e   :  { %v1670_v39 = vsub.f32 1.5, %v1669_v62 }
 0x68f   :  { %v1643_v54 = vadd.f32 1e-05, %v1627_v24  ;;  %v3954_v57 = vpop.eup %2457 }
 0x690   :  { %v1462_v3 = vpop.xlane.xlu0 %1461  ;;  %v1671_v49 = vmul.f32 %v2456_v40, %v1670_v39  ;;  %v1677_v32 = vmul.f32 %v3954_v57, %v3945_v19  ;;  %vm1683_vm14 = vweird.f32 %v3954_v57 }
 0x691   :  { %2459 = vrsqrt.f32 %v1643_v54  ;;  %v3959_v9 = vmul.f32 %v1462_v3, %v4462_v59  ;;  %vm1692_vm12 = vweird.f32 %v1643_v54  ;;  %vm1684_vm1 = vmor %vm1682_vm15, %vm1683_vm14 }
 0x692   :  { %v1675_v34 = vsel %vm1674_vm10, %v2456_v40, %v1671_v49  ;;  %v1678_v43 = vmul.f32 %v3954_v57, %v1677_v32 }
 0x693   :  { %v1612_v10 = vmul.f32 %v3959_v9, %v3959_v9  ;;  %v1817_v62 = vmul.f32 %v1675_v34, %v1593_v45  ;;  %v1595_v45 = vsub.f32 %v3825_v31, %v3948_v28 }
 0x694   :  { %v1679_v13 = vmul.f32 0.5, %v1678_v43 }
 0x695   :  { %v1834_v27 = vmul.f32 %v3846_v53, %v1817_v62 }
 0x696   :  { %v1680_v18 = vsub.f32 1.5, %v1679_v13 }
 0x697   :  { %v2460_v5 = vpop.eup %2459 }
 0x698   :  { %v1687_v51 = vmul.f32 %v2460_v5, %v1643_v54  ;;  %v1542_v42 = vpop.xlane.xlu0 %1541  ;;  %v1465_v17 = vpop.xlane.xlu2 %1464  ;;  %vm1693_vm11 = vweird.f32 %v2460_v5 }
 0x699   :  { %v1580_v8 = vmul.f32 %v1542_v42, %v4462_v59  ;;  %v3970_v39 = vmul.f32 %v1465_v17, %v4462_v59  ;;  %vm1694_vm13 = vmor %vm1692_vm12, %vm1693_vm11  ;;  %v1681_v42 = vmul.f32 %v3954_v57, %v1680_v18 }
 0x69a   :  { %v1688_v26 = vmul.f32 %v2460_v5, %v1687_v51 }
 0x69b   :  { %v1628_v24 = vsub.f32 %v1580_v8, %v1612_v10  ;;  %v1613_v20 = vmul.f32 %v3970_v39, %v3970_v39  ;;  %v1685_v55 = vsel %vm1684_vm1, %v3954_v57, %v1681_v42 }
 0x69c   :  { %v1689_v16 = vmul.f32 0.5, %v1688_v26 }
 0x69d   :  { %v1644_v40 = vadd.f32 1e-05, %v1628_v24 }
 0x69e   :  { %v1690_v3 = vsub.f32 1.5, %v1689_v16 }
 0x69f   :  { %2461 = vrsqrt.f32 %v1644_v40  ;;  %vm1702_vm2 = vweird.f32 %v1644_v40 }
 0x6a0   :  { %v1691_v22 = vmul.f32 %v2460_v5, %v1690_v3  ;;  %v3976_v49 = vpop.permute.xlu1 %1850  ;;  %v1545_v32 = vpop.xlane.xlu2 %1544 }
 0x6a1   :  { %v1581_v10 = vmul.f32 %v1545_v32, %v4462_v59  ;;  %v1853_v35 = vadd.f32 %v3976_v49, %v1833_v0  ;;  %v1854_v34 = vadd.f32 %v3976_v49, %v1834_v27  ;;  %v1468_v24 = vpop.xlane.xlu0 %1467 }
 0x6a2   :  { %v1695_v17 = vsel %vm1694_vm13, %v2460_v5, %v1691_v22  ;;  %v1594_v5 = vsub.f32 %v3818_v6, %v3937_v25 }
 0x6a3   :  { %v1629_v43 = vsub.f32 %v1581_v10, %v1613_v20  ;;  %v1869_v51 = vpack.c.bf16 %v1854_v34, %v1853_v35  ;;  %v1819_v54 = vmul.f32 %v1695_v17, %v1595_v45  ;;  %v1596_v45 = vsub.f32 %v3832_v7, %v3959_v9 }
 0x6a4   :  { %v1818_v3 = vmul.f32 %v1685_v55, %v1594_v5  ;;  %v4029_v35 = vmul.f32 %v1468_v24, %v4462_v59 }
 0x6a5   :  { %v2462_v1 = vpop.eup %2461  ;;  %v1645_v8 = vadd.f32 1e-05, %v1629_v43  ;;  %2386 = vmatmul.msk.bf16.vlgmr.msrb.gmra.mxu1 %vm118_vm0, %v1869_v51  ;;  %v1836_v31 = vmul.f32 %v3846_v53, %v1819_v54 }
 0x6a6   :  { %v1697_v26 = vmul.f32 %v2462_v1, %v1644_v40  ;;  %v1835_v19 = vmul.f32 %v3846_v53, %v1818_v3  ;;  %vm1703_vm3 = vweird.f32 %v2462_v1 }
 0x6a7   :  { %2463 = vrsqrt.f32 %v1645_v8  ;;  %v1856_v27 = vadd.f32 %v3976_v49, %v1836_v31  ;;  %vm3997_vm4 = vmor %vm1702_vm2, %vm1703_vm3  ;;  %vm1712_vm5 = vweird.f32 %v1645_v8 }
 0x6a8   :  { %v1698_v62 = vmul.f32 %v2462_v1, %v1697_v26  ;;  %v1471_v13 = vpop.xlane.xlu2 %1470  ;;  %v1855_v6 = vadd.f32 %v3976_v49, %v1835_v19 }
 0x6a9   :  { %v3994_v18 = vmul.f32 %v1471_v13, %v4462_v59 }
 0x6aa   :  { %v1699_v16 = vmul.f32 0.5, %v1698_v62  ;;  %v1551_v22 = vpop.xlane.xlu0 %1550  ;;  %v1870_v34 = vpack.c.bf16 %v1856_v27, %v1855_v6 }
 0x6ab   :  { %v1615_v40 = vmul.f32 %v3994_v18, %v3994_v18  ;;  %v1583_v51 = vmul.f32 %v1551_v22, %v4462_v59 }
 0x6ac   :  { %v1700_v20 = vsub.f32 1.5, %v1699_v16 }
 0x6ad   :  { %v2464_v28 = vpop.eup %2463  ;;  %v1631_v54 = vsub.f32 %v1583_v51, %v1615_v40  ;;  %v1614_v40 = vmul.f32 %v4029_v35, %v4029_v35 }
 0x6ae   :  { %v1707_v0 = vmul.f32 %v2464_v28, %v1645_v8  ;;  %v1701_v25 = vmul.f32 %v2462_v1, %v1700_v20  ;;  %vm1713_vm6 = vweird.f32 %v2464_v28  ;;  %v1597_v8 = vsub.f32 %v3839_v14, %v3970_v39 }
 0x6af   :  { %vm1714_vm7 = vmor %vm1712_vm5, %vm1713_vm6  ;;  %v1647_v3 = vadd.f32 1e-05, %v1631_v54 }
 0x6b0   :  { %v1708_v57 = vmul.f32 %v2464_v28, %v1707_v0  ;;  %v1474_v32 = vpop.xlane.xlu2 %1473  ;;  %v1705_v42 = vsel %vm3997_vm4, %v2462_v1, %v1701_v25 }
 0x6b1   :  { %v1820_v13 = vmul.f32 %v1705_v42, %v1596_v45  ;;  %2465 = vrsqrt.f32 %v1647_v3  ;;  %v4019_v39 = vmul.f32 %v1474_v32, %v4462_v59  ;;  %vm1732_vm8 = vweird.f32 %v1647_v3 }
 0x6b2   :  { %v1709_v10 = vmul.f32 0.5, %v1708_v57 }
 0x6b3   :  { %v1837_v31 = vmul.f32 %v3846_v53, %v1820_v13  ;;  %v1616_v27 = vmul.f32 %v4019_v39, %v4019_v39 }
 0x6b4   :  { %v1710_v43 = vsub.f32 1.5, %v1709_v10 }
 0x6b5   :  { %2387 = vmatmul.msk.bf16.gmra.mxu1 %vm118_vm0, %v1870_v34  ;;  %v1857_v14 = vadd.f32 %v3976_v49, %v1837_v31 }
 0x6b6   :  { %v1711_v17 = vmul.f32 %v2464_v28, %v1710_v43 }
 0x6b7   :  { %v2466_v22 = vpop.eup %2465 }
 0x6b8   :  { %v1715_v26 = vsel %vm1714_vm7, %v2464_v28, %v1711_v17  ;;  %v1477_v55 = vpop.xlane.xlu0 %1476  ;;  %v1554_v62 = vpop.xlane.xlu2 %1553  ;;  %v1727_v32 = vmul.f32 %v2466_v22, %v1647_v3  ;;  %vm1733_vm9 = vweird.f32 %v2466_v22 }
 0x6b9   :  { %v1821_v5 = vmul.f32 %v1715_v26, %v1597_v8  ;;  %v4015_v7 = vmul.f32 %v1477_v55, %v4462_v59  ;;  %v1584_v57 = vmul.f32 %v1554_v62, %v4462_v59  ;;  %vm4060_vm10 = vmor %vm1732_vm8, %vm1733_vm9 }
 0x6ba   :  { %v1728_v17 = vmul.f32 %v2466_v22, %v1727_v32 }
 0x6bb   :  { %v1838_v16 = vmul.f32 %v3846_v53, %v1821_v5  ;;  %v1617_v28 = vmul.f32 %v4015_v7, %v4015_v7  ;;  %v1632_v25 = vsub.f32 %v1584_v57, %v1616_v27 }
 0x6bc   :  { %v1729_v55 = vmul.f32 0.5, %v1728_v17 }
 0x6bd   :  { %v1858_v1 = vadd.f32 %v3976_v49, %v1838_v16  ;;  %v4035_v51 = vadd.f32 1e-05, %v1632_v25 }
 0x6bf   :  { %v1871_v19 = vpack.c.bf16 %v1858_v1, %v1857_v14  ;;  %vm1742_vm14 = vweird.f32 %v4035_v51 }
 0x6c0   :  { %v1557_v9 = vpop.xlane.xlu0 %1556  ;;  %v1480_v0 = vpop.xlane.xlu2 %1479 }
 0x6c1   :  { %v1585_v20 = vmul.f32 %v1557_v9, %v4462_v59  ;;  %v4044_v62 = vmul.f32 %v1480_v0, %v4462_v59  ;;  %v1730_v9 = vsub.f32 1.5, %v1729_v55 }
 0x6c3   :  { %v1633_v6 = vsub.f32 %v1585_v20, %v1617_v28  ;;  %v1618_v31 = vmul.f32 %v4044_v62, %v4044_v62  ;;  %v1731_v57 = vmul.f32 %v2466_v22, %v1730_v9 }
 0x6c5   :  { %2388 = vmatmul.msk.bf16.gmra.mxu1 %vm118_vm0, %v1871_v19  ;;  %v4031_v34 = vadd.f32 1e-05, %v1633_v6  ;;  %v1735_v17 = vsel %vm4060_vm10, %v2466_v22, %v1731_v57 }
 0x6c7   :  { %2467 = vrsqrt.f32 %v4031_v34  ;;  %vm1752_vm1 = vweird.f32 %v4031_v34 }
 0x6c8   :  { %v1483_v10 = vpop.xlane.xlu0 %1482  ;;  %v1560_v45 = vpop.xlane.xlu2 %1559  ;;  %2469 = vrsqrt.f32 %v4035_v51 }
 0x6c9   :  { %v4041_v24 = vmul.f32 %v1483_v10, %v4462_v59  ;;  %v1586_v1 = vmul.f32 %v1560_v45, %v4462_v59 }
 0x6cb   :  { %v1548_v43 = vpop.xlane.xlu1 %1547  ;;  %v1619_v13 = vmul.f32 %v4041_v24, %v4041_v24  ;;  %v1634_v27 = vsub.f32 %v1586_v1, %v1618_v31 }
 0x6cc   :  { %v1582_v42 = vmul.f32 %v1548_v43, %v4462_v59 }
 0x6cd   :  { %v4049_v16 = vpop.eup %2467 }
 0x6ce   :  { %v1630_v8 = vsub.f32 %v1582_v42, %v1614_v40  ;;  %v4054_v14 = vpop.eup %2469  ;;  %v1747_v20 = vmul.f32 %v4049_v16, %v4031_v34  ;;  %v4067_v42 = vadd.f32 1e-05, %v1634_v27  ;;  %vm1753_vm2 = vweird.f32 %v4049_v16 }
 0x6cf   :  { %v1737_v6 = vmul.f32 %v4054_v14, %v4035_v51  ;;  %vm1743_vm15 = vweird.f32 %v4054_v14  ;;  %vm1754_vm4 = vmor %vm1752_vm1, %vm1753_vm2 }
 0x6d0   :  { %v1646_v26 = vadd.f32 1e-05, %v1630_v8  ;;  %v1563_v54 = vpop.xlane.xlu0 %1562  ;;  %v1486_v0 = vpop.xlane.xlu2 %1485  ;;  %v1748_v3 = vmul.f32 %v4049_v16, %v1747_v20  ;;  %vm4106_vm3 = vmor %vm1742_vm14, %vm1743_vm15  ;;  %vm1762_vm5 = vweird.f32 %v4067_v42 }
 0x6d1   :  { %v1587_v5 = vmul.f32 %v1563_v54, %v4462_v59  ;;  %v1738_v45 = vmul.f32 %v4054_v14, %v1737_v6  ;;  %v1599_v54 = vsub.f32 %v3855_v15, %v3994_v18  ;;  %v4080_v1 = vmul.f32 %v1486_v0, %v4462_v59 }
 0x6d2   :  { %2471 = vrsqrt.f32 %v1646_v26  ;;  %vm1722_vm12 = vweird.f32 %v1646_v26  ;;  %v1598_v15 = vsub.f32 %v3849_v4, %v4029_v35 }
 0x6d3   :  { %v1635_v28 = vsub.f32 %v1587_v5, %v1619_v13  ;;  %v1749_v13 = vmul.f32 0.5, %v1748_v3  ;;  %v1823_v22 = vmul.f32 %v1735_v17, %v1599_v54  ;;  %v1739_v9 = vmul.f32 0.5, %v1738_v45  ;;  %v1566_v20 = vpop.xlane.xlu1 %1565 }
 0x6d4   :  { %v1620_v0 = vmul.f32 %v4080_v1, %v4080_v1  ;;  %v1588_v10 = vmul.f32 %v1566_v20, %v4462_v59 }
 0x6d5   :  { %v4064_v32 = vadd.f32 1e-05, %v1635_v28  ;;  %v1750_v57 = vsub.f32 1.5, %v1749_v13  ;;  %v1840_v3 = vmul.f32 %v3846_v53, %v1823_v22 }
 0x6d7   :  { %2473 = vrsqrt.f32 %v4064_v32  ;;  %v1860_v51 = vadd.f32 %v3976_v49, %v1840_v3  ;;  %vm1772_vm7 = vweird.f32 %v4064_v32 }
 0x6d8   :  { %v2472_v19 = vpop.eup %2471  ;;  %v1489_v40 = vpop.xlane.xlu0 %1488  ;;  %2475 = vrsqrt.f32 %v4067_v42 }
 0x6d9   :  { %v1717_v25 = vmul.f32 %v2472_v19, %v1646_v26  ;;  %v4076_v55 = vmul.f32 %v1489_v40, %v4462_v59  ;;  %vm1723_vm11 = vweird.f32 %v2472_v19  ;;  %v1751_v40 = vmul.f32 %v4049_v16, %v1750_v57 }
 0x6da   :  { %v1569_v31 = vpop.xlane.xlu2 %1568  ;;  %vm1724_vm13 = vmor %vm1722_vm12, %vm1723_vm11 }
 0x6db   :  { %v1718_v43 = vmul.f32 %v2472_v19, %v1717_v25  ;;  %v1621_v18 = vmul.f32 %v4076_v55, %v4076_v55  ;;  %v1589_v27 = vmul.f32 %v1569_v31, %v4462_v59 }
 0x6dd   :  { %v1719_v8 = vmul.f32 0.5, %v1718_v43  ;;  %v4087_v25 = vpop.eup %2473  ;;  %v1740_v43 = vsub.f32 1.5, %v1739_v9  ;;  %v1637_v35 = vsub.f32 %v1589_v27, %v1621_v18  ;;  %v1755_v9 = vsel %vm1754_vm4, %v4049_v16, %v1751_v40 }
 0x6de   :  { %v4093_v4 = vpop.eup %2475  ;;  %v1767_v17 = vmul.f32 %v4087_v25, %v4064_v32  ;;  %vm1773_vm8 = vweird.f32 %v4087_v25 }
 0x6df   :  { %v1720_v5 = vsub.f32 1.5, %v1719_v8  ;;  %v1636_v8 = vsub.f32 %v1588_v10, %v1620_v0  ;;  %v1741_v13 = vmul.f32 %v4054_v14, %v1740_v43  ;;  %v1757_v34 = vmul.f32 %v4093_v4, %v4067_v42  ;;  %vm1774_vm10 = vmor %vm1772_vm7, %vm1773_vm8 }
 0x6e0   :  { %v1492_v45 = vpop.xlane.xlu0 %1491  ;;  %v4112_v31 = vadd.f32 1e-05, %v1637_v35  ;;  %vm1763_vm6 = vweird.f32 %v4093_v4 }
 0x6e1   :  { %v1721_v28 = vmul.f32 %v2472_v19, %v1720_v5  ;;  %v4118_v18 = vadd.f32 1e-05, %v1636_v8  ;;  %v1745_v27 = vsel %vm4106_vm3, %v4054_v14, %v1741_v13  ;;  %v1758_v57 = vmul.f32 %v4093_v4, %v1757_v34  ;;  %vm4155_vm9 = vmor %vm1762_vm5, %vm1763_vm6 }
 0x6e2   :  { %2477 = vrsqrt.f32 %v4112_v31  ;;  %v1572_v3 = vpop.xlane.xlu2 %1571  ;;  %vm1792_vm11 = vweird.f32 %v4112_v31 }
 0x6e3   :  { %v1725_v6 = vsel %vm1724_vm13, %v2472_v19, %v1721_v28  ;;  %v1768_v28 = vmul.f32 %v4087_v25, %v1767_v17  ;;  %2479 = vrsqrt.f32 %v4118_v18  ;;  %v1759_v14 = vmul.f32 0.5, %v1758_v57 }
 0x6e4   :  { %v1822_v26 = vmul.f32 %v1725_v6, %v1598_v15  ;;  %v1601_v15 = vsub.f32 %v3869_v60, %v4015_v7  ;;  %v1600_v6 = vsub.f32 %v3862_v61, %v4019_v39  ;;  %v1590_v17 = vmul.f32 %v1572_v3, %v4462_v59 }
 0x6e5   :  { %v1769_v60 = vmul.f32 0.5, %v1768_v28  ;;  %v1760_v8 = vsub.f32 1.5, %v1759_v14  ;;  %v1603_v57 = vsub.f32 %v3883_v52, %v4041_v24  ;;  %vm1782_vm13 = vweird.f32 %v4118_v18 }
 0x6e6   :  { %v1839_v19 = vmul.f32 %v3846_v53, %v1822_v26  ;;  %v1825_v16 = vmul.f32 %v1755_v9, %v1601_v15  ;;  %v1824_v10 = vmul.f32 %v1745_v27, %v1600_v6  ;;  %v4133_v26 = vmul.f32 %v1492_v45, %v4462_v59 }
 0x6e7   :  { %v1770_v35 = vsub.f32 1.5, %v1769_v60  ;;  %v1761_v9 = vmul.f32 %v4093_v4, %v1760_v8 }
 0x6e8   :  { %v1859_v54 = vadd.f32 %v3976_v49, %v1839_v19  ;;  %v1495_v20 = vpop.xlane.xlu1 %1494  ;;  %v1842_v39 = vmul.f32 %v3846_v53, %v1825_v16  ;;  %v4139_v19 = vpop.eup %2477  ;;  %v1622_v40 = vmul.f32 %v4133_v26, %v4133_v26  ;;  %v1841_v45 = vmul.f32 %v3846_v53, %v1824_v10 }
 0x6e9   :  { %v4129_v0 = vmul.f32 %v1495_v20, %v4462_v59  ;;  %v1771_v5 = vmul.f32 %v4087_v25, %v1770_v35  ;;  %v1765_v16 = vsel %vm4155_vm9, %v4093_v4, %v1761_v9  ;;  %vm1793_vm12 = vweird.f32 %v4139_v19 }
 0x6ea   :  { %v1872_v22 = vpack.c.bf16 %v1860_v51, %v1859_v54  ;;  %v1575_v7 = vpop.xlane.xlu0 %1574  ;;  %v2480_v54 = vpop.eup %2479  ;;  %v1862_v13 = vadd.f32 %v3976_v49, %v1842_v39  ;;  %v1638_v34 = vsub.f32 %v1590_v17, %v1622_v40  ;;  %vm1794_vm15 = vmor %vm1792_vm11, %vm1793_vm12 }
 0x6eb   :  { %v1623_v43 = vmul.f32 %v4129_v0, %v4129_v0  ;;  %v1591_v61 = vmul.f32 %v1575_v7, %v4462_v59  ;;  %v1787_v59 = vmul.f32 %v4139_v19, %v4112_v31  ;;  %v1777_v28 = vmul.f32 %v2480_v54, %v4118_v18 }
 0x6ec   :  { %2389 = vmatmul.msk.bf16.gmra.mxu1 %vm118_vm0, %v1872_v22  ;;  %v1861_v22 = vadd.f32 %v3976_v49, %v1841_v45  ;;  %v1775_v32 = vsel %vm1774_vm10, %v4087_v25, %v1771_v5  ;;  %v1654_v6 = vadd.f32 1e-05, %v1638_v34  ;;  %v1602_v7 = vsub.f32 %v3876_v21, %v4044_v62 }
 0x6ed   :  { %v1639_v51 = vsub.f32 %v1591_v61, %v1623_v43  ;;  %v1788_v27 = vmul.f32 %v4139_v19, %v1787_v59  ;;  %v1778_v60 = vmul.f32 %v2480_v54, %v1777_v28  ;;  %v1827_v10 = vmul.f32 %v1775_v32, %v1603_v57 }
 0x6ee   :  { %v1873_v15 = vpack.c.bf16 %v1862_v13, %v1861_v22  ;;  %v1826_v25 = vmul.f32 %v1765_v16, %v1602_v7  ;;  %vm1783_vm14 = vweird.f32 %v2480_v54  ;;  %v1605_v13 = vsub.f32 %v3900_v50, %v4076_v55 }
 0x6ef   :  { %v1655_v20 = vadd.f32 1e-05, %v1639_v51  ;;  %v1789_v14 = vmul.f32 0.5, %v1788_v27  ;;  %v1779_v3 = vmul.f32 0.5, %v1778_v60  ;;  %v1844_v43 = vmul.f32 %v3846_v53, %v1827_v10  ;;  %vm1784_vm1 = vmor %vm1782_vm13, %vm1783_vm14 }
 0x6f0   :  { %v1843_v61 = vmul.f32 %v3846_v53, %v1826_v25  ;;  %v1604_v59 = vsub.f32 %v3893_v2, %v4080_v1  ;;  %vm1802_vm4 = vweird.f32 %v1654_v6  ;;  %v1607_v57 = vsub.f32 %v3920_v47, %v4129_v0 }
 0x6f1   :  { %2481 = vrsqrt.f32 %v1655_v20  ;;  %v1790_v52 = vsub.f32 1.5, %v1789_v14  ;;  %v1780_v39 = vsub.f32 1.5, %v1779_v3  ;;  %v1864_v21 = vadd.f32 %v3976_v49, %v1844_v43 }
 0x6f2   :  { %2483 = vrsqrt.f32 %v1654_v6  ;;  %v1863_v40 = vadd.f32 %v3976_v49, %v1843_v61  ;;  %vm1812_vm2 = vweird.f32 %v1655_v20 }
 0x6f3   :  { %v1791_v62 = vmul.f32 %v4139_v19, %v1790_v52  ;;  %v1781_v17 = vmul.f32 %v2480_v54, %v1780_v39 }
 0x6f4   :  { %v1874_v8 = vpack.c.bf16 %v1864_v21, %v1863_v40 }
 0x6f5   :  { %v1795_v31 = vsel %vm1794_vm15, %v4139_v19, %v1791_v62  ;;  %v1785_v18 = vsel %vm1784_vm1, %v2480_v54, %v1781_v17 }
 0x6f6   :  { %v1829_v34 = vmul.f32 %v1795_v31, %v1605_v13  ;;  %v1828_v9 = vmul.f32 %v1785_v18, %v1604_v59 }
 0x6f7   :  { %v2482_v24 = vpop.eup %2481 }
 0x6f8   :  { %v2484_v4 = vpop.eup %2483  ;;  %v1807_v35 = vmul.f32 %v2482_v24, %v1655_v20  ;;  %v1846_v28 = vmul.f32 %v3846_v53, %v1829_v34  ;;  %v1845_v19 = vmul.f32 %v3846_v53, %v1828_v9  ;;  %vm1813_vm3 = vweird.f32 %v2482_v24 }
 0x6f9   :  { %v1797_v45 = vmul.f32 %v2484_v4, %v1654_v6  ;;  %vm1803_vm5 = vweird.f32 %v2484_v4  ;;  %vm1814_vm6 = vmor %vm1812_vm2, %vm1813_vm3  ;;  %v1606_v20 = vsub.f32 %v3907_v41, %v4133_v26  ;;  %v4193_v6 = vpop.f32.mrf.mxu3 }
 0x6fa   :  { %v1808_v51 = vmul.f32 %v2482_v24, %v1807_v35  ;;  %v1866_v50 = vadd.f32 %v3976_v49, %v1846_v28  ;;  %v1865_v2 = vadd.f32 %v3976_v49, %v1845_v19  ;;  %vm1804_vm7 = vmor %vm1802_vm4, %vm1803_vm5 }
 0x6fb   :  { %v1798_v5 = vmul.f32 %v2484_v4, %v1797_v45 }
 0x6fc   :  { %2390 = vmatmul.msk.bf16.gmra.mxu1 %vm118_vm0, %v1873_v15  ;;  %v1809_v22 = vmul.f32 0.5, %v1808_v51  ;;  %v1875_v54 = vpack.c.bf16 %v1866_v50, %v1865_v2 }
 0x6fd   :  { %v1799_v42 = vmul.f32 0.5, %v1798_v5  ;;  %v2526_v5 = vld [vmem:[%s4393_s4 + $0x4] sm:$0x7] }
 0x6fe   :  { %v1810_v15 = vsub.f32 1.5, %v1809_v22  ;;  %v2033_v59 = vperm.slane %v2526_v5, 2 }
 0x6ff   :  { %v1800_v32 = vsub.f32 1.5, %v1799_v42 }
 0x700   :  { %v1811_v55 = vmul.f32 %v2482_v24, %v1810_v15 }
 0x701   :  { %v1801_v1 = vmul.f32 %v2484_v4, %v1800_v32  ;;  %v1910_v43 = vpop.f32.mrf.mxu3 }
 0x702   :  { %v1815_v27 = vsel %vm1814_vm6, %v2482_v24, %v1811_v55 }
 0x703   :  { %v1805_v16 = vsel %vm1804_vm7, %v2484_v4, %v1801_v1  ;;  %v1831_v60 = vmul.f32 %v1815_v27, %v1607_v57 }
 0x704   :  { %v1830_v7 = vmul.f32 %v1805_v16, %v1606_v20 }
 0x705   :  { %v1848_v10 = vmul.f32 %v3846_v53, %v1831_v60 }
 0x706   :  { %v1847_v14 = vmul.f32 %v3846_v53, %v1830_v7 }
 0x707   :  { %v1868_v25 = vadd.f32 %v3976_v49, %v1848_v10 }
 0x708   :  { %v1867_v3 = vadd.f32 %v3976_v49, %v1847_v14 }
 0x709   :  { %v4202_v52 = vpop.f32.mrf.mxu3 }
 0x70a   :  { %v1876_v47 = vpack.c.bf16 %v1868_v25, %v1867_v3 }
 0x70c   :  { %2391 = vmatmul.msk.bf16.gmra.mxu1 %vm118_vm0, %v1874_v8 }
 0x711   :  { %v4204_v26 = vpop.f32.mrf.mxu3 }
 0x719   :  { %v1918_v61 = vpop.f32.mrf.mxu3 }
 0x71c   :  { %2392 = vmatmul.msk.bf16.gmra.mxu1 %vm118_vm0, %v1875_v54 }
 0x721   :  { %v1920_v53 = vpop.f32.mrf.mxu3 }
 0x722   :  { %v4200_v0 = vpop.f32.mrf.mxu1 }
 0x729   :  { %v1923_v4 = vpop.f32.mrf.mxu3 }
 0x72a   :  { %v1995_v41 = vpop.f32.mrf.mxu1 }
 0x72c   :  { %2393 = vmatmul.msk.bf16.gmra.mxu1 %vm118_vm0, %v1876_v47 }
 0x731   :  { %v1925_v49 = vpop.f32.mrf.mxu3 }
 0x732   :  { %v4206_v24 = vpop.f32.mrf.mxu1 }
 0x739   :  { %v1928_v40 = vpop.f32.mrf.mxu3 }
 0x73a   :  { %v4208_v39 = vpop.f32.mrf.mxu1 }
 0x741   :  { %v1930_v45 = vpop.f32.mrf.mxu3 }
 0x742   :  { %v2003_v21 = vpop.f32.mrf.mxu1 }
 0x743   :  { %v2004_v10 = vadd.f32 %v2003_v21, %v1918_v61 }
 0x749   :  { %v1933_v31 = vpop.f32.mrf.mxu3 }
 0x74a   :  { %v2005_v62 = vpop.f32.mrf.mxu1 }
 0x74b   :  { %v2006_v61 = vadd.f32 %v2005_v62, %v1920_v53  ;;  %v2001_v62 = vadd.f32 %v4208_v39, %v4204_v26  ;;  %v2527_v26 = vld [vmem:[%s4390_s1 + $0x70] sm:$0xff] }
 0x751   :  { %v1935_v13 = vpop.f32.mrf.mxu3 }
 0x759   :  { %v1938_v28 = vpop.f32.mrf.mxu3 }
 0x761   :  { %v1940_v55 = vpop.f32.mrf.mxu3 }
 0x769   :  { %v2008_v35 = vpop.f32.mrf.mxu1  ;;  %v1943_v27 = vpop.f32.mrf.mxu3 }
 0x76a   :  { %v2009_v5 = vadd.f32 %v2008_v35, %v1923_v4 }
 0x771   :  { %v2010_v17 = vpop.f32.mrf.mxu1  ;;  %v1945_v14 = vpop.f32.mrf.mxu3 }
 0x772   :  { %v2011_v57 = vadd.f32 %v2010_v17, %v1925_v49  ;;  %v1996_v49 = vadd.f32 %v1995_v41, %v1910_v43  ;;  %v1999_v43 = vadd.f32 %v4206_v24, %v4202_v52  ;;  %v4254_v41 = vadd.f32 %v2033_v59, %v2009_v5  ;;  %v2533_v5 = vld [vmem:[%s4390_s1 + $0x48] sm:$0xff] }
 0x773   :  { %v1994_v52 = vadd.f32 %v4200_v0, %v4193_v6  ;;  %v2528_v6 = vld [vmem:[%s4390_s1 + $0x68] sm:$0xff] }
 0x774   :  { %v4226_v60 = vadd.f32 %v2033_v59, %v2011_v57  ;;  %v4240_v21 = vadd.f32 %v2033_v59, %v1996_v49  ;;  %v4256_v53 = vadd.f32 %v2033_v59, %v1999_v43 }
 0x775   :  { %v4270_v24 = vadd.f32 %v2033_v59, %v1994_v52 }
 0x779   :  { %v2013_v8 = vpop.f32.mrf.mxu1 }
 0x77a   :  { %v2014_v25 = vadd.f32 %v2013_v8, %v1928_v40  ;;  %v4244_v8 = vadd.f32 %v2033_v59, %v2006_v61 }
 0x781   :  { %v2015_v51 = vpop.f32.mrf.mxu1 }
 0x782   :  { %v2016_v17 = vadd.f32 %v2015_v51, %v1930_v45  ;;  %v4264_v45 = vadd.f32 %v2033_v59, %v2001_v62  ;;  %v4474_v62 = vld [vmem:[#allocation22_spill] sm:$0xff] }
 0x784   :  { %v4242_v40 = vadd.f32 %v2033_v59, %v2016_v17  ;;  %v2202_v17 = vld [vmem:[%s4395_s6 + $0x18] sm:$0xff] }
 0x785   :  { %2220 = vmatpush.msra.mxu2 %v2202_v17  ;;  %v4481_v17 = vld [vmem:[#allocation15_spill] sm:$0xff] }
 0x789   :  { %v2018_v18 = vpop.f32.mrf.mxu1 }
 0x78a   :  { %v2019_v34 = vadd.f32 %v2018_v18, %v1933_v31  ;;  %v4231_v31 = vadd.f32 %v2033_v59, %v2004_v10  ;;  %v4233_v18 = vadd.f32 %v2033_v59, %v2014_v25 }
 0x78c   :  { %v4213_v22 = vadd.f32 %v2033_v59, %v2019_v34 }
 0x78e   :  { %2102 = vrot.lane.b32.xlu0 %v4213_v22, %s2569_s16 }
 0x791   :  { %v2020_v9 = vpop.f32.mrf.mxu1 }
 0x792   :  { %v2021_v42 = vadd.f32 %v2020_v9, %v1935_v13 }
 0x794   :  { %v4217_v15 = vadd.f32 %v2033_v59, %v2021_v42 }
 0x796   :  { %2104 = vrot.lane.b32.xlu2 %v4217_v15, %s2569_s16 }
 0x799   :  { %v2023_v19 = vpop.f32.mrf.mxu1 }
 0x79a   :  { %v2024_v32 = vadd.f32 %v2023_v19, %v1938_v28 }
 0x79c   :  { %v4221_v50 = vadd.f32 %v2033_v59, %v2024_v32  ;;  %v2529_v32 = vld [vmem:[%s4390_s1 + $0x78] sm:$0xff] }
 0x79e   :  { %2106 = vrot.lane.b32.xlu1 %v4221_v50, %s2569_s16 }
 0x7a1   :  { %v2025_v2 = vpop.f32.mrf.mxu1 }
 0x7a2   :  { %v2026_v1 = vadd.f32 %v2025_v2, %v1940_v55 }
 0x7a4   :  { %v2047_v54 = vadd.f32 %v2033_v59, %v2026_v1 }
 0x7a6   :  { %2108 = vrot.lane.b32.xlu0 %v2047_v54, %s2569_s16 }
 0x7a9   :  { %v2028_v16 = vpop.f32.mrf.mxu1 }
 0x7aa   :  { %v2029_v20 = vadd.f32 %v2028_v16, %v1943_v27  ;;  %v2530_v27 = vld [vmem:[%s4390_s1 + $0x60] sm:$0xff] }
 0x7ac   :  { %v2048_v7 = vadd.f32 %v2033_v59, %v2029_v20  ;;  %v2531_v20 = vld [vmem:[%s4390_s1 + $0x58] sm:$0xff] }
 0x7ae   :  { %2096 = vrot.lane.b32.xlu0 %v4226_v60, %s2569_s16  ;;  %2110 = vrot.lane.b32.xlu2 %v2048_v7, %s2569_s16  ;;  %v2064_v19 = vmul.f32 %v2048_v7, %v4452_v36  ;;  %v2063_v36 = vmul.f32 %v2047_v54, %v2797_v38  ;;  %v2062_v7 = vmul.f32 %v4221_v50, %v2795_v37  ;;  %v2201_v50 = vld [vmem:[%s4395_s6 + $0x10] sm:$0xff] }
 0x7af   :  { %2221 = vmatpush.msra.mxu2 %v2201_v50  ;;  %v2052_v50 = vmul.f32 %v4256_v53, %v2862_v44  ;;  %v2051_v44 = vmul.f32 %v4240_v21, %v2883_v12 }
 0x7b1   :  { %v2030_v3 = vpop.f32.mrf.mxu1 }
 0x7b2   :  { %v2031_v47 = vadd.f32 %v2030_v3, %v1945_v14  ;;  %v4471_v14 = vld [vmem:[#allocation7_spill] sm:$0xff]  ;;  %v2061_v3 = vmul.f32 %v4217_v15, %v2785_v23  ;;  %v4473_v15 = vld [vmem:[#allocation5_spill] sm:$0xff] }
 0x7b3   :  { %v2060_v61 = vmul.f32 %v4213_v22, %v4473_v15  ;;  %v2053_v15 = vmul.f32 %v4264_v45, %v2864_v33 }
 0x7b4   :  { %v2049_v13 = vadd.f32 %v2033_v59, %v2031_v47  ;;  %v2532_v47 = vld [vmem:[%s4390_s1 + $0x50] sm:$0xff] }
 0x7b6   :  { %2090 = vrot.lane.b32.xlu0 %v4231_v31, %s2569_s16  ;;  %2112 = vrot.lane.b32.xlu1 %v2049_v13, %s2569_s16  ;;  %v2065_v59 = vmul.f32 %v2049_v13, %v4453_v63  ;;  %v4472_v13 = vld [vmem:[#allocation6_spill] sm:$0xff] }
 0x7b7   :  { %2098 = vrot.lane.b32.xlu2 %v4233_v18, %s2569_s16 }
 0x7be   :  { %2084 = vrot.lane.b32.xlu0 %v4240_v21, %s2569_s16  ;;  %2100 = vrot.lane.b32.xlu1 %v4242_v40, %s2569_s16  ;;  %v4486_v21 = vld [vmem:[#allocation9_spill] sm:$0xff] }
 0x7bf   :  { %2092 = vrot.lane.b32.xlu2 %v4244_v8, %s2569_s16 }
 0x7c6   :  { %2094 = vrot.lane.b32.xlu1 %v4254_v41, %s2569_s16 }
 0x7c7   :  { %2086 = vrot.lane.b32.xlu2 %v4256_v53, %s2569_s16 }
 0x7ce   :  { %2088 = vrot.lane.b32.xlu1 %v4264_v45, %s2569_s16  ;;  %v4485_v45 = vld [vmem:[#allocation12_spill] sm:$0xff] }
 0x7d6   :  { %2082 = vrot.lane.b32.xlu1 %v4270_v24, %s2569_s16 }
 0x7f0   :  { %v2105_v4 = vpop.permute.xlu2 %2104 }
 0x7f1   :  { %v2141_v63 = vmul.f32 %v2531_v20, %v2105_v4  ;;  %v2200_v4 = vld [vmem:[%s4395_s6 + $0x8] sm:$0xff] }
 0x7f2   :  { %2222 = vmatpush.msra.mxu2 %v2200_v4  ;;  %v4483_v4 = vld [vmem:[#allocation13_spill] sm:$0xff] }
 0x7f3   :  { %v2157_v23 = vadd.f32 %v2141_v63, %v2061_v3  ;;  %v2055_v63 = vmul.f32 %v4244_v8, %v2845_v48  ;;  %v2539_v48 = vld [vmem:[%s4390_s1 + $0x10] sm:$0xff] }
 0x800   :  { %v2103_v35 = vpop.permute.xlu0 %2102 }
 0x801   :  { %v2140_v38 = vmul.f32 %v2532_v47, %v2103_v35  ;;  %v2054_v47 = vmul.f32 %v4231_v31, %v2843_v56  ;;  %v2540_v56 = vld [vmem:[%s4390_s1 + $0x8] sm:$0xff] }
 0x808   :  { %v2111_v51 = vpop.permute.xlu2 %2110 }
 0x809   :  { %v2144_v39 = vmul.f32 %v2527_v26, %v2111_v51  ;;  %v2156_v51 = vadd.f32 %v2140_v38, %v2060_v61  ;;  %v4475_v26 = vld [vmem:[#allocation21_spill] sm:$0xff]  ;;  %v4480_v38 = vld [vmem:[#allocation16_spill] sm:$0xff]  ;;  %v2541_v61 = vld [vmem:[%s4390_s1 + $0x18] sm:$0xff] }
 0x80b   :  { %v2160_v1 = vadd.f32 %v2144_v39, %v2064_v19 }
 0x80d   :  { %v2176_v49 = vadd.f32 %v2160_v1, %v4472_v13  ;;  %v4477_v1 = vld [vmem:[#allocation19_spill] sm:$0xff] }
 0x810   :  { %v2107_v34 = vpop.permute.xlu1 %2106 }
 0x811   :  { %v2099_v42 = vpop.permute.xlu2 %2098  ;;  %v2142_v57 = vmul.f32 %v2530_v27, %v2107_v34  ;;  %v2534_v34 = vld [vmem:[%s4390_s1 + $0x40] sm:$0xff]  ;;  %v2172_v27 = vadd.f32 %v2156_v51, %v4477_v1 }
 0x812   :  { %v2138_v22 = vmul.f32 %v2534_v34, %v2099_v42  ;;  %v4484_v34 = vld [vmem:[#allocation11_spill] sm:$0xff] }
 0x813   :  { %v2158_v54 = vadd.f32 %v2142_v57, %v2062_v7 }
 0x815   :  { %v2174_v39 = vadd.f32 %v2158_v54, %v4475_v26  ;;  %v2050_v26 = vmul.f32 %v4270_v24, %v2881_v11  ;;  %v2418_v11 = vld [vmem:[%s4395_s6 + $0x20] ss:$0 sm:$0xff] }
 0x818   :  { %v2109_v9 = vpop.permute.xlu0 %2108 }
 0x819   :  { %v2143_v0 = vmul.f32 %v2528_v6, %v2109_v9  ;;  %v2093_v35 = vpop.permute.xlu2 %2092  ;;  %v2059_v9 = vmul.f32 %v4242_v40, %v2821_v30  ;;  %v2058_v6 = vmul.f32 %v4233_v18, %v2819_v29  ;;  %v4476_v30 = vld [vmem:[#allocation20_spill] sm:$0xff]  ;;  %v2056_v29 = vmul.f32 %v4254_v41, %v2839_v58 }
 0x81a   :  { %v2173_v40 = vadd.f32 %v2157_v23, %v4476_v30  ;;  %v2538_v58 = vld [vmem:[%s4390_s1 + $0x20] sm:$0xff] }
 0x81b   :  { %v2159_v10 = vadd.f32 %v2143_v0, %v2063_v36  ;;  %v2535_v0 = vld [vmem:[%s4390_s1 + $0x38] sm:$0xff] }
 0x81d   :  { %v2175_v52 = vadd.f32 %v2159_v10, %v4474_v62  ;;  %v4479_v10 = vld [vmem:[#allocation17_spill] sm:$0xff] }
 0x820   :  { %v2097_v2 = vpop.permute.xlu0 %2096 }
 0x821   :  { %v2137_v42 = vmul.f32 %v2535_v0, %v2097_v2  ;;  %v2536_v2 = vld [vmem:[%s4390_s1 + $0x28] sm:$0xff] }
 0x822   :  { %v2135_v57 = vmul.f32 %v2536_v2, %v2093_v35 }
 0x824   :  { %v2151_v3 = vadd.f32 %v2135_v57, %v2055_v63 }
 0x828   :  { %v2113_v28 = vpop.permute.xlu1 %2112  ;;  %v2091_v19 = vpop.permute.xlu0 %2090 }
 0x829   :  { %v2145_v55 = vmul.f32 %v2529_v32, %v2113_v28  ;;  %v2199_v28 = vld [vmem:[%s4395_s6] sm:$0xff]  ;;  %v2154_v32 = vadd.f32 %v2138_v22, %v2058_v6  ;;  %v2134_v41 = vmul.f32 %v2538_v58, %v2091_v19  ;;  %v4487_v6 = vld [vmem:[#allocation10_spill] sm:$0xff] }
 0x82a   :  { %2223 = vmatpush.msra.mxu2 %v2199_v28 }
 0x82b   :  { %v2161_v16 = vadd.f32 %v2145_v55, %v2065_v59  ;;  %v2057_v55 = vmul.f32 %v4226_v60, %v2841_v46  ;;  %v4478_v46 = vld [vmem:[#allocation18_spill] sm:$0xff] }
 0x82d   :  { %v2177_v25 = vadd.f32 %v2161_v16, %v4471_v14  ;;  %v2153_v36 = vadd.f32 %v2137_v42, %v2057_v55  ;;  %v2537_v16 = vld [vmem:[%s4390_s1 + $0x30] sm:$0xff]  ;;  %v2170_v14 = vadd.f32 %v2154_v32, %v4479_v10  ;;  %v2178_v42 = vld [vmem:[%s4394_s5] sm:$0xff] }
 0x82f   :  { %2179 = vmatpush.msra.mxu0 %v2177_v25  ;;  %v2087_v25 = vpop.permute.xlu2 %2086  ;;  %v2169_v54 = vadd.f32 %v2153_v36, %v4480_v38 }
 0x830   :  { %v2101_v37 = vpop.permute.xlu1 %2100  ;;  %v2085_v13 = vpop.permute.xlu0 %2084  ;;  %v2132_v8 = vmul.f32 %v2539_v48, %v2087_v25 }
 0x831   :  { %v2139_v43 = vmul.f32 %v2533_v5, %v2101_v37  ;;  %2180 = vmatpush.msra.mxu0 %v2176_v49  ;;  %v2150_v49 = vadd.f32 %v2134_v41, %v2054_v47  ;;  %v2131_v31 = vmul.f32 %v2540_v56, %v2085_v13 }
 0x833   :  { %2181 = vmatpush.msra.mxu0 %v2175_v52  ;;  %v2155_v59 = vadd.f32 %v2139_v43, %v2059_v9  ;;  %v4482_v43 = vld [vmem:[#allocation14_spill] sm:$0xff]  ;;  %v2148_v52 = vadd.f32 %v2132_v8, %v2052_v50  ;;  %v2166_v35 = vadd.f32 %v2150_v49, %v4483_v4  ;;  %v2147_v51 = vadd.f32 %v2131_v31, %v2051_v44 }
 0x834   :  { %v2167_v62 = vadd.f32 %v2151_v3, %v4482_v43 }
 0x835   :  { %2182 = vmatpush.msra.mxu0 %v2174_v39  ;;  %v2171_v60 = vadd.f32 %v2155_v59, %v4478_v46  ;;  %v2164_v22 = vadd.f32 %v2148_v52, %v4485_v45  ;;  %v2542_v39 = vld [vmem:[%s4390_s1] sm:$0xff]  ;;  %v2163_v28 = vadd.f32 %v2147_v51, %v4486_v21  ;;  %s2571_s1 = smov [#allocation2]  }
 0x836   :  { %s2234_s28 = sshll.u32 %s2571_s1, 4  ;;  %s2235_s28 = int_to_ptr.vmem [resolvable:$true] %s2234_s28 }
 0x837   :  { %2183 = vmatpush.msra.mxu0 %v2173_v40 }
 0x838   :  { %v2095_v18 = vpop.permute.xlu1 %2094 }
 0x839   :  { %v2136_v20 = vmul.f32 %v2537_v16, %v2095_v18  ;;  %2184 = vmatpush.msra.mxu0 %v2172_v27 }
 0x83b   :  { %v2152_v7 = vadd.f32 %v2136_v20, %v2056_v29  ;;  %2185 = vmatpush.msra.mxu0 %v2171_v60 }
 0x83d   :  { %2186 = vmatpush.msra.mxu0 %v2170_v14  ;;  %v2168_v37 = vadd.f32 %v2152_v7, %v4481_v17 }
 0x83f   :  { %2187 = vmatpush.msra.mxu0 %v2169_v54 }
 0x840   :  { %v2089_v23 = vpop.permute.xlu1 %2088 }
 0x841   :  { %v2133_v5 = vmul.f32 %v2541_v61, %v2089_v23  ;;  %2188 = vmatpush.msra.mxu0 %v2168_v37 }
 0x843   :  { %v2149_v53 = vadd.f32 %v2133_v5, %v2053_v15  ;;  %2189 = vmatpush.msra.mxu0 %v2167_v62 }
 0x845   :  { %2190 = vmatpush.msra.mxu0 %v2166_v35  ;;  %v2165_v33 = vadd.f32 %v2149_v53, %v4484_v34 }
 0x847   :  { %2191 = vmatpush.msra.mxu0 %v2165_v33 }
 0x848   :  { %v2083_v9 = vpop.permute.xlu1 %2082 }
 0x849   :  { %v2130_v12 = vmul.f32 %v2542_v39, %v2083_v9  ;;  %2192 = vmatpush.msra.mxu0 %v2164_v22 }
 0x84b   :  { %v2146_v19 = vadd.f32 %v2130_v12, %v2050_v26  ;;  %2193 = vmatpush.msra.mxu0 %v2163_v28 }
 0x84d   :  { %v2162_v0 = vadd.f32 %v2146_v19, %v4487_v6 }
 0x84f   :  { %2194 = vmatpush.msra.mxu0 %v2162_v0 }
 0x850   :  { %2195 = vmatmul.f32.vlgmr.msra.gmra.mxu0 %v2178_v42 }
 0x8cd   :  { %v2196_v59 = vpop.f32.mrf.mxu0 }
 0x8ce   :  { %2394 = vmatmul.msk.f32.vlgmr.msra.gmra.mxu2 %vm118_vm0, %v2196_v59 }
 0x951   :  { %v2225_v24 = vpop.f32.mrf.mxu2 }
 0x952   :  { %v2226_v30 = vadd.f32 %v2418_v11, %v2225_v24 }
 0x954   :  { %2228 = vst [vmem:[#allocation2] sm:$0xff] %v2226_v30 }
 0x955   :  { %2239 = dma.vmem_to_hbm [thread:$0]  %s2235_s28, 128, %s2237_s8, [#allocation3]  }
 0x956   :  { %2567 = dma.done.wait [#allocation3], 128  }
 0x957   :  { %2568 = vsyncadd [#allocation3], 4294967168 }
 0x958   :  { %2244 = vsyncpa [#allocation3], 1 }

</bundles_post_ra>
